<compile_context>
chip_gen: v7x
topology: tpu7x:2x2x1
jax: 0.10.0
libtpu: 0.0.40
codegen_flags: <defaults>
</compile_context>

<pallas_src>
import functools

import jax
import jax.numpy as jnp
from jax.experimental import pallas as pl
from jax.experimental.pallas import tpu as pltpu

EPS = 1e-5


def _round_up(x, m):
    return ((x + m - 1) // m) * m


def _pick_tile_rows(H, W, Wp, C, max_tile_rows=None):
    """Largest divisor of H whose per-tile f32 temporaries stay a few MiB."""
    c_l = _round_up(C, 128)
    budget = 6 * 2**20
    tr_target = max(1, budget // (3 * Wp * c_l * 4) - 2)
    if max_tile_rows is not None:
        tr_target = min(tr_target, max_tile_rows)
    tr_target = min(tr_target, H)
    cand = [d for d in range(1, H + 1)
            if H % d == 0 and d <= tr_target and (d == H or (d * W) % 8 == 0)]
    # TODO(synk): pad H to a friendlier multiple when no suitable divisor
    #             exists instead of falling back to whole-image tiles.
    return max(cand) if cand else H


# ----------------------------- fused kernel ----------------------------------
def _fused_kernel(x_ref, w1_ref, b1_ref, w2_ref, b2_ref, o_ref, y1_ref, *,
                  W, Wp, tr, lead0, lead1):
    # x_ref  : (lead0 + (tr+4)*Wp + trail, Cin) bf16  flattened zero-padded
    #          input rows of this row-tile (2-row halo above/below, zero cols
    #          0 and W+1..Wp-1)
    # w*_ref : (9, K, C) bf16  conv taps with BN scale folded in
    # b*_ref : (1, C)    f32   folded BN shift
    # o_ref  : (tr*W, C) f32   exact output rows of this tile
    # y1_ref : (lead1 + (tr+2)*Wp + 8, C) bf16 VMEM scratch for stage-1
    t = pl.program_id(1)
    n_t = pl.num_programs(1)
    C = o_ref.shape[-1]
    R1 = (tr + 2) * Wp            # stage-1 rows (tile + 1-row halo each side)
    R2 = tr * Wp                  # stage-2 rows (tile only)

    def conv9(src_ref, w_ref, center, n_rows):
        # 3x3 conv = 9 accumulating MXU matmuls over shifted views of the
        # flattened (rows, channels) tile; `center` is the flat index of the
        # (ky=1, kx=1) tap for output row 0.  All offsets are static.
        acc = None
        for ky in range(3):
            for kx in range(3):
                start = center + (ky - 1) * Wp + (kx - 1)
                tap = src_ref[pl.ds(start, n_rows), :]
                d = jnp.dot(tap, w_ref[ky * 3 + kx],
                            preferred_element_type=jnp.float32)
                acc = d if acc is None else acc + d
        return acc

    # ---- stage 1: conv3x3 (BN scale folded into w) + shift + ReLU -----------
    acc1 = conv9(x_ref, w1_ref, lead0 + Wp, R1)
    y1 = jnp.maximum(acc1 + b1_ref[...], 0.0)

    # Zero the width-pad columns so stage 2 sees true zero padding at the
    # left/right image borders (one select instead of 6 per-tap masks).
    col = jax.lax.broadcasted_iota(jnp.int32, (R1, 1), 0) % Wp
    col_ok = jnp.logical_and(col >= 1, col <= W)
    y1 = jnp.where(col_ok, y1, 0.0)
    y1_ref[pl.ds(lead1, R1), :] = y1.astype(y1_ref.dtype)

    # Stage-2 halo rows that fall outside the image are part of conv2's zero
    # padding, not of the stage-1 output -> force them to zero.
    @pl.when(t == 0)
    def _():
        y1_ref[pl.ds(lead1, Wp), :] = jnp.zeros((Wp, C), y1_ref.dtype)

    @pl.when(t == n_t - 1)
    def _():
        y1_ref[pl.ds(lead1 + (tr + 1) * Wp, Wp), :] = jnp.zeros(
            (Wp, C), y1_ref.dtype)

    # (The scratch lead/tail rows are never read by any *stored* output
    #  position, so they are left uninitialized on purpose.)

    # ---- stage 2: conv3x3 + shift + ReLU -------------------------------------
    acc2 = conv9(y1_ref, w2_ref, lead1 + Wp, R2)
    y2 = jnp.maximum(acc2 + b2_ref[...], 0.0)

    # Store only the W valid columns of each image row -> exact (tr*W, C)
    # output block: no channel padding and no post-kernel slice pass.
    for j in range(tr):
        o_ref[pl.ds(j * W, W), :] = y2[j * Wp + 1:j * Wp + 1 + W, :].astype(
            o_ref.dtype)


# ------------------------------ wrapper ---------------------------------------
def conv_head_forward(x_nchw, params, *, max_tile_rows=None):
    """Fused Pallas forward of the `conv` head.

    x_nchw: (B, Cin, H, W) float32 (PyTorch layout).
    returns (B, H*W, embed_dim) float32, matching flatten(2).transpose(1, 2).
    BatchNorm runs in inference (running-stats) mode, folded into the conv
    weights (scale) and a per-channel shift.
    """
    w1, w2 = params["w1"], params["w2"]
    C, Cin = w1.shape[0], w1.shape[1]
    B, _, H, W = x_nchw.shape

    Wp = _round_up(W + 2, 8)            # padded row width (zero border cols)
    lead0, trail0, lead1 = 8, 8, 8      # sublane-aligned leads / tap slack

    tr = _pick_tile_rows(H, W, Wp, C, max_tile_rows)
    n_tiles = H // tr
    R_in = (tr + 4) * Wp                # tile rows + 2-row halo each side
    R_in_tot = lead0 + R_in + trail0
    S1 = lead1 + (tr + 2) * Wp + 8      # stage-1 scratch rows

    # input: NCHW -> zero-padded NHWC -> overlapping flattened row-tiles (bf16,
    # exact Cin channels -- no 128 channel padding in HBM).
    x = jnp.transpose(x_nchw, (0, 2, 3, 1))                      # (B,H,W,Cin)
    x = jnp.pad(x, ((0, 0), (2, 2), (1, Wp - W - 1), (0, 0)))    # (B,H+4,Wp,Cin)
    # Per-tile windows with the 2-row halo duplicated in HBM so the BlockSpec
    # pipeliner streams non-overlapping blocks (halo dup is <= (tr+4)/tr).
    x = jnp.stack([x[:, t * tr:t * tr + tr + 4] for t in range(n_tiles)],
                  axis=1)                                        # (B,nt,tr+4,Wp,Cin)
    x = x.reshape(B, n_tiles, R_in, Cin)
    x = jnp.pad(x, ((0, 0), (0, 0), (lead0, trail0), (0, 0))).astype(jnp.bfloat16)

    # weights: fold BN scale, (Cout, Cin, 3, 3) -> (9, Cin, Cout) bf16
    def fold(w, g, b, m, v):
        scale = g / jnp.sqrt(v + EPS)
        shift = (b - m * scale).astype(jnp.float32)[None, :]
        wt = w * scale[:, None, None, None]
        wt = jnp.transpose(wt, (2, 3, 1, 0)).reshape(9, w.shape[1], w.shape[0])
        return wt.astype(jnp.bfloat16), shift

    w1_m, sh1 = fold(w1, params["g1"], params["b1"], params["m1"], params["v1"])
    w2_m, sh2 = fold(w2, params["g2"], params["b2"], params["m2"], params["v2"])

    kernel = functools.partial(_fused_kernel, W=W, Wp=Wp, tr=tr,
                               lead0=lead0, lead1=lead1)

    # VMEM budget per row-tile (lane-padded), incl. in-kernel f32 temporaries.
    cin_l, c_l = _round_up(Cin, 128), _round_up(C, 128)
    est = (2 * R_in_tot * cin_l * 2          # double-buffered input block
           + 2 * tr * W * c_l * 4            # double-buffered output block
           + S1 * c_l * 2                    # stage-1 scratch
           + 2 * 9 * (cin_l + c_l) * c_l * 2 # weights
           + 3 * ((tr + 2) * Wp + tr * Wp) * c_l * 4)  # f32 acc/temps/taps
    vmem_limit = int(min(48 * 2**20, max(16 * 2**20, 2 * est)))

    out = pl.pallas_call(
        kernel,
        out_shape=jax.ShapeDtypeStruct((B, H * W, C), jnp.float32),
        grid_spec=pltpu.PrefetchScalarGridSpec(
            num_scalar_prefetch=0,
            grid=(B, n_tiles),
            in_specs=[
                pl.BlockSpec((None, None, R_in_tot, Cin), lambda b, t: (b, t, 0, 0)),
                pl.BlockSpec((9, Cin, C), lambda b, t: (0, 0, 0)),
                pl.BlockSpec((1, C), lambda b, t: (0, 0)),
                pl.BlockSpec((9, C, C), lambda b, t: (0, 0, 0)),
                pl.BlockSpec((1, C), lambda b, t: (0, 0)),
            ],
            out_specs=pl.BlockSpec((None, tr * W, C), lambda b, t: (b, t, 0)),
            scratch_shapes=[pltpu.VMEM((S1, C), jnp.bfloat16)],
        ),
        compiler_params=pltpu.CompilerParams(
            dimension_semantics=("parallel", "parallel"),
            vmem_limit_bytes=vmem_limit),
    )(x, w1_m, sh1, w2_m, sh2)

    return out


# -------------------------- pure-JAX reference ---------------------------------
def ref_forward(x_nchw, p):
    def conv2d(x, w):
        return jax.lax.conv_general_dilated(
            x, w, (1, 1), ((1, 1), (1, 1)),
            dimension_numbers=("NCHW", "OIHW", "NCHW"))

    def bn(x, g, b, m, v):
        g, b, m, v = (t[None, :, None, None] for t in (g, b, m, v))
        return (x - m) / jnp.sqrt(v + EPS) * g + b

    y = jax.nn.relu(bn(conv2d(x_nchw, p["w1"]), p["g1"], p["b1"], p["m1"], p["v1"]))
    y = jax.nn.relu(bn(conv2d(y, p["w2"]), p["g2"], p["b2"], p["m2"], p["v2"]))
    B, C, H, W = y.shape
    return jnp.transpose(y.reshape(B, C, H * W), (0, 2, 1))


# --------------------------------- main -----------------------------------------
if __name__ == "__main__":
    # small shapes consistent with the module (input_dim -> embed_dim)
    B, Cin, H, W = 2, 8, 16, 16
    embed_dim = 32

    key = jax.random.PRNGKey(0)
    ks = jax.random.split(key, 11)

    x = jax.random.normal(ks[0], (B, Cin, H, W), jnp.float32)

    params = dict(
        w1=jax.random.normal(ks[1], (embed_dim, Cin, 3, 3), jnp.float32) * 0.05,
        w2=jax.random.normal(ks[2], (embed_dim, embed_dim, 3, 3), jnp.float32) * 0.05,
        g1=jax.random.uniform(ks[3], (embed_dim,), jnp.float32, 0.5, 1.5),
        b1=jax.random.normal(ks[4], (embed_dim,), jnp.float32) * 0.1,
        m1=jax.random.normal(ks[5], (embed_dim,), jnp.float32) * 0.1,
        v1=jax.random.uniform(ks[6], (embed_dim,), jnp.float32, 0.5, 1.5),
        g2=jax.random.uniform(ks[7], (embed_dim,), jnp.float32, 0.5, 1.5),
        b2=jax.random.normal(ks[8], (embed_dim,), jnp.float32) * 0.1,
        m2=jax.random.normal(ks[9], (embed_dim,), jnp.float32) * 0.1,
        v2=jax.random.uniform(ks[10], (embed_dim,), jnp.float32, 0.5, 1.5),
    )

    # max_tile_rows=4 -> 4 row-tiles per image at H=16: exercises the
    # first / interior / last halo-recompute paths even at small shapes.
    fwd = jax.jit(functools.partial(conv_head_forward, max_tile_rows=4))
    out = jax.block_until_ready(fwd(x, params))
    ref = jax.block_until_ready(ref_forward(x, params))

    assert out.shape == (B, H * W, embed_dim), out.shape
    max_err = float(jnp.max(jnp.abs(out - ref)))
    # bf16 matmul operands with f32 accumulation -> slightly loosened tolerance
    assert jnp.allclose(out, ref, atol=3e-2, rtol=3e-2), max_err

    print("KERNEL_OK")
</pallas_src>

<mosaic_0001>
module attributes {stable_mosaic.version = 11 : i64} {
  func.func @_fused_kernel(%arg0: i32, %arg1: i32, %arg2: memref<1x1x208x8xbf16, #tpu.memory_space<vmem>>, %arg3: memref<9x8x32xbf16, #tpu.memory_space<vmem>>, %arg4: memref<1x32xf32, #tpu.memory_space<vmem>>, %arg5: memref<9x32x32xbf16, #tpu.memory_space<vmem>>, %arg6: memref<1x32xf32, #tpu.memory_space<vmem>>, %arg7: memref<1x64x32xf32, #tpu.memory_space<vmem>>, %arg8: memref<160x32xbf16, #tpu.memory_space<vmem>>) attributes {dimension_semantics = [#tpu.dimension_semantics<parallel>, #tpu.dimension_semantics<parallel>], iteration_bounds = array<i64: 2, 4>, scalar_prefetch = 0 : i64, scratch_operands = 1 : i64, tpu.core_type = #tpu.core_type<tc>, window_params = [{transform_indices = @transform_0, window_bounds = array<i64: 1, 1, 208, 8>}, {pipeline_mode = #tpu.pipeline_mode<synchronous>, transform_indices = @transform_1, window_bounds = array<i64: 9, 8, 32>}, {pipeline_mode = #tpu.pipeline_mode<synchronous>, transform_indices = @transform_2, window_bounds = array<i64: 1, 32>}, {pipeline_mode = #tpu.pipeline_mode<synchronous>, transform_indices = @transform_3, window_bounds = array<i64: 9, 32, 32>}, {pipeline_mode = #tpu.pipeline_mode<synchronous>, transform_indices = @transform_4, window_bounds = array<i64: 1, 32>}, {transform_indices = @transform_5, window_bounds = array<i64: 1, 64, 32>}]} {
    %c0 = arith.constant 0 : index
    %c0_0 = arith.constant 0 : index
    %c7 = arith.constant 7 : index
    %c0_1 = arith.constant 0 : index
    %0 = vector.load %arg2[%c0, %c0_0, %c7, %c0_1] : memref<1x1x208x8xbf16, #tpu.memory_space<vmem>>, vector<1x1x144x8xbf16>
    %1 = vector.shape_cast %0 : vector<1x1x144x8xbf16> to vector<144x8xbf16>
    %c0_2 = arith.constant 0 : index
    %c0_3 = arith.constant 0 : index
    %c0_4 = arith.constant 0 : index
    %2 = vector.load %arg3[%c0_2, %c0_3, %c0_4] : memref<9x8x32xbf16, #tpu.memory_space<vmem>>, vector<1x8x32xbf16>
    %3 = vector.shape_cast %2 : vector<1x8x32xbf16> to vector<8x32xbf16>
    %cst = arith.constant dense<0.000000e+00> : vector<144x32xf32>
    %4 = tpu.matmul %1, %3, %cst {dimension_numbers = #tpu.dot_dimension_numbers<[1], [0], [0], [1], [0, 0, 1, 1], [], []>} : vector<144x8xbf16>, vector<8x32xbf16>, vector<144x32xf32> -> vector<144x32xf32>
    %c0_5 = arith.constant 0 : index
    %c0_6 = arith.constant 0 : index
    %c8 = arith.constant 8 : index
    %c0_7 = arith.constant 0 : index
    %5 = vector.load %arg2[%c0_5, %c0_6, %c8, %c0_7] : memref<1x1x208x8xbf16, #tpu.memory_space<vmem>>, vector<1x1x144x8xbf16>
    %6 = vector.shape_cast %5 : vector<1x1x144x8xbf16> to vector<144x8xbf16>
    %c1 = arith.constant 1 : index
    %c0_8 = arith.constant 0 : index
    %c0_9 = arith.constant 0 : index
    %7 = vector.load %arg3[%c1, %c0_8, %c0_9] : memref<9x8x32xbf16, #tpu.memory_space<vmem>>, vector<1x8x32xbf16>
    %8 = vector.shape_cast %7 : vector<1x8x32xbf16> to vector<8x32xbf16>
    %cst_10 = arith.constant dense<0.000000e+00> : vector<144x32xf32>
    %9 = tpu.matmul %6, %8, %cst_10 {dimension_numbers = #tpu.dot_dimension_numbers<[1], [0], [0], [1], [0, 0, 1, 1], [], []>} : vector<144x8xbf16>, vector<8x32xbf16>, vector<144x32xf32> -> vector<144x32xf32>
    %10 = arith.addf %4, %9 : vector<144x32xf32>
    %c0_11 = arith.constant 0 : index
    %c0_12 = arith.constant 0 : index
    %c9 = arith.constant 9 : index
    %c0_13 = arith.constant 0 : index
    %11 = vector.load %arg2[%c0_11, %c0_12, %c9, %c0_13] : memref<1x1x208x8xbf16, #tpu.memory_space<vmem>>, vector<1x1x144x8xbf16>
    %12 = vector.shape_cast %11 : vector<1x1x144x8xbf16> to vector<144x8xbf16>
    %c2 = arith.constant 2 : index
    %c0_14 = arith.constant 0 : index
    %c0_15 = arith.constant 0 : index
    %13 = vector.load %arg3[%c2, %c0_14, %c0_15] : memref<9x8x32xbf16, #tpu.memory_space<vmem>>, vector<1x8x32xbf16>
    %14 = vector.shape_cast %13 : vector<1x8x32xbf16> to vector<8x32xbf16>
    %cst_16 = arith.constant dense<0.000000e+00> : vector<144x32xf32>
    %15 = tpu.matmul %12, %14, %cst_16 {dimension_numbers = #tpu.dot_dimension_numbers<[1], [0], [0], [1], [0, 0, 1, 1], [], []>} : vector<144x8xbf16>, vector<8x32xbf16>, vector<144x32xf32> -> vector<144x32xf32>
    %16 = arith.addf %10, %15 : vector<144x32xf32>
    %c0_17 = arith.constant 0 : index
    %c0_18 = arith.constant 0 : index
    %c31 = arith.constant 31 : index
    %c0_19 = arith.constant 0 : index
    %17 = vector.load %arg2[%c0_17, %c0_18, %c31, %c0_19] : memref<1x1x208x8xbf16, #tpu.memory_space<vmem>>, vector<1x1x144x8xbf16>
    %18 = vector.shape_cast %17 : vector<1x1x144x8xbf16> to vector<144x8xbf16>
    %c3 = arith.constant 3 : index
    %c0_20 = arith.constant 0 : index
    %c0_21 = arith.constant 0 : index
    %19 = vector.load %arg3[%c3, %c0_20, %c0_21] : memref<9x8x32xbf16, #tpu.memory_space<vmem>>, vector<1x8x32xbf16>
    %20 = vector.shape_cast %19 : vector<1x8x32xbf16> to vector<8x32xbf16>
    %cst_22 = arith.constant dense<0.000000e+00> : vector<144x32xf32>
    %21 = tpu.matmul %18, %20, %cst_22 {dimension_numbers = #tpu.dot_dimension_numbers<[1], [0], [0], [1], [0, 0, 1, 1], [], []>} : vector<144x8xbf16>, vector<8x32xbf16>, vector<144x32xf32> -> vector<144x32xf32>
    %22 = arith.addf %16, %21 : vector<144x32xf32>
    %c0_23 = arith.constant 0 : index
    %c0_24 = arith.constant 0 : index
    %c32 = arith.constant 32 : index
    %c0_25 = arith.constant 0 : index
    %23 = vector.load %arg2[%c0_23, %c0_24, %c32, %c0_25] : memref<1x1x208x8xbf16, #tpu.memory_space<vmem>>, vector<1x1x144x8xbf16>
    %24 = vector.shape_cast %23 : vector<1x1x144x8xbf16> to vector<144x8xbf16>
    %c4 = arith.constant 4 : index
    %c0_26 = arith.constant 0 : index
    %c0_27 = arith.constant 0 : index
    %25 = vector.load %arg3[%c4, %c0_26, %c0_27] : memref<9x8x32xbf16, #tpu.memory_space<vmem>>, vector<1x8x32xbf16>
    %26 = vector.shape_cast %25 : vector<1x8x32xbf16> to vector<8x32xbf16>
    %cst_28 = arith.constant dense<0.000000e+00> : vector<144x32xf32>
    %27 = tpu.matmul %24, %26, %cst_28 {dimension_numbers = #tpu.dot_dimension_numbers<[1], [0], [0], [1], [0, 0, 1, 1], [], []>} : vector<144x8xbf16>, vector<8x32xbf16>, vector<144x32xf32> -> vector<144x32xf32>
    %28 = arith.addf %22, %27 : vector<144x32xf32>
    %c0_29 = arith.constant 0 : index
    %c0_30 = arith.constant 0 : index
    %c33 = arith.constant 33 : index
    %c0_31 = arith.constant 0 : index
    %29 = vector.load %arg2[%c0_29, %c0_30, %c33, %c0_31] : memref<1x1x208x8xbf16, #tpu.memory_space<vmem>>, vector<1x1x144x8xbf16>
    %30 = vector.shape_cast %29 : vector<1x1x144x8xbf16> to vector<144x8xbf16>
    %c5 = arith.constant 5 : index
    %c0_32 = arith.constant 0 : index
    %c0_33 = arith.constant 0 : index
    %31 = vector.load %arg3[%c5, %c0_32, %c0_33] : memref<9x8x32xbf16, #tpu.memory_space<vmem>>, vector<1x8x32xbf16>
    %32 = vector.shape_cast %31 : vector<1x8x32xbf16> to vector<8x32xbf16>
    %cst_34 = arith.constant dense<0.000000e+00> : vector<144x32xf32>
    %33 = tpu.matmul %30, %32, %cst_34 {dimension_numbers = #tpu.dot_dimension_numbers<[1], [0], [0], [1], [0, 0, 1, 1], [], []>} : vector<144x8xbf16>, vector<8x32xbf16>, vector<144x32xf32> -> vector<144x32xf32>
    %34 = arith.addf %28, %33 : vector<144x32xf32>
    %c0_35 = arith.constant 0 : index
    %c0_36 = arith.constant 0 : index
    %c55 = arith.constant 55 : index
    %c0_37 = arith.constant 0 : index
    %35 = vector.load %arg2[%c0_35, %c0_36, %c55, %c0_37] : memref<1x1x208x8xbf16, #tpu.memory_space<vmem>>, vector<1x1x144x8xbf16>
    %36 = vector.shape_cast %35 : vector<1x1x144x8xbf16> to vector<144x8xbf16>
    %c6 = arith.constant 6 : index
    %c0_38 = arith.constant 0 : index
    %c0_39 = arith.constant 0 : index
    %37 = vector.load %arg3[%c6, %c0_38, %c0_39] : memref<9x8x32xbf16, #tpu.memory_space<vmem>>, vector<1x8x32xbf16>
    %38 = vector.shape_cast %37 : vector<1x8x32xbf16> to vector<8x32xbf16>
    %cst_40 = arith.constant dense<0.000000e+00> : vector<144x32xf32>
    %39 = tpu.matmul %36, %38, %cst_40 {dimension_numbers = #tpu.dot_dimension_numbers<[1], [0], [0], [1], [0, 0, 1, 1], [], []>} : vector<144x8xbf16>, vector<8x32xbf16>, vector<144x32xf32> -> vector<144x32xf32>
    %40 = arith.addf %34, %39 : vector<144x32xf32>
    %c0_41 = arith.constant 0 : index
    %c0_42 = arith.constant 0 : index
    %c56 = arith.constant 56 : index
    %c0_43 = arith.constant 0 : index
    %41 = vector.load %arg2[%c0_41, %c0_42, %c56, %c0_43] : memref<1x1x208x8xbf16, #tpu.memory_space<vmem>>, vector<1x1x144x8xbf16>
    %42 = vector.shape_cast %41 : vector<1x1x144x8xbf16> to vector<144x8xbf16>
    %c7_44 = arith.constant 7 : index
    %c0_45 = arith.constant 0 : index
    %c0_46 = arith.constant 0 : index
    %43 = vector.load %arg3[%c7_44, %c0_45, %c0_46] : memref<9x8x32xbf16, #tpu.memory_space<vmem>>, vector<1x8x32xbf16>
    %44 = vector.shape_cast %43 : vector<1x8x32xbf16> to vector<8x32xbf16>
    %cst_47 = arith.constant dense<0.000000e+00> : vector<144x32xf32>
    %45 = tpu.matmul %42, %44, %cst_47 {dimension_numbers = #tpu.dot_dimension_numbers<[1], [0], [0], [1], [0, 0, 1, 1], [], []>} : vector<144x8xbf16>, vector<8x32xbf16>, vector<144x32xf32> -> vector<144x32xf32>
    %46 = arith.addf %40, %45 : vector<144x32xf32>
    %c0_48 = arith.constant 0 : index
    %c0_49 = arith.constant 0 : index
    %c57 = arith.constant 57 : index
    %c0_50 = arith.constant 0 : index
    %47 = vector.load %arg2[%c0_48, %c0_49, %c57, %c0_50] : memref<1x1x208x8xbf16, #tpu.memory_space<vmem>>, vector<1x1x144x8xbf16>
    %48 = vector.shape_cast %47 : vector<1x1x144x8xbf16> to vector<144x8xbf16>
    %c8_51 = arith.constant 8 : index
    %c0_52 = arith.constant 0 : index
    %c0_53 = arith.constant 0 : index
    %49 = vector.load %arg3[%c8_51, %c0_52, %c0_53] : memref<9x8x32xbf16, #tpu.memory_space<vmem>>, vector<1x8x32xbf16>
    %50 = vector.shape_cast %49 : vector<1x8x32xbf16> to vector<8x32xbf16>
    %cst_54 = arith.constant dense<0.000000e+00> : vector<144x32xf32>
    %51 = tpu.matmul %48, %50, %cst_54 {dimension_numbers = #tpu.dot_dimension_numbers<[1], [0], [0], [1], [0, 0, 1, 1], [], []>} : vector<144x8xbf16>, vector<8x32xbf16>, vector<144x32xf32> -> vector<144x32xf32>
    %52 = arith.addf %46, %51 : vector<144x32xf32>
    %c0_55 = arith.constant 0 : index
    %c0_56 = arith.constant 0 : index
    %53 = vector.load %arg4[%c0_55, %c0_56] : memref<1x32xf32, #tpu.memory_space<vmem>>, vector<1x32xf32>
    %54 = vector.broadcast %53 : vector<1x32xf32> to vector<144x32xf32>
    %55 = arith.addf %52, %54 : vector<144x32xf32>
    %cst_57 = arith.constant 0.000000e+00 : f32
    %56 = vector.broadcast %cst_57 : f32 to vector<144x32xf32>
    %57 = arith.maximumf %55, %56 : vector<144x32xf32>
    %58 = tpu.iota {dimensions = array<i32: 0>} : vector<144x1xi32>
    %c24_i32 = arith.constant 24 : i32
    %c0_i32 = arith.constant 0 : i32
    %59 = arith.cmpi eq, %c24_i32, %c0_i32 : i32
    %c1_i32 = arith.constant 1 : i32
    %60 = arith.select %59, %c1_i32, %c24_i32 : i32
    %61 = vector.broadcast %60 : i32 to vector<144x1xi32>
    %62 = arith.remsi %58, %61 : vector<144x1xi32>
    %c0_i32_58 = arith.constant 0 : i32
    %63 = vector.broadcast %c0_i32_58 : i32 to vector<144x1xi32>
    %64 = arith.cmpi ne, %62, %63 : vector<144x1xi32>
    %c0_i32_59 = arith.constant 0 : i32
    %65 = vector.broadcast %c0_i32_59 : i32 to vector<144x1xi32>
    %66 = arith.cmpi slt, %62, %65 : vector<144x1xi32>
    %c0_i32_60 = arith.constant 0 : i32
    %67 = arith.cmpi slt, %60, %c0_i32_60 : i32
    %68 = vector.broadcast %67 : i1 to vector<144x1xi1>
    %69 = vector.broadcast %68 : vector<144x1xi1> to vector<144x1xi1>
    %70 = arith.xori %66, %69 : vector<144x1xi1>
    %71 = arith.andi %70, %64 : vector<144x1xi1>
    %72 = vector.broadcast %60 : i32 to vector<144x1xi32>
    %73 = arith.addi %62, %72 : vector<144x1xi32>
    %74 = arith.select %71, %73, %62 : vector<144x1xi1>, vector<144x1xi32>
    %c1_i32_61 = arith.constant 1 : i32
    %75 = vector.broadcast %c1_i32_61 : i32 to vector<144x1xi32>
    %76 = arith.cmpi sge, %74, %75 : vector<144x1xi32>
    %c16_i32 = arith.constant 16 : i32
    %77 = vector.broadcast %c16_i32 : i32 to vector<144x1xi32>
    %78 = arith.cmpi sle, %74, %77 : vector<144x1xi32>
    %79 = arith.andi %76, %78 : vector<144x1xi1>
    %cst_62 = arith.constant 0.000000e+00 : f32
    %80 = vector.shape_cast %79 : vector<144x1xi1> to vector<144x1xi1>
    %81 = vector.broadcast %80 : vector<144x1xi1> to vector<144x32xi1>
    %82 = vector.broadcast %cst_62 : f32 to vector<144x32xf32>
    %83 = arith.select %81, %57, %82 : vector<144x32xi1>, vector<144x32xf32>
    %84 = arith.truncf %83 : vector<144x32xf32> to vector<144x32xbf16>
    %c8_63 = arith.constant 8 : index
    %c0_64 = arith.constant 0 : index
    %85 = vector.load %arg8[%c8_63, %c0_64] : memref<160x32xbf16, #tpu.memory_space<vmem>>, vector<144x32xbf16>
    tpu.vector_store %arg8[%c8_63, %c0_64], %84 {strides = array<i32>} : memref<160x32xbf16, #tpu.memory_space<vmem>>, vector<144x32xbf16>,
    %c0_i32_65 = arith.constant 0 : i32
    %86 = arith.cmpi eq, %arg1, %c0_i32_65 : i32
    %87 = arith.extui %86 : i1 to i32
    %c0_i32_66 = arith.constant 0 : i32
    %88 = arith.cmpi ne, %87, %c0_i32_66 : i32
    scf.if %88 {
      %cst_135 = arith.constant 0.000000e+00 : bf16
      %157 = vector.broadcast %cst_135 : bf16 to vector<24x32xbf16>
      %c8_136 = arith.constant 8 : index
      %c0_137 = arith.constant 0 : index
      %158 = vector.load %arg8[%c8_136, %c0_137] : memref<160x32xbf16, #tpu.memory_space<vmem>>, vector<24x32xbf16>
      tpu.vector_store %arg8[%c8_136, %c0_137], %157 {strides = array<i32>} : memref<160x32xbf16, #tpu.memory_space<vmem>>, vector<24x32xbf16>,
    } else {
    }
    %c3_i32 = arith.constant 3 : i32
    %89 = arith.cmpi eq, %arg1, %c3_i32 : i32
    %90 = arith.extui %89 : i1 to i32
    %c0_i32_67 = arith.constant 0 : i32
    %91 = arith.cmpi ne, %90, %c0_i32_67 : i32
    scf.if %91 {
      %cst_135 = arith.constant 0.000000e+00 : bf16
      %157 = vector.broadcast %cst_135 : bf16 to vector<24x32xbf16>
      %c128 = arith.constant 128 : index
      %c0_136 = arith.constant 0 : index
      %158 = vector.load %arg8[%c128, %c0_136] : memref<160x32xbf16, #tpu.memory_space<vmem>>, vector<24x32xbf16>
      tpu.vector_store %arg8[%c128, %c0_136], %157 {strides = array<i32>} : memref<160x32xbf16, #tpu.memory_space<vmem>>, vector<24x32xbf16>,
    } else {
    }
    %c7_68 = arith.constant 7 : index
    %c0_69 = arith.constant 0 : index
    %92 = vector.load %arg8[%c7_68, %c0_69] : memref<160x32xbf16, #tpu.memory_space<vmem>>, vector<96x32xbf16>
    %c0_70 = arith.constant 0 : index
    %c0_71 = arith.constant 0 : index
    %c0_72 = arith.constant 0 : index
    %93 = vector.load %arg5[%c0_70, %c0_71, %c0_72] : memref<9x32x32xbf16, #tpu.memory_space<vmem>>, vector<1x32x32xbf16>
    %94 = vector.shape_cast %93 : vector<1x32x32xbf16> to vector<32x32xbf16>
    %cst_73 = arith.constant dense<0.000000e+00> : vector<96x32xf32>
    %95 = tpu.matmul %92, %94, %cst_73 {dimension_numbers = #tpu.dot_dimension_numbers<[1], [0], [0], [1], [0, 0, 1, 1], [], []>} : vector<96x32xbf16>, vector<32x32xbf16>, vector<96x32xf32> -> vector<96x32xf32>
    %c8_74 = arith.constant 8 : index
    %c0_75 = arith.constant 0 : index
    %96 = vector.load %arg8[%c8_74, %c0_75] : memref<160x32xbf16, #tpu.memory_space<vmem>>, vector<96x32xbf16>
    %c1_76 = arith.constant 1 : index
    %c0_77 = arith.constant 0 : index
    %c0_78 = arith.constant 0 : index
    %97 = vector.load %arg5[%c1_76, %c0_77, %c0_78] : memref<9x32x32xbf16, #tpu.memory_space<vmem>>, vector<1x32x32xbf16>
    %98 = vector.shape_cast %97 : vector<1x32x32xbf16> to vector<32x32xbf16>
    %cst_79 = arith.constant dense<0.000000e+00> : vector<96x32xf32>
    %99 = tpu.matmul %96, %98, %cst_79 {dimension_numbers = #tpu.dot_dimension_numbers<[1], [0], [0], [1], [0, 0, 1, 1], [], []>} : vector<96x32xbf16>, vector<32x32xbf16>, vector<96x32xf32> -> vector<96x32xf32>
    %100 = arith.addf %95, %99 : vector<96x32xf32>
    %c9_80 = arith.constant 9 : index
    %c0_81 = arith.constant 0 : index
    %101 = vector.load %arg8[%c9_80, %c0_81] : memref<160x32xbf16, #tpu.memory_space<vmem>>, vector<96x32xbf16>
    %c2_82 = arith.constant 2 : index
    %c0_83 = arith.constant 0 : index
    %c0_84 = arith.constant 0 : index
    %102 = vector.load %arg5[%c2_82, %c0_83, %c0_84] : memref<9x32x32xbf16, #tpu.memory_space<vmem>>, vector<1x32x32xbf16>
    %103 = vector.shape_cast %102 : vector<1x32x32xbf16> to vector<32x32xbf16>
    %cst_85 = arith.constant dense<0.000000e+00> : vector<96x32xf32>
    %104 = tpu.matmul %101, %103, %cst_85 {dimension_numbers = #tpu.dot_dimension_numbers<[1], [0], [0], [1], [0, 0, 1, 1], [], []>} : vector<96x32xbf16>, vector<32x32xbf16>, vector<96x32xf32> -> vector<96x32xf32>
    %105 = arith.addf %100, %104 : vector<96x32xf32>
    %c31_86 = arith.constant 31 : index
    %c0_87 = arith.constant 0 : index
    %106 = vector.load %arg8[%c31_86, %c0_87] : memref<160x32xbf16, #tpu.memory_space<vmem>>, vector<96x32xbf16>
    %c3_88 = arith.constant 3 : index
    %c0_89 = arith.constant 0 : index
    %c0_90 = arith.constant 0 : index
    %107 = vector.load %arg5[%c3_88, %c0_89, %c0_90] : memref<9x32x32xbf16, #tpu.memory_space<vmem>>, vector<1x32x32xbf16>
    %108 = vector.shape_cast %107 : vector<1x32x32xbf16> to vector<32x32xbf16>
    %cst_91 = arith.constant dense<0.000000e+00> : vector<96x32xf32>
    %109 = tpu.matmul %106, %108, %cst_91 {dimension_numbers = #tpu.dot_dimension_numbers<[1], [0], [0], [1], [0, 0, 1, 1], [], []>} : vector<96x32xbf16>, vector<32x32xbf16>, vector<96x32xf32> -> vector<96x32xf32>
    %110 = arith.addf %105, %109 : vector<96x32xf32>
    %c32_92 = arith.constant 32 : index
    %c0_93 = arith.constant 0 : index
    %111 = vector.load %arg8[%c32_92, %c0_93] : memref<160x32xbf16, #tpu.memory_space<vmem>>, vector<96x32xbf16>
    %c4_94 = arith.constant 4 : index
    %c0_95 = arith.constant 0 : index
    %c0_96 = arith.constant 0 : index
    %112 = vector.load %arg5[%c4_94, %c0_95, %c0_96] : memref<9x32x32xbf16, #tpu.memory_space<vmem>>, vector<1x32x32xbf16>
    %113 = vector.shape_cast %112 : vector<1x32x32xbf16> to vector<32x32xbf16>
    %cst_97 = arith.constant dense<0.000000e+00> : vector<96x32xf32>
    %114 = tpu.matmul %111, %113, %cst_97 {dimension_numbers = #tpu.dot_dimension_numbers<[1], [0], [0], [1], [0, 0, 1, 1], [], []>} : vector<96x32xbf16>, vector<32x32xbf16>, vector<96x32xf32> -> vector<96x32xf32>
    %115 = arith.addf %110, %114 : vector<96x32xf32>
    %c33_98 = arith.constant 33 : index
    %c0_99 = arith.constant 0 : index
    %116 = vector.load %arg8[%c33_98, %c0_99] : memref<160x32xbf16, #tpu.memory_space<vmem>>, vector<96x32xbf16>
    %c5_100 = arith.constant 5 : index
    %c0_101 = arith.constant 0 : index
    %c0_102 = arith.constant 0 : index
    %117 = vector.load %arg5[%c5_100, %c0_101, %c0_102] : memref<9x32x32xbf16, #tpu.memory_space<vmem>>, vector<1x32x32xbf16>
    %118 = vector.shape_cast %117 : vector<1x32x32xbf16> to vector<32x32xbf16>
    %cst_103 = arith.constant dense<0.000000e+00> : vector<96x32xf32>
    %119 = tpu.matmul %116, %118, %cst_103 {dimension_numbers = #tpu.dot_dimension_numbers<[1], [0], [0], [1], [0, 0, 1, 1], [], []>} : vector<96x32xbf16>, vector<32x32xbf16>, vector<96x32xf32> -> vector<96x32xf32>
    %120 = arith.addf %115, %119 : vector<96x32xf32>
    %c55_104 = arith.constant 55 : index
    %c0_105 = arith.constant 0 : index
    %121 = vector.load %arg8[%c55_104, %c0_105] : memref<160x32xbf16, #tpu.memory_space<vmem>>, vector<96x32xbf16>
    %c6_106 = arith.constant 6 : index
    %c0_107 = arith.constant 0 : index
    %c0_108 = arith.constant 0 : index
    %122 = vector.load %arg5[%c6_106, %c0_107, %c0_108] : memref<9x32x32xbf16, #tpu.memory_space<vmem>>, vector<1x32x32xbf16>
    %123 = vector.shape_cast %122 : vector<1x32x32xbf16> to vector<32x32xbf16>
    %cst_109 = arith.constant dense<0.000000e+00> : vector<96x32xf32>
    %124 = tpu.matmul %121, %123, %cst_109 {dimension_numbers = #tpu.dot_dimension_numbers<[1], [0], [0], [1], [0, 0, 1, 1], [], []>} : vector<96x32xbf16>, vector<32x32xbf16>, vector<96x32xf32> -> vector<96x32xf32>
    %125 = arith.addf %120, %124 : vector<96x32xf32>
    %c56_110 = arith.constant 56 : index
    %c0_111 = arith.constant 0 : index
    %126 = vector.load %arg8[%c56_110, %c0_111] : memref<160x32xbf16, #tpu.memory_space<vmem>>, vector<96x32xbf16>
    %c7_112 = arith.constant 7 : index
    %c0_113 = arith.constant 0 : index
    %c0_114 = arith.constant 0 : index
    %127 = vector.load %arg5[%c7_112, %c0_113, %c0_114] : memref<9x32x32xbf16, #tpu.memory_space<vmem>>, vector<1x32x32xbf16>
    %128 = vector.shape_cast %127 : vector<1x32x32xbf16> to vector<32x32xbf16>
    %cst_115 = arith.constant dense<0.000000e+00> : vector<96x32xf32>
    %129 = tpu.matmul %126, %128, %cst_115 {dimension_numbers = #tpu.dot_dimension_numbers<[1], [0], [0], [1], [0, 0, 1, 1], [], []>} : vector<96x32xbf16>, vector<32x32xbf16>, vector<96x32xf32> -> vector<96x32xf32>
    %130 = arith.addf %125, %129 : vector<96x32xf32>
    %c57_116 = arith.constant 57 : index
    %c0_117 = arith.constant 0 : index
    %131 = vector.load %arg8[%c57_116, %c0_117] : memref<160x32xbf16, #tpu.memory_space<vmem>>, vector<96x32xbf16>
    %c8_118 = arith.constant 8 : index
    %c0_119 = arith.constant 0 : index
    %c0_120 = arith.constant 0 : index
    %132 = vector.load %arg5[%c8_118, %c0_119, %c0_120] : memref<9x32x32xbf16, #tpu.memory_space<vmem>>, vector<1x32x32xbf16>
    %133 = vector.shape_cast %132 : vector<1x32x32xbf16> to vector<32x32xbf16>
    %cst_121 = arith.constant dense<0.000000e+00> : vector<96x32xf32>
    %134 = tpu.matmul %131, %133, %cst_121 {dimension_numbers = #tpu.dot_dimension_numbers<[1], [0], [0], [1], [0, 0, 1, 1], [], []>} : vector<96x32xbf16>, vector<32x32xbf16>, vector<96x32xf32> -> vector<96x32xf32>
    %135 = arith.addf %130, %134 : vector<96x32xf32>
    %c0_122 = arith.constant 0 : index
    %c0_123 = arith.constant 0 : index
    %136 = vector.load %arg6[%c0_122, %c0_123] : memref<1x32xf32, #tpu.memory_space<vmem>>, vector<1x32xf32>
    %137 = vector.broadcast %136 : vector<1x32xf32> to vector<96x32xf32>
    %138 = arith.addf %135, %137 : vector<96x32xf32>
    %cst_124 = arith.constant 0.000000e+00 : f32
    %139 = vector.broadcast %cst_124 : f32 to vector<96x32xf32>
    %140 = arith.maximumf %138, %139 : vector<96x32xf32>
    %141 = vector.extract_strided_slice %140 {offsets = [1, 0], sizes = [16, 32], strides = [1, 1]} : vector<96x32xf32> to vector<16x32xf32>
    %c0_125 = arith.constant 0 : index
    %c0_126 = arith.constant 0 : index
    %c0_127 = arith.constant 0 : index
    %142 = vector.load %arg7[%c0_125, %c0_126, %c0_127] : memref<1x64x32xf32, #tpu.memory_space<vmem>>, vector<1x16x32xf32>
    %143 = vector.shape_cast %142 : vector<1x16x32xf32> to vector<16x32xf32>
    %144 = vector.shape_cast %141 : vector<16x32xf32> to vector<1x16x32xf32>
    tpu.vector_store %arg7[%c0_125, %c0_126, %c0_127], %144 {strides = array<i32>} : memref<1x64x32xf32, #tpu.memory_space<vmem>>, vector<1x16x32xf32>,
    %145 = vector.extract_strided_slice %140 {offsets = [25, 0], sizes = [16, 32], strides = [1, 1]} : vector<96x32xf32> to vector<16x32xf32>
    %c0_128 = arith.constant 0 : index
    %c16 = arith.constant 16 : index
    %c0_129 = arith.constant 0 : index
    %146 = vector.load %arg7[%c0_128, %c16, %c0_129] : memref<1x64x32xf32, #tpu.memory_space<vmem>>, vector<1x16x32xf32>
    %147 = vector.shape_cast %146 : vector<1x16x32xf32> to vector<16x32xf32>
    %148 = vector.shape_cast %145 : vector<16x32xf32> to vector<1x16x32xf32>
    tpu.vector_store %arg7[%c0_128, %c16, %c0_129], %148 {strides = array<i32>} : memref<1x64x32xf32, #tpu.memory_space<vmem>>, vector<1x16x32xf32>,
    %149 = vector.extract_strided_slice %140 {offsets = [49, 0], sizes = [16, 32], strides = [1, 1]} : vector<96x32xf32> to vector<16x32xf32>
    %c0_130 = arith.constant 0 : index
    %c32_131 = arith.constant 32 : index
    %c0_132 = arith.constant 0 : index
    %150 = vector.load %arg7[%c0_130, %c32_131, %c0_132] : memref<1x64x32xf32, #tpu.memory_space<vmem>>, vector<1x16x32xf32>
    %151 = vector.shape_cast %150 : vector<1x16x32xf32> to vector<16x32xf32>
    %152 = vector.shape_cast %149 : vector<16x32xf32> to vector<1x16x32xf32>
    tpu.vector_store %arg7[%c0_130, %c32_131, %c0_132], %152 {strides = array<i32>} : memref<1x64x32xf32, #tpu.memory_space<vmem>>, vector<1x16x32xf32>,
    %153 = vector.extract_strided_slice %140 {offsets = [73, 0], sizes = [16, 32], strides = [1, 1]} : vector<96x32xf32> to vector<16x32xf32>
    %c0_133 = arith.constant 0 : index
    %c48 = arith.constant 48 : index
    %c0_134 = arith.constant 0 : index
    %154 = vector.load %arg7[%c0_133, %c48, %c0_134] : memref<1x64x32xf32, #tpu.memory_space<vmem>>, vector<1x16x32xf32>
    %155 = vector.shape_cast %154 : vector<1x16x32xf32> to vector<16x32xf32>
    %156 = vector.shape_cast %153 : vector<16x32xf32> to vector<1x16x32xf32>
    tpu.vector_store %arg7[%c0_133, %c48, %c0_134], %156 {strides = array<i32>} : memref<1x64x32xf32, #tpu.memory_space<vmem>>, vector<1x16x32xf32>,
    return
  }
  func.func @transform_0(%arg0: i32, %arg1: i32) -> (i32, i32, i32, i32) {
    %c0_i32 = arith.constant 0 : i32
    %c0_i32_0 = arith.constant 0 : i32
    %c0_i32_1 = arith.constant 0 : i32
    return %arg0, %arg1, %c0_i32, %c0_i32_0 : i32, i32, i32, i32
  }
  func.func @transform_1(%arg0: i32, %arg1: i32) -> (i32, i32, i32) {
    %c0_i32 = arith.constant 0 : i32
    %c0_i32_0 = arith.constant 0 : i32
    %c0_i32_1 = arith.constant 0 : i32
    %c0_i32_2 = arith.constant 0 : i32
    return %c0_i32, %c0_i32_0, %c0_i32_1 : i32, i32, i32
  }
  func.func @transform_2(%arg0: i32, %arg1: i32) -> (i32, i32) {
    %c0_i32 = arith.constant 0 : i32
    %c0_i32_0 = arith.constant 0 : i32
    %c0_i32_1 = arith.constant 0 : i32
    return %c0_i32, %c0_i32_0 : i32, i32
  }
  func.func @transform_3(%arg0: i32, %arg1: i32) -> (i32, i32, i32) {
    %c0_i32 = arith.constant 0 : i32
    %c0_i32_0 = arith.constant 0 : i32
    %c0_i32_1 = arith.constant 0 : i32
    %c0_i32_2 = arith.constant 0 : i32
    return %c0_i32, %c0_i32_0, %c0_i32_1 : i32, i32, i32
  }
  func.func @transform_4(%arg0: i32, %arg1: i32) -> (i32, i32) {
    %c0_i32 = arith.constant 0 : i32
    %c0_i32_0 = arith.constant 0 : i32
    %c0_i32_1 = arith.constant 0 : i32
    return %c0_i32, %c0_i32_0 : i32, i32
  }
  func.func @transform_5(%arg0: i32, %arg1: i32) -> (i32, i32, i32) {
    %c0_i32 = arith.constant 0 : i32
    %c0_i32_0 = arith.constant 0 : i32
    return %arg0, %arg1, %c0_i32 : i32, i32, i32
  }
}

</mosaic_0001>

<bundles_post_ra>
// kernel: conv_head_forward.1
= control target key start
LH: loop header
LB: loop body
LE: loop exit
PB: predicated region body
PF: predicated region fallthrough
CT: control target
= control target key end

     0   :  { %s6013_s18 = smov 0   ;;  %s6015_s19 = smov 0   ;;  %s7911_s0 = inlined_call_operand.vmem [shape: bf16[2,4,208,8], index: 0, kind: input, shape index: {}]   ;;  %s7912_s1 = inlined_call_operand.vmem [shape: bf16[9,8,32], index: 1, kind: input, shape index: {}]   ;;  %s7913_s2 = inlined_call_operand.vmem [shape: f32[1,32], index: 2, kind: input, shape index: {}]   ;;  %s7914_s3 = inlined_call_operand.vmem [shape: bf16[9,32,32], index: 3, kind: input, shape index: {}]   ;;  %s7915_s4 = inlined_call_operand.vmem [shape: f32[1,32], index: 4, kind: input, shape index: {}]   ;;  %s7916_s5 = inlined_call_operand.vmem [shape: f32[2,256,32], index: 5, kind: output, shape index: {}]  }
   0x1   :  { %s6017_s20 = smov 0   ;;  %s6019_s21 = smov 0  }
   0x2   :  { %s6021_s22 = smov 0  }
   0x3 LB: > { %s24_s23 = sadd.s32 1, %s5969_s20  ;;  %s27_s24 = sadd.s32 1, %s5973_s21  ;;  %s5977_s22 = sphi %s6021_s22, %s15_s22   ;;  %s5973_s21 = sphi %s6019_s21, %s7971_s21   ;;  %s5969_s20 = sphi %s6017_s20, %s7970_s20   ;;  %s5965_s19 = sphi %s6015_s19, %s7969_s19   ;;  %s5961_s18 = sphi %s6013_s18, %s7968_s18  }
   0x4   : > { %p25_p0 = scmp.ge.s32.totalorder %s24_s23, 4  ;;  %p4717_p1 = scmp.ge.s32.totalorder %s5977_s22, 1 }
   0x5   : > { %p207_p2 = scmp.lt.s32.totalorder %s5977_s22, 9 }
   0x6   : > { %s7973_s23 = smov (%p25_p0, %s24_s23), 0  ;;  %s7975_s24 = smov (!%p25_p0, %s27_s24), %s5973_s21 }
   0x7   : > { %p208_p3 = pnand %p4717_p1, %p207_p2  ;;  %p29_p4 = scmp.ge.s32.totalorder %s7975_s24, 2 }
   0x9   : > { %s7977_s24 = smov (%p29_p4, %s7975_s24), 0  ;;  %211 = sbr.rel (%p208_p3) target bundleno = 1126 (0x466), region = 40 }
  0x10   : > { %v4722_v0 = vld [vmem:[%s7912_s1 + $0x4] sm:$0xf]  ;;  %vm358_vm0 = vcmask 1043456   ;;  %p243_p5 = scmp.lt.s32.totalorder %s5965_s19, 1  ;;  %v7917_v1 = vmov 0.0   ;;  %vm5980_vm1 = vmmov 0  }
  0x11   : > { %5170 = vmatprep.subr.bf16.mxu0 %v7917_v1  ;;  %v360_v2 = vsel %vm358_vm0, %v4722_v0, 0  ;;  %5172 = vmatprep.mubr.msk.bf16.mxu0 %vm5980_vm1, %v7917_v1  ;;  %p245_p6 = scmp.lt.s32.totalorder %s5961_s18, 3  ;;  %s4719_s27 = sshll.u32 %s5961_s18, 3  ;;  %v282_v3 = vld [vmem:[%s7912_s1] sm:$0xf]  ;;  %vm330_vm2 = vcmask 64512  }
  0x12   : > { %5171 = vmatpush3.bf16.msra.mxu0 %v360_v2  ;;  %s7979_s19 = smov (!%p243_p5, %s5965_s19), 1  ;;  %5284 = vmatprep.subr.bf16.mxu1 %v7917_v1  ;;  %p255_p7 = scmp.lt.s32.totalorder %s4719_s27, 31  ;;  %v597_v9 = vsel %vm358_vm0, %v282_v3, 0  ;;  %vm479_vm3 = vsmask.f32 4352 }
  0x13   : > { %5208 = vmatprep.subr.bf16.mxu0 %v7917_v1  ;;  %s246_s28 = scalar_select %p245_p6, %s5961_s18, 3  ;;  %5286 = vmatprep.mubr.msk.bf16.mxu1 %vm5980_vm1, %v7917_v1  ;;  %vm7918_vm4 = vsmask.f32 7424 }
  0x14   : > { %s5753_s29 = smul.u32 104, %s7979_s19  ;;  %s4720_s6 = sshll.u32 %s7979_s19, 5 }
  0x15   : > { %s5752_s30 = smul.u32 26, %s246_s28  ;;  %s7981_s27 = smov (!%p255_p7, %s4719_s27), 31 }
  0x16   : > { %s258_s9 = sadd.s32 %s4720_s6, %s7981_s27  ;;  %p4899_p8 = scmp.ne.s32.totalorder %s5961_s18, 0 }
  0x17   : > { %s249_s7 = sadd.s32 %s5753_s29, %s5752_s30  ;;  %s4721_s15 = sshll.u32 %s258_s9, 3 }
  0x18   : > { %s4718_s8 = sshll.u32 %s249_s7, 2  ;;  %s6070_s19 = scalar_lea.vmem %s7916_s5, %s4721_s15 }
  0x19   : > { %s6065_s14 = scalar_lea.vmem %s7911_s0, %s4718_s8 }
  0x1a   : > { %v263_v4 = vld [vmem:[%s6065_s14] sm:$0x8]  ;;  %v264_v5 = vld [vmem:[%s6065_s14 + $0x4] sm:$0xf]  ;;  %v265_v6 = vld [vmem:[%s6065_s14 + $0x8] sm:$0xf] }
  0x1b   : > { %v4723_v7 = vcombine.low %v264_v5, %v265_v6  ;;  %v4741_v8 = vcombine.low %v263_v4, %v264_v5  ;;  %v266_v10 = vld [vmem:[%s6065_s14 + $0xc] sm:$0xf]  ;;  %v267_v11 = vld [vmem:[%s6065_s14 + $0x10] sm:$0xf]  ;;  %v6079_v13 = vld [vmem:[%s6065_s14 + $0x14] sm:$0xf] }
  0x1c   : > { %v4742_v12 = vcombine.low %v265_v6, %v266_v10  ;;  %v6082_v14 = vld [vmem:[%s6065_s14 + $0x18] sm:$0xf]  ;;  %v6085_v15 = vld [vmem:[%s6065_s14 + $0x1c] sm:$0xf]  ;;  %v6089_v18 = vld [vmem:[%s6065_s14 + $0x20] sm:$0xf]  ;;  %v4743_v27 = vcombine.low %v267_v11, %v6079_v13  ;;  %v4724_v37 = vcombine.low %v266_v10, %v267_v11 }
  0x1d   : > { %5173 = vmatmul.mubr.msk.bf16.vlgmr.msra.gmra.mrb[0].mxu0 %vm330_vm2, %v4723_v7  ;;  %v481_v16 = vshrl.u32 %v4741_v8, 16  ;;  %v484_v17 = vshll.u32 %v4741_v8, 16  ;;  %v6092_v19 = vld [vmem:[%s6065_s14 + $0x24] sm:$0xf]  ;;  %v6095_v20 = vld [vmem:[%s6065_s14 + $0x28] sm:$0xf]  ;;  %v4744_v28 = vcombine.low %v6082_v14, %v6085_v15  ;;  %v4725_v38 = vcombine.low %v6079_v13, %v6082_v14 }
  0x1e   : > { %5209 = vmatpush3.bf16.msra.mxu0 %v597_v9  ;;  %5176 = vmatprep.mubr.msk.bf16.mxu0 %vm5980_vm1, %v7917_v1  ;;  %v489_v21 = vshrl.u32 %v4742_v12, 16  ;;  %v492_v22 = vshll.u32 %v4742_v12, 16  ;;  %v6100_v23 = vld [vmem:[%s6065_s14 + $0x2c] sm:$0xf]  ;;  %v6103_v24 = vld [vmem:[%s6065_s14 + $0x30] sm:$0xf]  ;;  %v4745_v33 = vcombine.low %v6089_v18, %v6092_v19 }
  0x1f   : > { %v483_v25 = vrot.slane %v481_v16, 3  ;;  %v486_v26 = vrot.slane %v484_v17, 4  ;;  %v6109_v29 = vld [vmem:[%s6065_s14 + $0x34] sm:$0xf]  ;;  %v6112_v30 = vld [vmem:[%s6065_s14 + $0x38] sm:$0xf]  ;;  %5246 = vmatprep.subr.bf16.mxu0 %v7917_v1  ;;  %v4746_v34 = vcombine.low %v6095_v20, %v6100_v23 }
  0x20   : > { %v491_v31 = vrot.slane %v489_v21, 3  ;;  %v494_v32 = vrot.slane %v492_v22, 4  ;;  %v6120_v35 = vld [vmem:[%s6065_s14 + $0x3c] sm:$0xf]  ;;  %v6123_v36 = vld [vmem:[%s6065_s14 + $0x40] sm:$0xf]  ;;  %v4747_v39 = vcombine.low %v6103_v24, %v6109_v29 }
  0x21   : > { %v6130_v40 = vld [vmem:[%s6065_s14 + $0x44] sm:$0xf]  ;;  %v6133_v41 = vld [vmem:[%s6065_s14 + $0x48] sm:$0xf]  ;;  %v487_v42 = vor.u32 %v486_v26, %v483_v25  ;;  %v4748_v43 = vcombine.low %v6112_v30, %v6120_v35  ;;  %v498_v47 = vshrl.u32 %v4743_v27, 16  ;;  %v501_v48 = vshll.u32 %v4743_v27, 16 }
  0x22   : > { %v4749_v44 = vcombine.low %v6123_v36, %v6130_v40  ;;  %v4750_v45 = vcombine.low %v6133_v41, %v6133_v41  ;;  %v495_v46 = vor.u32 %v494_v32, %v491_v31  ;;  %v507_v49 = vshrl.u32 %v4744_v28, 16  ;;  %v4780_v12 = vld [vmem:[%s7912_s1 + $0xc] sm:$0xf]  ;;  %v6164_v31 = vld [vmem:[%s6065_s14 + $0x14] sm:$0xf] }
  0x23   : > { %v510_v50 = vshll.u32 %v4744_v28, 16  ;;  %v516_v52 = vshrl.u32 %v4745_v33, 16  ;;  %v519_v53 = vshll.u32 %v4745_v33, 16  ;;  %v525_v54 = vshrl.u32 %v4746_v34, 16  ;;  %v1003_v27 = vld [vmem:[%s6065_s14 + $0xc] sm:$0x8] }
  0x24   : > { %v6142_v51 = vsel %vm479_vm3, %v487_v42, %v495_v46  ;;  %v500_v55 = vrot.slane %v498_v47, 3  ;;  %v503_v56 = vrot.slane %v501_v48, 4  ;;  %v509_v57 = vrot.slane %v507_v49, 3  ;;  %v6161_v28 = vld [vmem:[%s6065_s14 + $0x10] sm:$0xf] }
  0x25   : > { %5177 = vmatmul.mubr.msk.bf16.gmra.mrb[4].mxu0 %vm330_vm2, %v4724_v37  ;;  %v512_v58 = vrot.slane %v510_v50, 4  ;;  %v518_v59 = vrot.slane %v516_v52, 3  ;;  %v521_v60 = vrot.slane %v519_v53, 4  ;;  %v527_v61 = vrot.slane %v525_v54, 3 }
  0x26   : > { %5180 = vmatprep.mubr.msk.bf16.mxu0 %vm5980_vm1, %v7917_v1  ;;  %v528_v62 = vshll.u32 %v4746_v34, 16  ;;  %v504_v63 = vor.u32 %v503_v56, %v500_v55  ;;  %v534_v2 = vshrl.u32 %v4747_v39, 16  ;;  %v537_v3 = vshll.u32 %v4747_v39, 16  ;;  %v6194_v55 = vld [vmem:[%s6065_s14 + $0x1c] sm:$0xf] }
  0x27   : > { %v513_v0 = vor.u32 %v512_v58, %v509_v57  ;;  %v522_v4 = vor.u32 %v521_v60, %v518_v59  ;;  %v543_v6 = vshrl.u32 %v4748_v43, 16  ;;  %v546_v7 = vshll.u32 %v4748_v43, 16  ;;  %v6197_v56 = vld [vmem:[%s6065_s14 + $0x20] sm:$0xf] }
  0x28   : > { %v530_v5 = vrot.slane %v528_v62, 4  ;;  %v6148_v8 = vsel %vm479_vm3, %v495_v46, %v504_v63  ;;  %v536_v10 = vrot.slane %v534_v2, 3  ;;  %v539_v11 = vrot.slane %v537_v3, 4  ;;  %v6175_v46 = vld [vmem:[%s6065_s14 + $0x18] sm:$0xf] }
  0x29   : > { %v6151_v9 = vsel %vm479_vm3, %v504_v63, %v513_v0  ;;  %v6157_v13 = vsel %vm479_vm3, %v513_v0, %v522_v4  ;;  %v545_v16 = vrot.slane %v543_v6, 3  ;;  %v548_v17 = vrot.slane %v546_v7, 4  ;;  %v6206_v2 = vld [vmem:[%s6065_s14 + $0x24] sm:$0xf]  ;;  %v6209_v3 = vld [vmem:[%s6065_s14 + $0x28] sm:$0xf] }
  0x2a   : > { %v531_v14 = vor.u32 %v530_v5, %v527_v61  ;;  %v540_v21 = vor.u32 %v539_v11, %v536_v10  ;;  %v552_v22 = vshrl.u32 %v4749_v44, 16  ;;  %v555_v25 = vshll.u32 %v4749_v44, 16 }
  0x2b   : > { %v561_v26 = vshrl.u32 %v4750_v45, 16  ;;  %v549_v33 = vor.u32 %v548_v17, %v545_v16  ;;  %v564_v34 = vshll.u32 %v4750_v45, 16  ;;  %v1189_v37 = vsel %vm358_vm0, %v4780_v12, 0 }
  0x2c   : > { %v6167_v32 = vsel %vm479_vm3, %v522_v4, %v531_v14  ;;  %v6172_v39 = vsel %vm479_vm3, %v531_v14, %v540_v21  ;;  %v554_v42 = vrot.slane %v552_v22, 3  ;;  %v557_v43 = vrot.slane %v555_v25, 4  ;;  %5285 = vmatpush3.bf16.msra.mxu1 %v1189_v37  ;;  %v6223_v25 = vld [vmem:[%s6065_s14 + $0x2c] sm:$0xf] }
  0x2d   : > { %5181 = vmatmul.mubr.msk.bf16.gmra.mrb[8].mxu0 %vm330_vm2, %v4725_v38  ;;  %v563_v44 = vrot.slane %v561_v26, 3  ;;  %v6180_v45 = vsel %vm479_vm3, %v540_v21, %v549_v33  ;;  %v566_v47 = vrot.slane %v564_v34, 4  ;;  %5360 = vmatprep.subr.bf16.mxu1 %v7917_v1  ;;  %v4781_v49 = vcombine.low %v1003_v27, %v6161_v28  ;;  %v6226_v26 = vld [vmem:[%s6065_s14 + $0x30] sm:$0xf] }
  0x2e   : > { %5184 = vmatprep.mubr.msk.bf16.mxu0 %vm5980_vm1, %v7917_v1  ;;  %v558_v38 = vor.u32 %v557_v43, %v554_v42  ;;  %v4782_v50 = vcombine.low %v6164_v31, %v6175_v46  ;;  %v4801_v52 = vcombine.low %v6161_v28, %v6164_v31  ;;  %v4726_v53 = vcombine.low %v6085_v15, %v6089_v18 }
  0x2f   : > { %v567_v48 = vor.u32 %v566_v47, %v563_v44  ;;  %v1073_v58 = vshrl.u32 %v4781_v49, 16  ;;  %v1076_v59 = vshll.u32 %v4781_v49, 16  ;;  %v4783_v15 = vcombine.low %v6194_v55, %v6197_v56  ;;  %v6240_v44 = vld [vmem:[%s6065_s14 + $0x34] sm:$0xf]  ;;  %v6243_v47 = vld [vmem:[%s6065_s14 + $0x38] sm:$0xf] }
  0x30   : > { %v6191_v54 = vsel %vm479_vm3, %v549_v33, %v558_v38  ;;  %v1081_v60 = vshrl.u32 %v4782_v50, 16  ;;  %v1084_v61 = vshll.u32 %v4782_v50, 16  ;;  %v4784_v10 = vcombine.low %v6206_v2, %v6209_v3 }
  0x31   : > { %v6200_v57 = vsel %vm479_vm3, %v558_v38, %v567_v48  ;;  %v1075_v62 = vrot.slane %v1073_v58, 3  ;;  %v1078_v63 = vrot.slane %v1076_v59, 4  ;;  %v1090_v5 = vshrl.u32 %v4783_v15, 16  ;;  %v6257_v59 = vld [vmem:[%s6065_s14 + $0x3c] sm:$0xf] }
  0x32   : > { %v1083_v0 = vrot.slane %v1081_v60, 3  ;;  %v1086_v18 = vrot.slane %v1084_v61, 4  ;;  %v1093_v6 = vshll.u32 %v4783_v15, 16  ;;  %v4727_v14 = vcombine.low %v6092_v19, %v6095_v20  ;;  %v6260_v60 = vld [vmem:[%s6065_s14 + $0x40] sm:$0xf] }
  0x33   : > { %v1079_v4 = vor.u32 %v1078_v63, %v1075_v62  ;;  %v1092_v11 = vrot.slane %v1090_v5, 3  ;;  %v1099_v17 = vshrl.u32 %v4784_v10, 16  ;;  %v1102_v21 = vshll.u32 %v4784_v10, 16  ;;  %v6277_v5 = vld [vmem:[%s6065_s14 + $0x48] sm:$0xf] }
  0x34   : > { %v1087_v7 = vor.u32 %v1086_v18, %v1083_v0  ;;  %v1095_v12 = vrot.slane %v1093_v6, 4  ;;  %v4785_v27 = vcombine.low %v6223_v25, %v6226_v26  ;;  %v4728_v34 = vcombine.low %v6100_v23, %v6103_v24 }
  0x35   : > { %5185 = vmatmul.mubr.msk.bf16.gmra.mrb[12].mxu0 %vm330_vm2, %v4726_v53  ;;  %v1101_v19 = vrot.slane %v1099_v17, 3  ;;  %v1104_v20 = vrot.slane %v1102_v21, 4  ;;  %v4786_v48 = vcombine.low %v6240_v44, %v6243_v47  ;;  %v4729_v49 = vcombine.low %v6109_v29, %v6112_v30  ;;  %v6294_v17 = vld [vmem:[%s6065_s14 + $0x50] sm:$0xf] }
  0x36   : > { %5188 = vmatprep.mubr.msk.bf16.mxu0 %vm5980_vm1, %v7917_v1  ;;  %v1088_v16 = vsel %vm479_vm3, %v1079_v4, %v1087_v7  ;;  %v1096_v22 = vor.u32 %v1095_v12, %v1092_v11  ;;  %v1108_v37 = vshrl.u32 %v4785_v27, 16  ;;  %v1111_v42 = vshll.u32 %v4785_v27, 16  ;;  %v6274_v4 = vld [vmem:[%s6065_s14 + $0x44] sm:$0xf] }
  0x37   : > { %5287 = vmatmul.mubr.msk.bf16.vlgmr.msra.gmra.mrb[0].mxu1 %vm330_vm2, %v1088_v16  ;;  %v1105_v43 = vor.u32 %v1104_v20, %v1101_v19  ;;  %v1117_v53 = vshrl.u32 %v4786_v48, 16  ;;  %v1120_v58 = vshll.u32 %v4786_v48, 16  ;;  %v4787_v62 = vcombine.low %v6257_v59, %v6260_v60  ;;  %v6291_v16 = vld [vmem:[%s6065_s14 + $0x4c] sm:$0xf]  ;;  %v4760_v19 = vld [vmem:[%s7912_s1 + $0x8] sm:$0xf] }
  0x38   : > { %5290 = vmatprep.mubr.msk.bf16.mxu1 %vm5980_vm1, %v7917_v1  ;;  %v1097_v33 = vsel %vm479_vm3, %v1087_v7, %v1096_v22  ;;  %v1110_v23 = vrot.slane %v1108_v37, 3  ;;  %v1113_v24 = vrot.slane %v1111_v42, 4  ;;  %v4730_v63 = vcombine.low %v6120_v35, %v6123_v36  ;;  %v6311_v37 = vld [vmem:[%s6065_s14 + $0x54] sm:$0xf] }
  0x39   : > { %v1106_v38 = vsel %vm479_vm3, %v1096_v22, %v1105_v43  ;;  %v1119_v30 = vrot.slane %v1117_v53, 3  ;;  %v1122_v61 = vrot.slane %v1120_v58, 4  ;;  %v1126_v15 = vshrl.u32 %v4787_v62, 16  ;;  %v5874_v58 = vld [vmem:[%s6065_s14 + $0x10] sm:$0xff]  }
  0x3a   : > { %v1114_v50 = vor.u32 %v1113_v24, %v1110_v23  ;;  %v1129_v18 = vshll.u32 %v4787_v62, 16  ;;  %v4788_v7 = vcombine.low %v6274_v4, %v6277_v5  ;;  %v4731_v10 = vcombine.low %v6130_v40, %v6133_v41 }
  0x3b   : > { %v1123_v0 = vor.u32 %v1122_v61, %v1119_v30  ;;  %v1128_v36 = vrot.slane %v1126_v15, 3  ;;  %v4789_v22 = vcombine.low %v6291_v16, %v6294_v17  ;;  %v878_v20 = vsel %vm358_vm0, %v4760_v19, 0  ;;  %v5875_v61 = vld [vmem:[%s6065_s14 + $0x18] sm:$0xff]   ;;  %v5881_v19 = vld [vmem:[%s6065_s14 + $0x30] sm:$0xff]  }
  0x3c   : > { %v1115_v29 = vsel %vm479_vm3, %v1105_v43, %v1114_v50  ;;  %v1131_v6 = vrot.slane %v1129_v18, 4  ;;  %v1135_v12 = vshrl.u32 %v4788_v7, 16  ;;  %v4790_v24 = vcombine.low %v6311_v37, %v6311_v37 }
  0x3d   : > { %5189 = vmatmul.mubr.msk.bf16.gmra.mrb[16].mxu0 %vm330_vm2, %v4727_v14  ;;  %v1124_v35 = vsel %vm479_vm3, %v1114_v50, %v1123_v0  ;;  %v1138_v14 = vshll.u32 %v4788_v7, 16  ;;  %v1550_v62 = vshll.u32 %v5874_v58, 16  ;;  %v1555_v18 = vshll.u32 %v5875_v61, 16 }
  0x3e   : > { %5192 = vmatprep.mubr.msk.bf16.mxu0 %vm5980_vm1, %v7917_v1  ;;  %v1132_v11 = vor.u32 %v1131_v6, %v1128_v36  ;;  %v1137_v41 = vrot.slane %v1135_v12, 3  ;;  %v1156_v48 = vshll.u32 %v4790_v24, 16  ;;  %v5877_v6 = vld [vmem:[%s6065_s14 + $0x20] sm:$0xff]   ;;  %v1559_v7 = vshrl.u32 %v5875_v61, 16 }
  0x3f   : > { %5291 = vmatmul.mubr.msk.bf16.gmra.mrb[4].mxu1 %vm330_vm2, %v1097_v33  ;;  %v1140_v21 = vrot.slane %v1138_v14, 4  ;;  %v1144_v33 = vshrl.u32 %v4789_v22, 16  ;;  %v1552_v15 = vrot.slane %v1550_v62, 1  ;;  %v1557_v36 = vrot.slane %v1555_v18, 1  ;;  %v5879_v14 = vld [vmem:[%s6065_s14 + $0x28] sm:$0xff]  }
  0x40   : > { %5294 = vmatprep.mubr.msk.bf16.mxu1 %vm5980_vm1, %v7917_v1  ;;  %v1133_v40 = vsel %vm479_vm3, %v1123_v0, %v1132_v11  ;;  %v1158_v53 = vrot.slane %v1156_v48, 4  ;;  %v1548_v0 = vshrl.u32 %v5874_v58, 16  ;;  %v5885_v48 = vld [vmem:[%s6065_s14 + $0x40] sm:$0xff]   ;;  %v5887_v62 = vld [vmem:[%s6065_s14 + $0x48] sm:$0xff]   ;;  %v4802_v28 = vcombine.low %v6175_v46, %v6194_v55 }
  0x41   : > { %v1141_v27 = vor.u32 %v1140_v21, %v1137_v41  ;;  %v1146_v43 = vrot.slane %v1144_v33, 3  ;;  %v1571_v41 = vshll.u32 %v5879_v14, 16  ;;  %v1595_v58 = vshll.u32 %v5885_v48, 16 }
  0x43   : > { %v1142_v42 = vsel %vm479_vm3, %v1132_v11, %v1141_v27  ;;  %v1561_v11 = vor.u32 %v1559_v7, %v1557_v36 }
  0x45   : > { %5193 = vmatmul.mubr.msk.bf16.gmra.mrb[20].mxu0 %vm330_vm2, %v4728_v34  ;;  %v1147_v34 = vshll.u32 %v4789_v22, 16  ;;  %v1573_v22 = vrot.slane %v1571_v41, 1  ;;  %v5860_v41 = vld [vmem:[%s6065_s14 + $0x1c] sm:$0xff]  }
  0x46   : > { %5196 = vmatprep.mubr.msk.bf16.mxu0 %vm5980_vm1, %v7917_v1 }
  0x47   : > { %5295 = vmatmul.mubr.msk.bf16.gmra.mrb[8].mxu1 %vm330_vm2, %v1106_v38  ;;  %v1149_v23 = vrot.slane %v1147_v34, 4  ;;  %v1153_v38 = vshrl.u32 %v4790_v24, 16  ;;  %v5853_v24 = vld [vmem:[%s6065_s14 + $0x4] sm:$0xff]  }
  0x48   : > { %5298 = vmatprep.mubr.msk.bf16.mxu1 %vm5980_vm1, %v7917_v1 }
  0x49   : > { %v1155_v50 = vrot.slane %v1153_v38, 3 }
  0x4b   : > { %v1159_v30 = vor.u32 %v1158_v53, %v1155_v50 }
  0x4d   : > { %5197 = vmatmul.mubr.msk.bf16.gmra.mrb[24].mxu0 %vm330_vm2, %v4729_v49 }
  0x4e   : > { %5200 = vmatprep.mubr.msk.bf16.mxu0 %vm5980_vm1, %v7917_v1 }
  0x4f   : > { %5299 = vmatmul.mubr.msk.bf16.gmra.mrb[12].mxu1 %vm330_vm2, %v1115_v29  ;;  %v4819_v29 = vld [vmem:[%s7912_s1 + $0x14] sm:$0xf] }
  0x50   : > { %5302 = vmatprep.mubr.msk.bf16.mxu1 %vm5980_vm1, %v7917_v1 }
  0x55   : > { %5201 = vmatmul.mubr.msk.bf16.gmra.mrb[28].mxu0 %vm330_vm2, %v4730_v63 }
  0x56   : > { %5204 = vmatprep.mubr.msk.bf16.mxu0 %vm5980_vm1, %v7917_v1 }
  0x57   : > { %5303 = vmatmul.mubr.msk.bf16.gmra.mrb[16].mxu1 %vm330_vm2, %v1124_v35  ;;  %v1553_v35 = vor.u32 %v1552_v15, %v1548_v0  ;;  %v5858_v15 = vld [vmem:[%s6065_s14 + $0x14] sm:$0xff]  }
  0x58   : > { %5306 = vmatprep.mubr.msk.bf16.mxu1 %vm5980_vm1, %v7917_v1 }
  0x5d   : > { %5205 = vmatmul.mubr.msk.bf16.gmra.mrb[32].mxu0 %vm330_vm2, %v4731_v10  ;;  %v1563_v10 = vshll.u32 %v5877_v6, 16 }
  0x5e   : > { %5210 = vmatprep.mubr.msk.bf16.mxu0 %vm5980_vm1, %v7917_v1 }
  0x5f   : > { %5307 = vmatmul.mubr.msk.bf16.gmra.mrb[20].mxu1 %vm330_vm2, %v1133_v40  ;;  %v1565_v12 = vrot.slane %v1563_v10, 1  ;;  %v1567_v40 = vshrl.u32 %v5877_v6, 16  ;;  %v4800_v6 = vld [vmem:[%s7912_s1 + $0x10] sm:$0xf]  ;;  %v790_v10 = vshll.u32 %v5858_v15, 16 }
  0x60   : > { %5310 = vmatprep.mubr.msk.bf16.mxu1 %vm5980_vm1, %v7917_v1 }
  0x61   : > { %v1569_v21 = vor.u32 %v1567_v40, %v1565_v12  ;;  %v792_v40 = vrot.slane %v790_v10, 1 }
  0x65   : > { %5211 = vmatmul.mubr.msk.bf16.vlgmr.msra.gmra.mrb[36].mxu0 %vm330_vm2, %v6142_v51  ;;  %v1150_v51 = vor.u32 %v1149_v23, %v1146_v43  ;;  %v1583_v43 = vshrl.u32 %v5881_v19, 16 }
  0x66   : > { %5247 = vmatpush3.bf16.msra.mxu0 %v878_v20  ;;  %5214 = vmatprep.mubr.msk.bf16.mxu0 %vm5980_vm1, %v7917_v1  ;;  %v1575_v20 = vshrl.u32 %v5879_v14, 16 }
  0x67   : > { %5322 = vmatprep.subr.bf16.mxu0 %v7917_v1  ;;  %5311 = vmatmul.mubr.msk.bf16.gmra.mrb[24].mxu1 %vm330_vm2, %v1142_v42  ;;  %v1151_v49 = vsel %vm479_vm3, %v1141_v27, %v1150_v51  ;;  %v1160_v63 = vsel %vm479_vm3, %v1150_v51, %v1159_v30  ;;  %v1579_v27 = vshll.u32 %v5881_v19, 16  ;;  %v5883_v42 = vld [vmem:[%s6065_s14 + $0x38] sm:$0xff]  }
  0x68   : > { %5314 = vmatprep.mubr.msk.bf16.mxu1 %vm5980_vm1, %v7917_v1  ;;  %v1577_v33 = vor.u32 %v1575_v20, %v1573_v22  ;;  %v1587_v23 = vshll.u32 %v5883_v42, 16  ;;  %v1591_v53 = vshrl.u32 %v5883_v42, 16  ;;  %v5891_v42 = vld [vmem:[%s6065_s14 + $0x58] ss:$0 sps:$4 sm:$0x11]  }
  0x69   : > { %v1581_v34 = vrot.slane %v1579_v27, 1  ;;  %v798_v27 = vshll.u32 %v5860_v41, 16 }
  0x6a   : > { %v1589_v38 = vrot.slane %v1587_v23, 1  ;;  %v6424_v23 = vld [vmem:[%s6065_s14 + $0x20] sm:$0xf] }
  0x6b   : > { %v1585_v51 = vor.u32 %v1583_v43, %v1581_v34  ;;  %v6421_v43 = vld [vmem:[%s6065_s14 + $0x1c] sm:$0xf] }
  0x6c   : > { %v1593_v61 = vor.u32 %v1591_v53, %v1589_v38 }
  0x6d   : > { %5215 = vmatmul.mubr.msk.bf16.gmra.mrb[40].mxu0 %vm330_vm2, %v6148_v8  ;;  %v1651_v8 = vsel %vm358_vm0, %v4819_v29, 0  ;;  %v1590_v50 = vsel %vm7918_vm4, %v1585_v51, %v1589_v38  ;;  %v775_v29 = vshrl.u32 %v5853_v24, 16 }
  0x6e   : > { %5218 = vmatprep.mubr.msk.bf16.mxu0 %vm5980_vm1, %v7917_v1  ;;  %5361 = vmatpush3.bf16.msra.mxu1 %v1651_v8 }
  0x6f   : > { %5315 = vmatmul.mubr.msk.bf16.gmra.mrb[28].mxu1 %vm330_vm2, %v1151_v49  ;;  %5436 = vmatprep.subr.bf16.mxu1 %v7917_v1  ;;  %v777_v49 = vshll.u32 %v5853_v24, 16  ;;  %v6427_v24 = vld [vmem:[%s6065_s14 + $0x24] sm:$0xf] }
  0x70   : > { %5318 = vmatprep.mubr.msk.bf16.mxu1 %vm5980_vm1, %v7917_v1 }
  0x71   : > { %v779_v30 = vrot.slane %v777_v49, 1  ;;  %v5862_v49 = vld [vmem:[%s6065_s14 + $0x24] sm:$0xff]  }
  0x75   : > { %5219 = vmatmul.mubr.msk.bf16.gmra.mrb[44].mxu0 %vm330_vm2, %v6151_v9  ;;  %v1558_v9 = vsel %vm7918_vm4, %v1553_v35, %v1557_v36  ;;  %v1599_v35 = vshrl.u32 %v5885_v48, 16  ;;  %v1603_v36 = vshll.u32 %v5887_v62, 16  ;;  %v4841_v48 = vcombine.low %v6424_v23, %v6427_v24 }
  0x76   : > { %5222 = vmatprep.mubr.msk.bf16.mxu0 %vm5980_vm1, %v7917_v1 }
  0x77   : > { %5319 = vmatmul.mubr.msk.bf16.gmra.mrb[32].mxu1 %vm330_vm2, %v1160_v63  ;;  %v780_v63 = vor.u32 %v779_v30, %v775_v29  ;;  %v1605_v14 = vrot.slane %v1603_v36, 1  ;;  %v1619_v30 = vshll.u32 %v5891_v42, 16  ;;  %v4859_v36 = vld [vmem:[%s7912_s1 + $0x1c] sm:$0xf] }
  0x78   : > { %5362 = vmatprep.mubr.msk.bf16.mxu1 %vm5980_vm1, %v7917_v1  ;;  %v2126_v10 = vsel %vm358_vm0, %v4859_v36, 0 }
  0x7d   : > { %5223 = vmatmul.mubr.msk.bf16.gmra.mrb[48].mxu0 %vm330_vm2, %v6157_v13  ;;  %v1566_v13 = vsel %vm7918_vm4, %v1561_v11, %v1565_v12  ;;  %v1353_v11 = vsel %vm358_vm0, %v4800_v6, 0 }
  0x7e   : > { %5226 = vmatprep.mubr.msk.bf16.mxu0 %vm5980_vm1, %v7917_v1 }
  0x7f   : > { %5363 = vmatmul.mubr.msk.bf16.vlgmr.msra.gmra.mrb[36].mxu1 %vm330_vm2, %v1558_v9 }
  0x80   : > { %5366 = vmatprep.mubr.msk.bf16.mxu1 %vm5980_vm1, %v7917_v1  ;;  %5437 = vmatpush3.bf16.msra.mxu1 %v2126_v10 }
  0x85   : > { %5227 = vmatmul.mubr.msk.bf16.gmra.mrb[52].mxu0 %vm330_vm2, %v6167_v32  ;;  %v1574_v32 = vsel %vm7918_vm4, %v1569_v21, %v1573_v22  ;;  %v1607_v21 = vshrl.u32 %v5887_v62, 16 }
  0x86   : > { %5230 = vmatprep.mubr.msk.bf16.mxu0 %vm5980_vm1, %v7917_v1 }
  0x87   : > { %5367 = vmatmul.mubr.msk.bf16.gmra.mrb[40].mxu1 %vm330_vm2, %v1566_v13 }
  0x88   : > { %5370 = vmatprep.mubr.msk.bf16.mxu1 %vm5980_vm1, %v7917_v1 }
  0x8d   : > { %5231 = vmatmul.mubr.msk.bf16.gmra.mrb[56].mxu0 %vm330_vm2, %v6172_v39  ;;  %v1582_v39 = vsel %vm7918_vm4, %v1577_v33, %v1581_v34  ;;  %v1609_v33 = vor.u32 %v1607_v21, %v1605_v14  ;;  %v5864_v21 = vld [vmem:[%s6065_s14 + $0x2c] sm:$0xff]  }
  0x8e   : > { %5234 = vmatprep.mubr.msk.bf16.mxu0 %vm5980_vm1, %v7917_v1  ;;  %v814_v42 = vshll.u32 %v5864_v21, 16 }
  0x8f   : > { %5371 = vmatmul.mubr.msk.bf16.gmra.mrb[44].mxu1 %vm330_vm2, %v1574_v32  ;;  %v794_v32 = vshrl.u32 %v5858_v15, 16 }
  0x90   : > { %5374 = vmatprep.mubr.msk.bf16.mxu1 %vm5980_vm1, %v7917_v1 }
  0x91   : > { %v796_v38 = vor.u32 %v794_v32, %v792_v40 }
  0x95   : > { %5235 = vmatmul.mubr.msk.bf16.gmra.mrb[60].mxu0 %vm330_vm2, %v6180_v45  ;;  %v5854_v45 = vld [vmem:[%s6065_s14 + $0xc] sm:$0xff]  }
  0x96   : > { %5238 = vmatprep.mubr.msk.bf16.mxu0 %vm5980_vm1, %v7917_v1  ;;  %v782_v8 = vshll.u32 %v5854_v45, 16  ;;  %v786_v7 = vshrl.u32 %v5854_v45, 16  ;;  %v800_v45 = vrot.slane %v798_v27, 1 }
  0x97   : > { %5375 = vmatmul.mubr.msk.bf16.gmra.mrb[48].mxu1 %vm330_vm2, %v1582_v39  ;;  %v1776_v39 = vld [vmem:[%s6065_s14 + $0x18] sm:$0x8] }
  0x98   : > { %5378 = vmatprep.mubr.msk.bf16.mxu1 %vm5980_vm1, %v7917_v1  ;;  %v784_v0 = vrot.slane %v782_v8, 1  ;;  %v4840_v51 = vcombine.low %v1776_v39, %v6421_v43  ;;  %v1854_v8 = vshrl.u32 %v4841_v48, 16  ;;  %v801_v15 = vsel %vm7918_vm4, %v796_v38, %v800_v45  ;;  %v6464_v38 = vld [vmem:[%s6065_s14 + $0x34] sm:$0xf] }
  0x9a   : > { %v785_v9 = vsel %vm7918_vm4, %v780_v63, %v784_v0  ;;  %v788_v13 = vor.u32 %v786_v7, %v784_v0  ;;  %v1846_v53 = vshrl.u32 %v4840_v51, 16  ;;  %v1856_v63 = vrot.slane %v1854_v8, 3 }
  0x9b   : > { %v1621_v7 = vrot.slane %v1619_v30, 1 }
  0x9c   : > { %v793_v20 = vsel %vm7918_vm4, %v788_v13, %v792_v40 }
  0x9d   : > { %5239 = vmatmul.mubr.msk.bf16.gmra.mrb[64].mxu0 %vm330_vm2, %v6191_v54  ;;  %v1597_v54 = vrot.slane %v1595_v58, 1  ;;  %v1849_v58 = vshll.u32 %v4840_v51, 16  ;;  %v1782_v51 = vld [vmem:[%s6065_s14 + $0x30] sm:$0xf] }
  0x9e   : > { %5242 = vmatprep.mubr.msk.bf16.mxu0 %vm5980_vm1, %v7917_v1 }
  0x9f   : > { %5379 = vmatmul.mubr.msk.bf16.gmra.mrb[52].mxu1 %vm330_vm2, %v1590_v50  ;;  %v1598_v18 = vsel %vm7918_vm4, %v1593_v61, %v1597_v54  ;;  %v1601_v12 = vor.u32 %v1599_v35, %v1597_v54  ;;  %v1857_v61 = vshll.u32 %v4841_v48, 16  ;;  %v1848_v54 = vrot.slane %v1846_v53, 3  ;;  %v5866_v53 = vld [vmem:[%s6065_s14 + $0x34] sm:$0xff]  }
  0xa0   : > { %5382 = vmatprep.mubr.msk.bf16.mxu1 %vm5980_vm1, %v7917_v1  ;;  %v1851_v62 = vrot.slane %v1849_v58, 4  ;;  %v806_v35 = vshll.u32 %v5862_v49, 16  ;;  %v4860_v58 = vcombine.low %v6421_v43, %v6424_v23 }
  0xa1   : > { %v1606_v19 = vsel %vm7918_vm4, %v1601_v12, %v1605_v14  ;;  %v1859_v0 = vrot.slane %v1857_v61, 4  ;;  %v6447_v12 = vld [vmem:[%s6065_s14 + $0x2c] sm:$0xf] }
  0xa2   : > { %v1852_v6 = vor.u32 %v1851_v62, %v1848_v54  ;;  %v818_v54 = vshrl.u32 %v5864_v21, 16 }
  0xa5   : > { %5243 = vmatmul.mubr.msk.bf16.gmra.mrb[68].mxu0 %vm330_vm2, %v6200_v57  ;;  %v5889_v57 = vld [vmem:[%s6065_s14 + $0x50] sm:$0xff]  }
  0xa6   : > { %5248 = vmatprep.mubr.msk.bf16.mxu0 %vm5980_vm1, %v7917_v1  ;;  %v1611_v22 = vshll.u32 %v5889_v57, 16  ;;  %v1615_v29 = vshrl.u32 %v5889_v57, 16  ;;  %v1860_v57 = vor.u32 %v1859_v0, %v1856_v63  ;;  %v822_v63 = vshll.u32 %v5866_v53, 16 }
  0xa7   : > { %5383 = vmatmul.mubr.msk.bf16.gmra.mrb[56].mxu1 %vm330_vm2, %v1598_v18  ;;  %v802_v18 = vshrl.u32 %v5860_v41, 16  ;;  %v808_v41 = vrot.slane %v806_v35, 1 }
  0xa8   : > { %5386 = vmatprep.mubr.msk.bf16.mxu1 %vm5980_vm1, %v7917_v1  ;;  %v1613_v34 = vrot.slane %v1611_v22, 1  ;;  %v6452_v13 = vsel %vm479_vm3, %v1852_v6, %v1860_v57  ;;  %v824_v36 = vrot.slane %v822_v63, 1  ;;  %v5868_v6 = vld [vmem:[%s6065_s14 + $0x3c] sm:$0xff]  }
  0xa9   : > { %v804_v40 = vor.u32 %v802_v18, %v800_v45  ;;  %v4843_v45 = vcombine.low %v1782_v51, %v6464_v38  ;;  %v6482_v18 = vld [vmem:[%s6065_s14 + $0x3c] sm:$0xf]  ;;  %v830_v21 = vshll.u32 %v5868_v6, 16 }
  0xaa   : > { %v1614_v50 = vsel %vm7918_vm4, %v1609_v33, %v1613_v34  ;;  %v810_v33 = vshrl.u32 %v5862_v49, 16 }
  0xab   : > { %v1875_v30 = vshll.u32 %v4843_v45, 16 }
  0xac   : > { %v812_v49 = vor.u32 %v810_v33, %v808_v41  ;;  %v5870_v33 = vld [vmem:[%s6065_s14 + $0x44] sm:$0xff]  }
  0xad   : > { %5249 = vmatmul.mubr.msk.bf16.vlgmr.msra.gmra.mrb[72].mxu0 %vm330_vm2, %v785_v9  ;;  %v1617_v9 = vor.u32 %v1615_v29, %v1613_v34  ;;  %v809_v34 = vsel %vm7918_vm4, %v804_v40, %v808_v41  ;;  %v1872_v29 = vshrl.u32 %v4843_v45, 16  ;;  %v1877_v61 = vrot.slane %v1875_v30, 4  ;;  %v1788_v30 = vld [vmem:[%s6065_s14 + $0x48] sm:$0xf] }
  0xae   : > { %5323 = vmatpush3.bf16.msra.mxu0 %v1353_v11  ;;  %5252 = vmatprep.mubr.msk.bf16.mxu0 %vm5980_vm1, %v7917_v1  ;;  %v1780_v11 = vld [vmem:[%s6065_s14 + $0x28] sm:$0xf]  ;;  %v826_v40 = vshrl.u32 %v5866_v53, 16 }
  0xaf   : > { %5398 = vmatprep.subr.bf16.mxu0 %v7917_v1  ;;  %5387 = vmatmul.mubr.msk.bf16.gmra.mrb[60].mxu1 %vm330_vm2, %v1606_v19  ;;  %v4842_v14 = vcombine.low %v1780_v11, %v6447_v12  ;;  %v1622_v32 = vsel %vm7918_vm4, %v1617_v9, %v1621_v7  ;;  %v1874_v8 = vrot.slane %v1872_v29, 3  ;;  %v4861_v9 = vcombine.low %v6427_v24, %v1780_v11 }
  0xb0   : > { %5390 = vmatprep.mubr.msk.bf16.mxu1 %vm5980_vm1, %v7917_v1 }
  0xb1   : > { %v1863_v22 = vshrl.u32 %v4842_v14, 16  ;;  %v1866_v19 = vshll.u32 %v4842_v14, 16  ;;  %v1878_v0 = vor.u32 %v1877_v61, %v1874_v8  ;;  %v6516_v8 = vld [vmem:[%s6065_s14 + $0x4c] sm:$0xf] }
  0xb3   : > { %v1868_v27 = vrot.slane %v1866_v19, 4  ;;  %v1786_v19 = vld [vmem:[%s6065_s14 + $0x40] sm:$0xf] }
  0xb5   : > { %5253 = vmatmul.mubr.msk.bf16.gmra.mrb[76].mxu0 %vm330_vm2, %v793_v20  ;;  %v1865_v20 = vrot.slane %v1863_v22, 3 }
  0xb6   : > { %5256 = vmatprep.mubr.msk.bf16.mxu0 %vm5980_vm1, %v7917_v1 }
  0xb7   : > { %5391 = vmatmul.mubr.msk.bf16.gmra.mrb[64].mxu1 %vm330_vm2, %v1614_v50  ;;  %v1869_v39 = vor.u32 %v1868_v27, %v1865_v20  ;;  %v816_v50 = vrot.slane %v814_v42, 1  ;;  %v828_v20 = vor.u32 %v826_v40, %v824_v36  ;;  %v832_v27 = vrot.slane %v830_v21, 1 }
  0xb8   : > { %5394 = vmatprep.mubr.msk.bf16.mxu1 %vm5980_vm1, %v7917_v1  ;;  %v4864_v21 = vcombine.low %v6482_v18, %v1786_v19 }
  0xb9   : > { %v6467_v48 = vsel %vm479_vm3, %v1860_v57, %v1869_v39  ;;  %v817_v62 = vsel %vm7918_vm4, %v812_v49, %v816_v50  ;;  %v6485_v43 = vsel %vm479_vm3, %v1869_v39, %v1878_v0  ;;  %v820_v35 = vor.u32 %v818_v54, %v816_v50 }
  0xba   : > { %v834_v50 = vshrl.u32 %v5868_v6, 16  ;;  %v833_v53 = vsel %vm7918_vm4, %v828_v20, %v832_v27  ;;  %v842_v6 = vshrl.u32 %v5870_v33, 16 }
  0xbb   : > { %v825_v41 = vsel %vm7918_vm4, %v820_v35, %v824_v36 }
  0xbc   : > { %v836_v61 = vor.u32 %v834_v50, %v832_v27 }
  0xbd   : > { %5257 = vmatmul.mubr.msk.bf16.gmra.mrb[80].mxu0 %vm330_vm2, %v801_v15  ;;  %v1784_v15 = vld [vmem:[%s6065_s14 + $0x38] sm:$0xf] }
  0xbe   : > { %5260 = vmatprep.mubr.msk.bf16.mxu0 %vm5980_vm1, %v7917_v1  ;;  %v4844_v23 = vcombine.low %v1784_v15, %v6482_v18  ;;  %v4863_v63 = vcombine.low %v6464_v38, %v1784_v15 }
  0xbf   : > { %5395 = vmatmul.mubr.msk.bf16.gmra.mrb[68].mxu1 %vm330_vm2, %v1622_v32  ;;  %v6499_v32 = vld [vmem:[%s6065_s14 + $0x44] sm:$0xf] }
  0xc0   : > { %5438 = vmatprep.mubr.msk.bf16.mxu1 %vm5980_vm1, %v7917_v1  ;;  %v1881_v7 = vshrl.u32 %v4844_v23, 16  ;;  %v1884_v10 = vshll.u32 %v4844_v23, 16  ;;  %v4845_v11 = vcombine.low %v1786_v19, %v6499_v32  ;;  %v4865_v18 = vcombine.low %v6499_v32, %v1788_v30  ;;  %v1794_v32 = vld [vmem:[%s6065_s14 + $0x60] sm:$0xf] }
  0xc2   : > { %v1883_v57 = vrot.slane %v1881_v7, 3  ;;  %v1886_v14 = vrot.slane %v1884_v10, 4  ;;  %v1890_v42 = vshrl.u32 %v4845_v11, 16  ;;  %v1893_v39 = vshll.u32 %v4845_v11, 16 }
  0xc4   : > { %v1887_v22 = vor.u32 %v1886_v14, %v1883_v57  ;;  %v1892_v45 = vrot.slane %v1890_v42, 3  ;;  %v1895_v49 = vrot.slane %v1893_v39, 4  ;;  %v1790_v57 = vld [vmem:[%s6065_s14 + $0x50] sm:$0xf]  ;;  %v6533_v14 = vld [vmem:[%s6065_s14 + $0x54] sm:$0xf] }
  0xc5   : > { %5261 = vmatmul.mubr.msk.bf16.gmra.mrb[84].mxu0 %vm330_vm2, %v809_v34  ;;  %v4862_v34 = vcombine.low %v6447_v12, %v1782_v51  ;;  %v4846_v51 = vcombine.low %v1788_v30, %v6516_v8  ;;  %v4847_v15 = vcombine.low %v1790_v57, %v6533_v14  ;;  %v1792_v42 = vld [vmem:[%s6065_s14 + $0x58] sm:$0xf]  ;;  %v1793_v39 = vld [vmem:[%s6065_s14 + $0x5c] sm:$0xf] }
  0xc6   : > { %5264 = vmatprep.mubr.msk.bf16.mxu0 %vm5980_vm1, %v7917_v1  ;;  %v6502_v24 = vsel %vm479_vm3, %v1878_v0, %v1887_v22  ;;  %v1896_v29 = vor.u32 %v1895_v49, %v1892_v45  ;;  %v4848_v49 = vcombine.low %v1792_v42, %v1793_v39 }
  0xc7   : > { %5439 = vmatmul.mubr.msk.bf16.vlgmr.msra.gmra.mrb[72].mxu1 %vm330_vm2, %v4860_v58  ;;  %v838_v58 = vshll.u32 %v5870_v33, 16  ;;  %v1899_v0 = vshrl.u32 %v4846_v51, 16  ;;  %v1902_v23 = vshll.u32 %v4846_v51, 16  ;;  %v1911_v11 = vshll.u32 %v4847_v15, 16 }
  0xc8   : > { %5442 = vmatprep.mubr.msk.bf16.mxu1 %vm5980_vm1, %v7917_v1  ;;  %v6519_v12 = vsel %vm479_vm3, %v1887_v22, %v1896_v29  ;;  %v1908_v22 = vshrl.u32 %v4847_v15, 16  ;;  %v1917_v19 = vshrl.u32 %v4848_v49, 16  ;;  %v1920_v50 = vshll.u32 %v4848_v49, 16 }
  0xc9   : > { %v840_v54 = vrot.slane %v838_v58, 1  ;;  %v1901_v35 = vrot.slane %v1899_v0, 3  ;;  %v1904_v36 = vrot.slane %v1902_v23, 4  ;;  %v1913_v27 = vrot.slane %v1911_v11, 4  ;;  %v4839_v58 = vld [vmem:[%s7912_s1 + $0x18] sm:$0xf] }
  0xca   : > { %v1910_v20 = vrot.slane %v1908_v22, 3  ;;  %v1922_v51 = vrot.slane %v1920_v50, 4  ;;  %v1962_v0 = vsel %vm358_vm0, %v4839_v58, 0  ;;  %v4849_v23 = vcombine.low %v1794_v32, %v1794_v32 }
  0xcb   : > { %v1905_v10 = vor.u32 %v1904_v36, %v1901_v35  ;;  %v844_v40 = vor.u32 %v842_v6, %v840_v54  ;;  %v4866_v35 = vcombine.low %v6516_v8, %v1790_v57  ;;  %v4867_v57 = vcombine.low %v6533_v14, %v1792_v42 }
  0xcc   : > { %v1926_v36 = vshrl.u32 %v4849_v23, 16  ;;  %v1929_v6 = vshll.u32 %v4849_v23, 16  ;;  %v4868_v14 = vcombine.low %v1793_v39, %v1794_v32 }
  0xcd   : > { %5265 = vmatmul.mubr.msk.bf16.gmra.mrb[88].mxu0 %vm330_vm2, %v817_v62  ;;  %v5872_v62 = vld [vmem:[%s6065_s14 + $0x4c] ss:$0 sps:$4 sm:$0x11]   ;;  %v6536_v38 = vsel %vm479_vm3, %v1896_v29, %v1905_v10  ;;  %v1919_v29 = vrot.slane %v1917_v19, 3 }
  0xce   : > { %5268 = vmatprep.mubr.msk.bf16.mxu0 %vm5980_vm1, %v7917_v1  ;;  %v846_v7 = vshll.u32 %v5872_v62, 16 }
  0xcf   : > { %5443 = vmatmul.mubr.msk.bf16.gmra.mrb[76].mxu1 %vm330_vm2, %v4861_v9  ;;  %v841_v9 = vsel %vm7918_vm4, %v836_v61, %v840_v54  ;;  %v1923_v62 = vor.u32 %v1922_v51, %v1919_v29 }
  0xd0   : > { %5446 = vmatprep.mubr.msk.bf16.mxu1 %vm5980_vm1, %v7917_v1 }
  0xd5   : > { %5269 = vmatmul.mubr.msk.bf16.gmra.mrb[92].mxu0 %vm330_vm2, %v825_v41  ;;  %v848_v41 = vrot.slane %v846_v7, 1  ;;  %v1928_v7 = vrot.slane %v1926_v36, 3 }
  0xd6   : > { %5272 = vmatprep.mubr.msk.bf16.mxu0 %vm5980_vm1, %v7917_v1 }
  0xd7   : > { %5447 = vmatmul.mubr.msk.bf16.gmra.mrb[80].mxu1 %vm330_vm2, %v4862_v34  ;;  %v849_v33 = vsel %vm7918_vm4, %v844_v40, %v848_v41  ;;  %v1914_v34 = vor.u32 %v1913_v27, %v1910_v20  ;;  %v4803_v41 = vcombine.low %v6197_v56, %v6206_v2  ;;  %v4804_v56 = vcombine.low %v6209_v3, %v6223_v25 }
  0xd8   : > { %5450 = vmatprep.mubr.msk.bf16.mxu1 %vm5980_vm1, %v7917_v1  ;;  %v4805_v3 = vcombine.low %v6226_v26, %v6240_v44  ;;  %v4806_v26 = vcombine.low %v6243_v47, %v6257_v59  ;;  %v4807_v47 = vcombine.low %v6260_v60, %v6274_v4  ;;  %v4808_v60 = vcombine.low %v6277_v5, %v6291_v16 }
  0xd9   : > { %v6550_v45 = vsel %vm479_vm3, %v1905_v10, %v1914_v34  ;;  %v6569_v30 = vsel %vm479_vm3, %v1914_v34, %v1923_v62  ;;  %v1931_v10 = vrot.slane %v1929_v6, 4  ;;  %v4809_v5 = vcombine.low %v6294_v17, %v6311_v37 }
  0xdd   : > { %5273 = vmatmul.mubr.msk.bf16.gmra.mrb[96].mxu0 %vm330_vm2, %v833_v53 }
  0xde   : > { %5276 = vmatprep.mubr.msk.bf16.mxu0 %vm5980_vm1, %v7917_v1 }
  0xdf   : > { %5451 = vmatmul.mubr.msk.bf16.gmra.mrb[84].mxu1 %vm330_vm2, %v4863_v63 }
  0xe0   : > { %5454 = vmatprep.mubr.msk.bf16.mxu1 %vm5980_vm1, %v7917_v1 }
  0xe5   : > { %5277 = vmatmul.mubr.msk.bf16.gmra.mrb[100].mxu0 %vm330_vm2, %v841_v9 }
  0xe6   : > { %5280 = vmatprep.mubr.msk.bf16.mxu0 %vm5980_vm1, %v7917_v1 }
  0xe7   : > { %5455 = vmatmul.mubr.msk.bf16.gmra.mrb[88].mxu1 %vm330_vm2, %v4864_v21 }
  0xe8   : > { %5458 = vmatprep.mubr.msk.bf16.mxu1 %vm5980_vm1, %v7917_v1 }
  0xed   : > { %5281 = vmatmul.mubr.msk.bf16.gmra.mrb[104].mxu0 %vm330_vm2, %v849_v33 }
  0xee   : > { %5324 = vmatprep.mubr.msk.bf16.mxu0 %vm5980_vm1, %v7917_v1 }
  0xef   : > { %5459 = vmatmul.mubr.msk.bf16.gmra.mrb[92].mxu1 %vm330_vm2, %v4865_v18 }
  0xf0   : > { %v6556_v53 = vpop.f32.mrb[0].mxu0  ;;  %5462 = vmatprep.mubr.msk.bf16.mxu1 %vm5980_vm1, %v7917_v1 }
  0xf1   : > { %v5174_v61 = vpop.f32.mrb[1].mxu0 }
  0xf2   : > { %v6561_v54 = vpop.f32.mrb[2].mxu0 }
  0xf3   : > { %v5175_v63 = vpop.f32.mrb[3].mxu0 }
  0xf5   : > { %5325 = vmatmul.mubr.msk.bf16.vlgmr.msra.gmra.mrb[108].mxu0 %vm330_vm2, %v4801_v52  ;;  %v1932_v52 = vor.u32 %v1931_v10, %v1928_v7 }
  0xf6   : > { %5399 = vmatpush3.bf16.msra.mxu0 %v1962_v0  ;;  %5328 = vmatprep.mubr.msk.bf16.mxu0 %vm5980_vm1, %v7917_v1 }
  0xf7   : > { %5474 = vmatprep.subr.bf16.mxu0 %v7917_v1  ;;  %5463 = vmatmul.mubr.msk.bf16.gmra.mrb[96].mxu1 %vm330_vm2, %v4866_v35  ;;  %v6589_v8 = vsel %vm479_vm3, %v1923_v62, %v1932_v52 }
  0xf8   : > { %v6579_v9 = vpop.f32.mrb[4].mxu0  ;;  %5466 = vmatprep.mubr.msk.bf16.mxu1 %vm5980_vm1, %v7917_v1 }
  0xf9   : > { %v5178_v15 = vpop.f32.mrb[5].mxu0 }
  0xfa   : > { %v6583_v31 = vpop.f32.mrb[6].mxu0 }
  0xfb   : > { %v5179_v40 = vpop.f32.mrb[7].mxu0 }
  0xfd   : > { %5329 = vmatmul.mubr.msk.bf16.gmra.mrb[112].mxu0 %vm330_vm2, %v4802_v28 }
  0xfe   : > { %5332 = vmatprep.mubr.msk.bf16.mxu0 %vm5980_vm1, %v7917_v1 }
  0xff   : > { %5467 = vmatmul.mubr.msk.bf16.gmra.mrb[100].mxu1 %vm330_vm2, %v4867_v57 }
 0x100   : > { %v6595_v46 = vpop.f32.mrb[8].mxu0  ;;  %5470 = vmatprep.mubr.msk.bf16.mxu1 %vm5980_vm1, %v7917_v1 }
 0x101   : > { %v5182_v55 = vpop.f32.mrb[9].mxu0 }
 0x102   : > { %v6599_v21 = vpop.f32.mrb[10].mxu0 }
 0x103   : > { %v5183_v22 = vpop.f32.mrb[11].mxu0 }
 0x105   : > { %5333 = vmatmul.mubr.msk.bf16.gmra.mrb[116].mxu0 %vm330_vm2, %v4803_v41 }
 0x106   : > { %5336 = vmatprep.mubr.msk.bf16.mxu0 %vm5980_vm1, %v7917_v1 }
 0x107   : > { %5471 = vmatmul.mubr.msk.bf16.gmra.mrb[104].mxu1 %vm330_vm2, %v4868_v14 }
 0x108   : > { %v6607_v11 = vpop.f32.mrb[12].mxu0 }
 0x109   : > { %v5186_v20 = vpop.f32.mrb[13].mxu0 }
 0x10a   : > { %v6611_v2 = vpop.f32.mrb[14].mxu0  ;;  %v6615_v33 = vpop.f32.mrb[0].mxu1 }
 0x10b   : > { %v5187_v27 = vpop.f32.mrb[15].mxu0  ;;  %v5288_v34 = vpop.f32.mrb[1].mxu1 }
 0x10c   : > { %v6619_v42 = vpop.f32.mrb[2].mxu1 }
 0x10d   : > { %5337 = vmatmul.mubr.msk.bf16.gmra.mrb[120].mxu0 %vm330_vm2, %v4804_v56  ;;  %v5289_v49 = vpop.f32.mrb[3].mxu1 }
 0x10e   : > { %5340 = vmatprep.mubr.msk.bf16.mxu0 %vm5980_vm1, %v7917_v1 }
 0x110   : > { %v6621_v39 = vpop.f32.mrb[16].mxu0 }
 0x111   : > { %v5190_v18 = vpop.f32.mrb[17].mxu0 }
 0x112   : > { %v6625_v25 = vpop.f32.mrb[18].mxu0  ;;  %v6628_v50 = vpop.f32.mrb[4].mxu1 }
 0x113   : > { %v5191_v19 = vpop.f32.mrb[19].mxu0  ;;  %v5292_v58 = vpop.f32.mrb[5].mxu1 }
 0x114   : > { %v6632_v29 = vpop.f32.mrb[6].mxu1  ;;  %v4878_v58 = vld [vmem:[%s7912_s1 + $0x20] sm:$0xf] }
 0x115   : > { %5341 = vmatmul.mubr.msk.bf16.gmra.mrb[124].mxu0 %vm330_vm2, %v4805_v3  ;;  %v5293_v61 = vpop.f32.mrb[7].mxu1 }
 0x116   : > { %5344 = vmatprep.mubr.msk.bf16.mxu0 %vm5980_vm1, %v7917_v1 }
 0x118   : > { %v6634_v51 = vpop.f32.mrb[20].mxu0 }
 0x119   : > { %v5194_v62 = vpop.f32.mrb[21].mxu0 }
 0x11a   : > { %v6638_v44 = vpop.f32.mrb[22].mxu0  ;;  %v6641_v0 = vpop.f32.mrb[8].mxu1 }
 0x11b   : > { %v5195_v63 = vpop.f32.mrb[23].mxu0  ;;  %v5296_v32 = vpop.f32.mrb[9].mxu1 }
 0x11c   : > { %v6645_v23 = vpop.f32.mrb[10].mxu1  ;;  %v2424_v32 = vsel %vm358_vm0, %v4878_v58, 0 }
 0x11d   : > { %5345 = vmatmul.mubr.msk.bf16.gmra.mrb[128].mxu0 %vm330_vm2, %v4806_v26  ;;  %v5297_v36 = vpop.f32.mrb[11].mxu1 }
 0x11e   : > { %5348 = vmatprep.mubr.msk.bf16.mxu0 %vm5980_vm1, %v7917_v1 }
 0x120   : > { %v6647_v35 = vpop.f32.mrb[24].mxu0 }
 0x121   : > { %v5198_v6 = vpop.f32.mrb[25].mxu0 }
 0x122   : > { %v6651_v59 = vpop.f32.mrb[26].mxu0  ;;  %v6654_v10 = vpop.f32.mrb[12].mxu1 }
 0x123   : > { %v5199_v7 = vpop.f32.mrb[27].mxu0  ;;  %v5300_v15 = vpop.f32.mrb[13].mxu1 }
 0x124   : > { %v6658_v28 = vpop.f32.mrb[14].mxu1 }
 0x125   : > { %5349 = vmatmul.mubr.msk.bf16.gmra.mrb[132].mxu0 %vm330_vm2, %v4807_v47  ;;  %v5301_v40 = vpop.f32.mrb[15].mxu1 }
 0x126   : > { %5352 = vmatprep.mubr.msk.bf16.mxu0 %vm5980_vm1, %v7917_v1 }
 0x128   : > { %v6660_v52 = vpop.f32.mrb[28].mxu0 }
 0x129   : > { %v5202_v57 = vpop.f32.mrb[29].mxu0 }
 0x12a   : > { %v6664_v4 = vpop.f32.mrb[30].mxu0  ;;  %v6667_v41 = vpop.f32.mrb[16].mxu1 }
 0x12b   : > { %v5203_v55 = vpop.f32.mrb[31].mxu0  ;;  %v5304_v22 = vpop.f32.mrb[17].mxu1 }
 0x12c   : > { %v6671_v14 = vpop.f32.mrb[18].mxu1 }
 0x12d   : > { %5353 = vmatmul.mubr.msk.bf16.gmra.mrb[136].mxu0 %vm330_vm2, %v4808_v60  ;;  %v5305_v56 = vpop.f32.mrb[19].mxu1 }
 0x12e   : > { %5356 = vmatprep.mubr.msk.bf16.mxu0 %vm5980_vm1, %v7917_v1 }
 0x130   : > { %v6673_v20 = vpop.f32.mrb[32].mxu0 }
 0x131   : > { %v5206_v27 = vpop.f32.mrb[33].mxu0 }
 0x132   : > { %v6677_v16 = vpop.f32.mrb[34].mxu0  ;;  %v6680_v49 = vpop.f32.mrb[20].mxu1 }
 0x133   : > { %v5207_v34 = vpop.f32.mrb[35].mxu0  ;;  %v5308_v18 = vpop.f32.mrb[21].mxu1 }
 0x134   : > { %v6684_v3 = vpop.f32.mrb[22].mxu1 }
 0x135   : > { %5357 = vmatmul.mubr.msk.bf16.gmra.mrb[140].mxu0 %vm330_vm2, %v4809_v5  ;;  %v5309_v61 = vpop.f32.mrb[23].mxu1 }
 0x136   : > { %5400 = vmatprep.mubr.msk.bf16.mxu0 %vm5980_vm1, %v7917_v1 }
 0x138   : > { %v633_v19 = vpop.f32.mrb[36].mxu0 }
 0x139   : > { %v6690_v17 = vadd.f32 %v633_v19, %v6556_v53  ;;  %v5212_v37 = vpop.f32.mrb[37].mxu0 }
 0x13a   : > { %v636_v62 = vpop.f32.mrb[38].mxu0  ;;  %v6698_v36 = vpop.f32.mrb[24].mxu1 }
 0x13b   : > { %v6693_v26 = vadd.f32 %v636_v62, %v6561_v54  ;;  %v5213_v63 = vpop.f32.mrb[39].mxu0  ;;  %v5312_v6 = vpop.f32.mrb[25].mxu1 }
 0x13c   : > { %v6702_v53 = vpop.f32.mrb[26].mxu1 }
 0x13d   : > { %5401 = vmatmul.mubr.msk.bf16.vlgmr.msra.gmra.mrb[144].mxu0 %vm330_vm2, %v6452_v13  ;;  %v5313_v7 = vpop.f32.mrb[27].mxu1 }
 0x13e   : > { %5475 = vmatpush3.bf16.msra.mxu0 %v2424_v32  ;;  %5404 = vmatprep.mubr.msk.bf16.mxu0 %vm5980_vm1, %v7917_v1 }
 0x140   : > { %v641_v47 = vpop.f32.mrb[40].mxu0 }
 0x141   : > { %v6705_v54 = vadd.f32 %v641_v47, %v6579_v9  ;;  %v5216_v15 = vpop.f32.mrb[41].mxu0 }
 0x142   : > { %v644_v40 = vpop.f32.mrb[42].mxu0  ;;  %v6712_v60 = vpop.f32.mrb[28].mxu1 }
 0x143   : > { %v6708_v57 = vadd.f32 %v644_v40, %v6583_v31  ;;  %v5217_v13 = vpop.f32.mrb[43].mxu0  ;;  %v5316_v55 = vpop.f32.mrb[29].mxu1 }
 0x144   : > { %v6716_v22 = vpop.f32.mrb[30].mxu1 }
 0x145   : > { %5405 = vmatmul.mubr.msk.bf16.gmra.mrb[148].mxu0 %vm330_vm2, %v6467_v48  ;;  %v5317_v9 = vpop.f32.mrb[31].mxu1 }
 0x146   : > { %5408 = vmatprep.mubr.msk.bf16.mxu0 %vm5980_vm1, %v7917_v1 }
 0x148   : > { %v649_v56 = vpop.f32.mrb[44].mxu0 }
 0x149   : > { %v6719_v27 = vadd.f32 %v649_v56, %v6595_v46  ;;  %v5220_v5 = vpop.f32.mrb[45].mxu0 }
 0x14a   : > { %v652_v31 = vpop.f32.mrb[46].mxu0  ;;  %v6726_v48 = vpop.f32.mrb[32].mxu1 }
 0x14b   : > { %v6722_v34 = vadd.f32 %v652_v31, %v6599_v21  ;;  %v5221_v18 = vpop.f32.mrb[47].mxu0  ;;  %v5320_v19 = vpop.f32.mrb[33].mxu1 }
 0x14c   : > { %v6730_v58 = vpop.f32.mrb[34].mxu1 }
 0x14d   : > { %5409 = vmatmul.mubr.msk.bf16.gmra.mrb[152].mxu0 %vm330_vm2, %v6485_v43  ;;  %v5321_v46 = vpop.f32.mrb[35].mxu1 }
 0x14e   : > { %5412 = vmatprep.mubr.msk.bf16.mxu0 %vm5980_vm1, %v7917_v1 }
 0x150   : > { %v657_v61 = vpop.f32.mrb[48].mxu0 }
 0x151   : > { %v6733_v37 = vadd.f32 %v657_v61, %v6607_v11  ;;  %v5224_v62 = vpop.f32.mrb[49].mxu0 }
 0x152   : > { %v660_v21 = vpop.f32.mrb[50].mxu0  ;;  %v6740_v43 = vpop.f32.mrb[36].mxu1 }
 0x153   : > { %v6736_v63 = vadd.f32 %v660_v21, %v6611_v2  ;;  %v5225_v32 = vpop.f32.mrb[51].mxu0  ;;  %v5364_v6 = vpop.f32.mrb[37].mxu1 }
 0x154   : > { %v6744_v47 = vpop.f32.mrb[38].mxu1 }
 0x155   : > { %5413 = vmatmul.mubr.msk.bf16.gmra.mrb[156].mxu0 %vm330_vm2, %v6502_v24  ;;  %v5365_v11 = vpop.f32.mrb[39].mxu1 }
 0x156   : > { %5416 = vmatprep.mubr.msk.bf16.mxu0 %vm5980_vm1, %v7917_v1 }
 0x158   : > { %v665_v7 = vpop.f32.mrb[52].mxu0 }
 0x159   : > { %v6747_v15 = vadd.f32 %v665_v7, %v6621_v39  ;;  %v5228_v40 = vpop.f32.mrb[53].mxu0 }
 0x15a   : > { %v668_v2 = vpop.f32.mrb[54].mxu0  ;;  %v6754_v24 = vpop.f32.mrb[40].mxu1 }
 0x15b   : > { %v6750_v13 = vadd.f32 %v668_v2, %v6625_v25  ;;  %v5229_v55 = vpop.f32.mrb[55].mxu0  ;;  %v5368_v56 = vpop.f32.mrb[41].mxu1 }
 0x15c   : > { %v6758_v9 = vpop.f32.mrb[42].mxu1 }
 0x15d   : > { %5417 = vmatmul.mubr.msk.bf16.gmra.mrb[160].mxu0 %vm330_vm2, %v6519_v12  ;;  %v5369_v39 = vpop.f32.mrb[43].mxu1 }
 0x15e   : > { %5420 = vmatprep.mubr.msk.bf16.mxu0 %vm5980_vm1, %v7917_v1  ;;  %v5911_v39 = vld [vmem:[%s6065_s14 + $0x1c] sm:$0xff]  }
 0x160   : > { %v673_v5 = vpop.f32.mrb[56].mxu0 }
 0x161   : > { %v6761_v31 = vadd.f32 %v673_v5, %v6634_v51  ;;  %v5232_v18 = vpop.f32.mrb[57].mxu0 }
 0x162   : > { %v676_v25 = vpop.f32.mrb[58].mxu0  ;;  %v6768_v12 = vpop.f32.mrb[44].mxu1 }
 0x163   : > { %v6764_v19 = vadd.f32 %v676_v25, %v6638_v44  ;;  %v5233_v61 = vpop.f32.mrb[59].mxu0  ;;  %v5372_v46 = vpop.f32.mrb[45].mxu1 }
 0x164   : > { %v6772_v62 = vpop.f32.mrb[46].mxu1  ;;  %v5912_v61 = vld [vmem:[%s6065_s14 + $0x24] sm:$0xff]   ;;  %v2323_v46 = vshll.u32 %v5911_v39, 16 }
 0x165   : > { %5421 = vmatmul.mubr.msk.bf16.gmra.mrb[164].mxu0 %vm330_vm2, %v6536_v38  ;;  %v5373_v51 = vpop.f32.mrb[47].mxu1 }
 0x166   : > { %5424 = vmatprep.mubr.msk.bf16.mxu0 %vm5980_vm1, %v7917_v1 }
 0x168   : > { %v681_v21 = vpop.f32.mrb[60].mxu0 }
 0x169   : > { %v6775_v32 = vadd.f32 %v681_v21, %v6647_v35  ;;  %v5236_v44 = vpop.f32.mrb[61].mxu0 }
 0x16a   : > { %v684_v6 = vpop.f32.mrb[62].mxu0  ;;  %v6782_v11 = vpop.f32.mrb[48].mxu1 }
 0x16b   : > { %v6778_v7 = vadd.f32 %v684_v6, %v6651_v59  ;;  %v5237_v38 = vpop.f32.mrb[63].mxu0  ;;  %v5376_v40 = vpop.f32.mrb[49].mxu1 }
 0x16c   : > { %v6786_v2 = vpop.f32.mrb[50].mxu1  ;;  %v2321_v40 = vshrl.u32 %v5911_v39, 16 }
 0x16d   : > { %5425 = vmatmul.mubr.msk.bf16.gmra.mrb[168].mxu0 %vm330_vm2, %v6550_v45  ;;  %v5377_v55 = vpop.f32.mrb[51].mxu1 }
 0x16e   : > { %5428 = vmatprep.mubr.msk.bf16.mxu0 %vm5980_vm1, %v7917_v1 }
 0x170   : > { %v689_v35 = vpop.f32.mrb[64].mxu0 }
 0x171   : > { %v6789_v56 = vadd.f32 %v689_v35, %v6660_v52  ;;  %v5240_v59 = vpop.f32.mrb[65].mxu0  ;;  %v2328_v35 = vshll.u32 %v5912_v61, 16 }
 0x172   : > { %v692_v5 = vpop.f32.mrb[66].mxu0  ;;  %v6797_v25 = vpop.f32.mrb[52].mxu1 }
 0x173   : > { %v6793_v18 = vadd.f32 %v692_v5, %v6664_v4  ;;  %v5241_v45 = vpop.f32.mrb[67].mxu0  ;;  %v5380_v21 = vpop.f32.mrb[53].mxu1 }
 0x174   : > { %v6802_v52 = vpop.f32.mrb[54].mxu1  ;;  %v5913_v21 = vld [vmem:[%s6065_s14 + $0x2c] sm:$0xff]  }
 0x175   : > { %5429 = vmatmul.mubr.msk.bf16.gmra.mrb[172].mxu0 %vm330_vm2, %v6569_v30  ;;  %7919 = vst [vmem:[#allocation3_spill] sm:$0xff] %v6802_v52  ;;  %v5381_v44 = vpop.f32.mrb[55].mxu1  ;;  %v2325_v30 = vrot.slane %v2323_v46, 1 }
 0x176   : > { %5432 = vmatprep.mubr.msk.bf16.mxu0 %vm5980_vm1, %v7917_v1 }
 0x177   : > { %v2326_v45 = vor.u32 %v2325_v30, %v2321_v40 }
 0x178   : > { %v697_v51 = vpop.f32.mrb[68].mxu0 }
 0x179   : > { %v6805_v4 = vadd.f32 %v697_v51, %v6673_v20  ;;  %v5244_v6 = vpop.f32.mrb[69].mxu0  ;;  %v2330_v20 = vrot.slane %v2328_v35, 1 }
 0x17a   : > { %v700_v38 = vpop.f32.mrb[70].mxu0  ;;  %v6812_v5 = vpop.f32.mrb[56].mxu1 }
 0x17b   : > { %v6808_v55 = vadd.f32 %v700_v38, %v6677_v16  ;;  %v5245_v59 = vpop.f32.mrb[71].mxu0  ;;  %7920 = vst [vmem:[#allocation4_spill] sm:$0xff] %v6812_v5  ;;  %v5384_v51 = vpop.f32.mrb[57].mxu1  ;;  %v2336_v5 = vshll.u32 %v5913_v21, 16 }
 0x17c   : > { %v6817_v44 = vpop.f32.mrb[58].mxu1  ;;  %v2332_v59 = vshrl.u32 %v5912_v61, 16  ;;  %v5914_v61 = vld [vmem:[%s6065_s14 + $0x34] sm:$0xff]  }
 0x17d   : > { %5433 = vmatmul.mubr.msk.bf16.gmra.mrb[176].mxu0 %vm330_vm2, %v6589_v8  ;;  %v5385_v46 = vpop.f32.mrb[59].mxu1  ;;  %v2331_v8 = vsel %vm7918_vm4, %v2326_v45, %v2330_v20  ;;  %v2338_v45 = vrot.slane %v2336_v5, 1 }
 0x17e   : > { %5476 = vmatprep.mubr.msk.bf16.mxu0 %vm5980_vm1, %v7917_v1 }
 0x180   : > { %v914_v39 = vpop.f32.mrb[72].mxu0 }
 0x181   : > { %v985_v16 = vadd.f32 %v914_v39, %v6690_v17  ;;  %v5250_v6 = vpop.f32.mrb[73].mxu0  ;;  %v2334_v17 = vor.u32 %v2332_v59, %v2330_v20 }
 0x182   : > { %v917_v38 = vpop.f32.mrb[74].mxu0  ;;  %v6829_v51 = vpop.f32.mrb[60].mxu1 }
 0x183   : > { %v986_v52 = vadd.f32 %v917_v38, %v6693_v26  ;;  %v6823_v40 = vadd.f32 %v6615_v33, %v985_v16  ;;  %v5251_v30 = vpop.f32.mrb[75].mxu0  ;;  %v5388_v39 = vpop.f32.mrb[61].mxu1  ;;  %v2339_v6 = vsel %vm7918_vm4, %v2334_v17, %v2338_v45  ;;  %v2340_v38 = vshrl.u32 %v5913_v21, 16  ;;  %v5915_v21 = vld [vmem:[%s6065_s14 + $0x3c] sm:$0xff]  }
 0x184   : > { %v6834_v46 = vpop.f32.mrb[62].mxu1 }
 0x185   : > { %v6826_v35 = vadd.f32 %v6619_v42, %v986_v52  ;;  %5477 = vmatmul.mubr.msk.bf16.vlgmr.msra.gmra.mrb[180].mxu0 %vm330_vm2, %v2331_v8  ;;  %v5389_v33 = vpop.f32.mrb[63].mxu1  ;;  %v2344_v8 = vshll.u32 %v5914_v61, 16 }
 0x186   : > { %5480 = vmatprep.mubr.msk.bf16.mxu0 %vm5980_vm1, %v7917_v1 }
 0x187   : > { %v2346_v17 = vrot.slane %v2344_v8, 1 }
 0x188   : > { %v922_v26 = vpop.f32.mrb[76].mxu0 }
 0x189   : > { %v987_v16 = vadd.f32 %v922_v26, %v6705_v54  ;;  %v5254_v42 = vpop.f32.mrb[77].mxu0  ;;  %v2342_v54 = vor.u32 %v2340_v38, %v2338_v45 }
 0x18a   : > { %v925_v52 = vpop.f32.mrb[78].mxu0  ;;  %v6846_v39 = vpop.f32.mrb[64].mxu1 }
 0x18b   : > { %v988_v30 = vadd.f32 %v925_v52, %v6708_v57  ;;  %v6840_v20 = vadd.f32 %v6628_v50, %v987_v16  ;;  %v5255_v5 = vpop.f32.mrb[79].mxu0  ;;  %v5392_v26 = vpop.f32.mrb[65].mxu1  ;;  %v2347_v52 = vsel %vm7918_vm4, %v2342_v54, %v2346_v17 }
 0x18c   : > { %v6851_v33 = vpop.f32.mrb[66].mxu1 }
 0x18d   : > { %v6843_v59 = vadd.f32 %v6632_v29, %v988_v30  ;;  %5481 = vmatmul.mubr.msk.bf16.gmra.mrb[184].mxu0 %vm330_vm2, %v2339_v6  ;;  %v5393_v50 = vpop.f32.mrb[67].mxu1  ;;  %v2348_v6 = vshrl.u32 %v5914_v61, 16  ;;  %v2352_v30 = vshll.u32 %v5915_v21, 16  ;;  %v5916_v61 = vld [vmem:[%s6065_s14 + $0x44] sm:$0xff]  }
 0x18e   : > { %5484 = vmatprep.mubr.msk.bf16.mxu0 %vm5980_vm1, %v7917_v1 }
 0x18f   : > { %v2354_v54 = vrot.slane %v2352_v30, 1 }
 0x190   : > { %v930_v57 = vpop.f32.mrb[80].mxu0 }
 0x191   : > { %v989_v16 = vadd.f32 %v930_v57, %v6719_v27  ;;  %v5258_v29 = vpop.f32.mrb[81].mxu0  ;;  %v2350_v27 = vor.u32 %v2348_v6, %v2346_v17 }
 0x192   : > { %v933_v42 = vpop.f32.mrb[82].mxu0  ;;  %v6863_v26 = vpop.f32.mrb[68].mxu1 }
 0x193   : > { %v990_v5 = vadd.f32 %v933_v42, %v6722_v34  ;;  %v6857_v45 = vadd.f32 %v6641_v0, %v989_v16  ;;  %v5259_v38 = vpop.f32.mrb[83].mxu0  ;;  %v5396_v57 = vpop.f32.mrb[69].mxu1  ;;  %v2355_v42 = vsel %vm7918_vm4, %v2350_v27, %v2354_v54 }
 0x194   : > { %v6868_v50 = vpop.f32.mrb[70].mxu1 }
 0x195   : > { %v6860_v8 = vadd.f32 %v6645_v23, %v990_v5  ;;  %5485 = vmatmul.mubr.msk.bf16.gmra.mrb[188].mxu0 %vm330_vm2, %v2347_v52  ;;  %v5397_v0 = vpop.f32.mrb[71].mxu1  ;;  %v2356_v52 = vshrl.u32 %v5915_v21, 16  ;;  %v2360_v5 = vshll.u32 %v5916_v61, 16  ;;  %v5917_v21 = vld [vmem:[%s6065_s14 + $0x4c] sm:$0xff]  }
 0x196   : > { %5488 = vmatprep.mubr.msk.bf16.mxu0 %vm5980_vm1, %v7917_v1 }
 0x197   : > { %v2362_v27 = vrot.slane %v2360_v5, 1 }
 0x198   : > { %v938_v34 = vpop.f32.mrb[84].mxu0 }
 0x199   : > { %v991_v16 = vadd.f32 %v938_v34, %v6733_v37  ;;  %v5262_v23 = vpop.f32.mrb[85].mxu0  ;;  %v2358_v37 = vor.u32 %v2356_v52, %v2354_v54 }
 0x19a   : > { %v941_v29 = vpop.f32.mrb[86].mxu0  ;;  %v6880_v57 = vpop.f32.mrb[72].mxu1 }
 0x19b   : > { %v992_v38 = vadd.f32 %v941_v29, %v6736_v63  ;;  %v6874_v17 = vadd.f32 %v6654_v10, %v991_v16  ;;  %v5263_v6 = vpop.f32.mrb[87].mxu0  ;;  %v5440_v34 = vpop.f32.mrb[73].mxu1  ;;  %v2363_v29 = vsel %vm7918_vm4, %v2358_v37, %v2362_v27 }
 0x19c   : > { %v6885_v0 = vpop.f32.mrb[74].mxu1 }
 0x19d   : > { %v6877_v30 = vadd.f32 %v6658_v28, %v992_v38  ;;  %5489 = vmatmul.mubr.msk.bf16.gmra.mrb[192].mxu0 %vm330_vm2, %v2355_v42  ;;  %v5441_v10 = vpop.f32.mrb[75].mxu1  ;;  %v2364_v42 = vshrl.u32 %v5916_v61, 16  ;;  %v2368_v38 = vshll.u32 %v5917_v21, 16  ;;  %v5918_v61 = vld [vmem:[%s6065_s14 + $0x54] sm:$0xff]  }
 0x19e   : > { %5492 = vmatprep.mubr.msk.bf16.mxu0 %vm5980_vm1, %v7917_v1 }
 0x19f   : > { %v2370_v37 = vrot.slane %v2368_v38, 1 }
 0x1a0   : > { %v946_v63 = vpop.f32.mrb[88].mxu0 }
 0x1a1   : > { %v993_v16 = vadd.f32 %v946_v63, %v6747_v15  ;;  %v5266_v28 = vpop.f32.mrb[89].mxu0  ;;  %v2366_v15 = vor.u32 %v2364_v42, %v2362_v27 }
 0x1a2   : > { %v949_v23 = vpop.f32.mrb[90].mxu0  ;;  %v6897_v34 = vpop.f32.mrb[76].mxu1 }
 0x1a3   : > { %v994_v6 = vadd.f32 %v949_v23, %v6750_v13  ;;  %v6891_v54 = vadd.f32 %v6667_v41, %v993_v16  ;;  %v5267_v52 = vpop.f32.mrb[91].mxu0  ;;  %v5444_v63 = vpop.f32.mrb[77].mxu1  ;;  %v2371_v23 = vsel %vm7918_vm4, %v2366_v15, %v2370_v37 }
 0x1a4   : > { %v6902_v10 = vpop.f32.mrb[78].mxu1 }
 0x1a5   : > { %v6894_v5 = vadd.f32 %v6671_v14, %v994_v6  ;;  %5493 = vmatmul.mubr.msk.bf16.gmra.mrb[196].mxu0 %vm330_vm2, %v2363_v29  ;;  %v5445_v41 = vpop.f32.mrb[79].mxu1  ;;  %v2372_v29 = vshrl.u32 %v5917_v21, 16  ;;  %v2376_v6 = vshll.u32 %v5918_v61, 16  ;;  %v5919_v21 = vld [vmem:[%s6065_s14 + $0x5c] sm:$0xff]  }
 0x1a6   : > { %5496 = vmatprep.mubr.msk.bf16.mxu0 %vm5980_vm1, %v7917_v1 }
 0x1a7   : > { %v2378_v15 = vrot.slane %v2376_v6, 1 }
 0x1a8   : > { %v954_v13 = vpop.f32.mrb[92].mxu0 }
 0x1a9   : > { %v995_v16 = vadd.f32 %v954_v13, %v6761_v31  ;;  %v5270_v14 = vpop.f32.mrb[93].mxu0  ;;  %v2374_v31 = vor.u32 %v2372_v29, %v2370_v37 }
 0x1aa   : > { %v957_v28 = vpop.f32.mrb[94].mxu0  ;;  %v6914_v63 = vpop.f32.mrb[80].mxu1 }
 0x1ab   : > { %v996_v52 = vadd.f32 %v957_v28, %v6764_v19  ;;  %v6908_v27 = vadd.f32 %v6680_v49, %v995_v16  ;;  %v5271_v42 = vpop.f32.mrb[95].mxu0  ;;  %v5448_v13 = vpop.f32.mrb[81].mxu1  ;;  %v2379_v28 = vsel %vm7918_vm4, %v2374_v31, %v2378_v15 }
 0x1ac   : > { %v6919_v41 = vpop.f32.mrb[82].mxu1 }
 0x1ad   : > { %v6911_v38 = vadd.f32 %v6684_v3, %v996_v52  ;;  %5497 = vmatmul.mubr.msk.bf16.gmra.mrb[200].mxu0 %vm330_vm2, %v2371_v23  ;;  %v5449_v49 = vpop.f32.mrb[83].mxu1  ;;  %v2380_v23 = vshrl.u32 %v5918_v61, 16  ;;  %v2384_v52 = vshll.u32 %v5919_v21, 16  ;;  %v5920_v61 = vld [vmem:[%s6065_s14 + $0x64] ss:$0 sps:$4 sm:$0x11]  }
 0x1ae   : > { %5500 = vmatprep.mubr.msk.bf16.mxu0 %vm5980_vm1, %v7917_v1 }
 0x1af   : > { %v2386_v31 = vrot.slane %v2384_v52, 1 }
 0x1b0   : > { %v962_v19 = vpop.f32.mrb[96].mxu0 }
 0x1b1   : > { %v997_v16 = vadd.f32 %v962_v19, %v6775_v32  ;;  %v5274_v3 = vpop.f32.mrb[97].mxu0  ;;  %v2382_v32 = vor.u32 %v2380_v23, %v2378_v15 }
 0x1b2   : > { %v965_v14 = vpop.f32.mrb[98].mxu0  ;;  %v6931_v13 = vpop.f32.mrb[84].mxu1 }
 0x1b3   : > { %v998_v42 = vadd.f32 %v965_v14, %v6778_v7  ;;  %v6925_v37 = vadd.f32 %v6698_v36, %v997_v16  ;;  %v5275_v29 = vpop.f32.mrb[99].mxu0  ;;  %v5452_v19 = vpop.f32.mrb[85].mxu1  ;;  %v2387_v14 = vsel %vm7918_vm4, %v2382_v32, %v2386_v31 }
 0x1b4   : > { %v6936_v49 = vpop.f32.mrb[86].mxu1 }
 0x1b5   : > { %v6928_v6 = vadd.f32 %v6702_v53, %v998_v42  ;;  %5501 = vmatmul.mubr.msk.bf16.gmra.mrb[204].mxu0 %vm330_vm2, %v2379_v28  ;;  %v5453_v36 = vpop.f32.mrb[87].mxu1  ;;  %v2388_v28 = vshrl.u32 %v5919_v21, 16  ;;  %v2392_v42 = vshll.u32 %v5920_v61, 16 }
 0x1b6   : > { %5504 = vmatprep.mubr.msk.bf16.mxu0 %vm5980_vm1, %v7917_v1 }
 0x1b7   : > { %v2390_v19 = vor.u32 %v2388_v28, %v2386_v31  ;;  %v2394_v32 = vrot.slane %v2392_v42, 1 }
 0x1b8   : > { %v970_v7 = vpop.f32.mrb[100].mxu0 }
 0x1b9   : > { %v999_v16 = vadd.f32 %v970_v7, %v6789_v56  ;;  %v5278_v3 = vpop.f32.mrb[101].mxu0  ;;  %v7921_v56 = vmov 0.0  }
 0x1ba   : > { %v973_v53 = vpop.f32.mrb[102].mxu0  ;;  %v6948_v52 = vpop.f32.mrb[88].mxu1 }
 0x1bb   : > { %v1000_v29 = vadd.f32 %v973_v53, %v6793_v18  ;;  %v6942_v1 = vadd.f32 %v6712_v60, %v999_v16  ;;  %v5279_v15 = vpop.f32.mrb[103].mxu0  ;;  %v5456_v21 = vpop.f32.mrb[89].mxu1 }
 0x1bc   : > { %v6952_v61 = vpop.f32.mrb[90].mxu1 }
 0x1bd   : > { %v6945_v23 = vadd.f32 %v6716_v22, %v1000_v29  ;;  %5505 = vmatmul.mubr.msk.bf16.gmra.mrb[208].mxu0 %vm330_vm2, %v2387_v14  ;;  %v5457_v7 = vpop.f32.mrb[91].mxu1  ;;  %v2395_v22 = vsel %vm7918_vm4, %v2390_v19, %v2394_v32 }
 0x1be   : > { %5508 = vmatprep.mubr.msk.bf16.mxu0 %vm5980_vm1, %v7921_v56 }
 0x1c0   : > { %v978_v18 = vpop.f32.mrb[104].mxu0 }
 0x1c1   : > { %v1001_v60 = vadd.f32 %v978_v18, %v6805_v4  ;;  %v5282_v36 = vpop.f32.mrb[105].mxu0 }
 0x1c2   : > { %v981_v16 = vpop.f32.mrb[106].mxu0  ;;  %v6964_v28 = vpop.f32.mrb[92].mxu1 }
 0x1c3   : > { %v1002_v3 = vadd.f32 %v981_v16, %v6808_v55  ;;  %v6958_v53 = vadd.f32 %v6726_v48, %v1001_v60  ;;  %v5283_v14 = vpop.f32.mrb[107].mxu0  ;;  %v5460_v42 = vpop.f32.mrb[93].mxu1 }
 0x1c4   : > { %v6966_v29 = vpop.f32.mrb[94].mxu1 }
 0x1c5   : > { %v6961_v31 = vadd.f32 %v6730_v58, %v1002_v3  ;;  %5509 = vmatmul.mubr.msk.bf16.gmra.mrb[212].mxu0 %vm330_vm2, %v2395_v22  ;;  %v5461_v15 = vpop.f32.mrb[95].mxu1 }
 0x1c8   : > { %v1389_v4 = vpop.f32.mrb[108].mxu0 }
 0x1c9   : > { %v1460_v56 = vadd.f32 %v1389_v4, %v6823_v40  ;;  %v5326_v19 = vpop.f32.mrb[109].mxu0 }
 0x1ca   : > { %v1392_v55 = vpop.f32.mrb[110].mxu0  ;;  %v6976_v18 = vpop.f32.mrb[96].mxu1 }
 0x1cb   : > { %v1461_v48 = vadd.f32 %v1392_v55, %v6826_v35  ;;  %v6971_v32 = vadd.f32 %v6740_v43, %v1460_v56  ;;  %v5327_v58 = vpop.f32.mrb[111].mxu0  ;;  %v5464_v7 = vpop.f32.mrb[97].mxu1 }
 0x1cc   : > { %v6978_v60 = vpop.f32.mrb[98].mxu1 }
 0x1cd   : > { %v6974_v21 = vadd.f32 %v6744_v47, %v1461_v48  ;;  %v5465_v16 = vpop.f32.mrb[99].mxu1 }
 0x1d0   : > { %v1397_v36 = vpop.f32.mrb[112].mxu0 }
 0x1d1   : > { %v1462_v40 = vadd.f32 %v1397_v36, %v6840_v20  ;;  %v5330_v22 = vpop.f32.mrb[113].mxu0 }
 0x1d2   : > { %v1400_v3 = vpop.f32.mrb[114].mxu0  ;;  %v6988_v42 = vpop.f32.mrb[100].mxu1 }
 0x1d3   : > { %v1463_v35 = vadd.f32 %v1400_v3, %v6843_v59  ;;  %v6983_v43 = vadd.f32 %v6754_v24, %v1462_v40  ;;  %v5331_v14 = vpop.f32.mrb[115].mxu0  ;;  %v5468_v4 = vpop.f32.mrb[101].mxu1 }
 0x1d4   : > { %v6990_v15 = vpop.f32.mrb[102].mxu1 }
 0x1d5   : > { %v6986_v47 = vadd.f32 %v6758_v9, %v1463_v35  ;;  %v5469_v19 = vpop.f32.mrb[103].mxu1 }
 0x1d8   : > { %v1405_v56 = vpop.f32.mrb[116].mxu0 }
 0x1d9   : > { %v1464_v20 = vadd.f32 %v1405_v56, %v6857_v45  ;;  %v5334_v55 = vpop.f32.mrb[117].mxu0 }
 0x1da   : > { %v1408_v48 = vpop.f32.mrb[118].mxu0  ;;  %v7000_v7 = vpop.f32.mrb[104].mxu1 }
 0x1db   : > { %v1465_v59 = vadd.f32 %v1408_v48, %v6860_v8  ;;  %v6995_v24 = vadd.f32 %v6768_v12, %v1464_v20  ;;  %v5335_v58 = vpop.f32.mrb[119].mxu0  ;;  %v5472_v36 = vpop.f32.mrb[105].mxu1 }
 0x1dc   : > { %v7002_v16 = vpop.f32.mrb[106].mxu1 }
 0x1dd   : > { %v6998_v9 = vadd.f32 %v6772_v62, %v1465_v59  ;;  %v5473_v22 = vpop.f32.mrb[107].mxu1  ;;  %v7922_v59 = vld [vmem:[#allocation3_spill] sm:$0xff] }
 0x1de   : > { %v7923_v22 = vld [vmem:[#allocation4_spill] sm:$0xff] }
 0x1e0   : > { %v1413_v40 = vpop.f32.mrb[120].mxu0 }
 0x1e1   : > { %v1466_v45 = vadd.f32 %v1413_v40, %v6874_v17  ;;  %v5338_v3 = vpop.f32.mrb[121].mxu0 }
 0x1e2   : > { %v1416_v35 = vpop.f32.mrb[122].mxu0 }
 0x1e3   : > { %v1467_v8 = vadd.f32 %v1416_v35, %v6877_v30  ;;  %v7007_v12 = vadd.f32 %v6782_v11, %v1466_v45  ;;  %v5339_v14 = vpop.f32.mrb[123].mxu0 }
 0x1e5   : > { %v7010_v62 = vadd.f32 %v6786_v2, %v1467_v8 }
 0x1e8   : > { %v1421_v4 = vpop.f32.mrb[124].mxu0 }
 0x1e9   : > { %v1468_v56 = vadd.f32 %v1421_v4, %v6891_v54  ;;  %v5342_v19 = vpop.f32.mrb[125].mxu0 }
 0x1ea   : > { %v1424_v20 = vpop.f32.mrb[126].mxu0 }
 0x1eb   : > { %v1469_v55 = vadd.f32 %v1424_v20, %v6894_v5  ;;  %v7015_v17 = vadd.f32 %v6797_v25, %v1468_v56  ;;  %v5343_v48 = vpop.f32.mrb[127].mxu0 }
 0x1ed   : > { %v7018_v30 = vadd.f32 %v7922_v59, %v1469_v55 }
 0x1f0   : > { %v1429_v11 = vpop.f32.mrb[128].mxu0 }
 0x1f1   : > { %v1470_v58 = vadd.f32 %v1429_v11, %v6908_v27  ;;  %v5346_v36 = vpop.f32.mrb[129].mxu0 }
 0x1f2   : > { %v1432_v2 = vpop.f32.mrb[130].mxu0 }
 0x1f3   : > { %v1471_v40 = vadd.f32 %v1432_v2, %v6911_v38  ;;  %v7023_v54 = vadd.f32 %v7923_v22, %v1470_v58  ;;  %v5347_v45 = vpop.f32.mrb[131].mxu0 }
 0x1f5   : > { %v7026_v5 = vadd.f32 %v6817_v44, %v1471_v40 }
 0x1f8   : > { %v1437_v25 = vpop.f32.mrb[132].mxu0 }
 0x1f9   : > { %v1472_v3 = vadd.f32 %v1437_v25, %v6925_v37  ;;  %v5350_v35 = vpop.f32.mrb[133].mxu0 }
 0x1fa   : > { %v1440_v8 = vpop.f32.mrb[134].mxu0 }
 0x1fb   : > { %v1473_v14 = vadd.f32 %v1440_v8, %v6928_v6  ;;  %v7031_v27 = vadd.f32 %v6829_v51, %v1472_v3  ;;  %v5351_v4 = vpop.f32.mrb[135].mxu0 }
 0x1fd   : > { %v7034_v38 = vadd.f32 %v6834_v46, %v1473_v14 }
 0x200   : > { %v1445_v56 = vpop.f32.mrb[136].mxu0 }
 0x201   : > { %v1474_v19 = vadd.f32 %v1445_v56, %v6942_v1  ;;  %v5354_v20 = vpop.f32.mrb[137].mxu0 }
 0x202   : > { %v1448_v44 = vpop.f32.mrb[138].mxu0 }
 0x203   : > { %v1475_v55 = vadd.f32 %v1448_v44, %v6945_v23  ;;  %v7039_v37 = vadd.f32 %v6846_v39, %v1474_v19  ;;  %v5355_v48 = vpop.f32.mrb[139].mxu0 }
 0x205   : > { %v7042_v6 = vadd.f32 %v6851_v33, %v1475_v55 }
 0x208   : > { %v1453_v51 = vpop.f32.mrb[140].mxu0 }
 0x209   : > { %v1476_v59 = vadd.f32 %v1453_v51, %v6958_v53  ;;  %v5358_v11 = vpop.f32.mrb[141].mxu0 }
 0x20a   : > { %v1456_v46 = vpop.f32.mrb[142].mxu0 }
 0x20b   : > { %v1477_v58 = vadd.f32 %v1456_v46, %v6961_v31  ;;  %v7047_v1 = vadd.f32 %v6863_v26, %v1476_v59  ;;  %v5359_v36 = vpop.f32.mrb[143].mxu0 }
 0x20d   : > { %v7050_v23 = vadd.f32 %v6868_v50, %v1477_v58 }
 0x210   : > { %v1998_v39 = vpop.f32.mrb[144].mxu0 }
 0x211   : > { %v2069_v2 = vadd.f32 %v1998_v39, %v6971_v32  ;;  %v5402_v40 = vpop.f32.mrb[145].mxu0 }
 0x212   : > { %v2001_v33 = vpop.f32.mrb[146].mxu0 }
 0x213   : > { %v2070_v22 = vadd.f32 %v2001_v33, %v6974_v21  ;;  %v7055_v53 = vadd.f32 %v6880_v57, %v2069_v2  ;;  %v5403_v45 = vpop.f32.mrb[147].mxu0 }
 0x215   : > { %v7058_v31 = vadd.f32 %v6885_v0, %v2070_v22 }
 0x218   : > { %v2006_v26 = vpop.f32.mrb[148].mxu0 }
 0x219   : > { %v2071_v25 = vadd.f32 %v2006_v26, %v6983_v43  ;;  %v5406_v3 = vpop.f32.mrb[149].mxu0 }
 0x21a   : > { %v2009_v50 = vpop.f32.mrb[150].mxu0 }
 0x21b   : > { %v2072_v35 = vadd.f32 %v2009_v50, %v6986_v47  ;;  %v7063_v32 = vadd.f32 %v6897_v34, %v2071_v25  ;;  %v5407_v8 = vpop.f32.mrb[151].mxu0 }
 0x21d   : > { %v7066_v21 = vadd.f32 %v6902_v10, %v2072_v35 }
 0x220   : > { %v2014_v57 = vpop.f32.mrb[152].mxu0 }
 0x221   : > { %v2073_v14 = vadd.f32 %v2014_v57, %v6995_v24  ;;  %v5410_v4 = vpop.f32.mrb[153].mxu0 }
 0x222   : > { %v2017_v0 = vpop.f32.mrb[154].mxu0 }
 0x223   : > { %v2074_v56 = vadd.f32 %v2017_v0, %v6998_v9  ;;  %v7071_v43 = vadd.f32 %v6914_v63, %v2073_v14  ;;  %v5411_v19 = vpop.f32.mrb[155].mxu0  ;;  %v2592_v63 = vlaneseq }
 0x225   : > { %v7074_v47 = vadd.f32 %v6919_v41, %v2074_v56  ;;  %v7085_v46 = vshrl.u32 %v2592_v63, 7 }
 0x227   : > { %v2596_v25 = vadd.s32 24, %v7085_v46  ;;  %v7122_v56 = vadd.s32 32, %v7085_v46 }
 0x228   : > { %v2022_v34 = vpop.f32.mrb[156].mxu0 }
 0x229   : > { %v2075_v20 = vadd.f32 %v2022_v34, %v7007_v12  ;;  %v5414_v44 = vpop.f32.mrb[157].mxu0  ;;  %v7115_v8 = vmul.u32.u64.low 2863311531, %v2596_v25  ;;  %v7116_v57 = vmul.u32.u64.high 2863311531, %v2596_v25, %v7115_v8 }
 0x22a   : > { %v2025_v10 = vpop.f32.mrb[158].mxu0 }
 0x22b   : > { %v2076_v55 = vadd.f32 %v2025_v10, %v7010_v62  ;;  %v7079_v24 = vadd.f32 %v6931_v13, %v2075_v20  ;;  %v5415_v48 = vpop.f32.mrb[159].mxu0  ;;  %v7129_v20 = vadd.s32 40, %v7085_v46 }
 0x22c   : > { %v7136_v48 = vmul.u32.u64.low 2863311531, %v7122_v56  ;;  %v7137_v63 = vmul.u32.u64.high 2863311531, %v7122_v56, %v7136_v48 }
 0x22d   : > { %v7082_v9 = vadd.f32 %v6936_v49, %v2076_v55  ;;  %v2594_v49 = vadd.s32 8, %v7085_v46 }
 0x230   : > { %v2030_v51 = vpop.f32.mrb[160].mxu0 }
 0x231   : > { %v2077_v59 = vadd.f32 %v2030_v51, %v7015_v17  ;;  %v5418_v41 = vpop.f32.mrb[161].mxu0  ;;  %v7097_v17 = vmul.u32.u64.low 2863311531, %v7085_v46  ;;  %v7098_v40 = vmul.u32.u64.high 2863311531, %v7085_v46, %v7097_v17  ;;  %v2650_v51 = vshrl.u32 %v7116_v57, 4 }
 0x232   : > { %v2033_v11 = vpop.f32.mrb[162].mxu0 }
 0x233   : > { %v2078_v12 = vadd.f32 %v2033_v11, %v7018_v30  ;;  %v7089_v58 = vadd.f32 %v6948_v52, %v2077_v59  ;;  %v5419_v62 = vpop.f32.mrb[163].mxu0  ;;  %v7100_v22 = vmul.u32.u64.low 2863311531, %v2594_v49  ;;  %v7101_v30 = vmul.u32.u64.high 2863311531, %v2594_v49, %v7100_v22 }
 0x234   : > { %v2595_v52 = vadd.s32 16, %v7085_v46  ;;  %v7144_v59 = vmul.u32.u64.low 2863311531, %v7129_v20  ;;  %v7145_v41 = vmul.u32.u64.high 2863311531, %v7129_v20, %v7144_v59 }
 0x235   : > { %v7092_v13 = vadd.f32 %v6952_v61, %v2078_v12  ;;  %v2628_v0 = vshrl.u32 %v7101_v30, 4 }
 0x236   : > { %v7112_v3 = vmul.u32.u64.low 2863311531, %v2595_v52  ;;  %v7113_v50 = vmul.u32.u64.high 2863311531, %v2595_v52, %v7112_v3 }
 0x237   : > { %v2629_v10 = vmul.u32 24, %v2628_v0 }
 0x238   : > { %v2038_v36 = vpop.f32.mrb[164].mxu0  ;;  %v2639_v55 = vshrl.u32 %v7113_v50, 4 }
 0x239   : > { %v2079_v39 = vadd.f32 %v2038_v36, %v7023_v54  ;;  %v5422_v2 = vpop.f32.mrb[165].mxu0  ;;  %v2630_v36 = vsub.s32 %v2594_v49, %v2629_v10 }
 0x23a   : > { %v2041_v33 = vpop.f32.mrb[166].mxu0  ;;  %v7150_v2 = vadd.s32 56, %v7085_v46 }
 0x23b   : > { %v2080_v45 = vadd.f32 %v2041_v33, %v7026_v5  ;;  %v7106_v61 = vadd.f32 %v6964_v28, %v2079_v39  ;;  %v5423_v26 = vpop.f32.mrb[167].mxu0  ;;  %v2617_v5 = vshrl.u32 %v7098_v40, 4  ;;  %v2640_v39 = vmul.u32 24, %v2639_v55 }
 0x23c   : > { %v2661_v26 = vshrl.u32 %v7137_v63, 4  ;;  %vm2810_vm7 = vcmp.ne.s32.totalorder %v2630_v36, 0  ;;  %vm2828_vm8 = vcmp.lt.s32.totalorder %v2630_v36, 0 }
 0x23d   : > { %v7110_v54 = vadd.f32 %v6966_v29, %v2080_v45  ;;  %v2618_v44 = vmul.u32 24, %v2617_v5  ;;  %v2641_v49 = vsub.s32 %v2595_v52, %v2640_v39  ;;  %vm2846_vm10 = vmand %vm2828_vm8, %vm2810_vm7 }
 0x23e   : > { %v2662_v5 = vmul.u32 24, %v2661_v26 }
 0x23f   : > { %v2619_v12 = vsub.s32 %v7085_v46, %v2618_v44  ;;  %vm2811_vm11 = vcmp.ne.s32.totalorder %v2641_v49, 0  ;;  %vm2829_vm12 = vcmp.lt.s32.totalorder %v2641_v49, 0  ;;  %v2865_v48 = vadd.s32 24, %v2641_v49 }
 0x240   : > { %v2046_v35 = vpop.f32.mrb[168].mxu0  ;;  %vm7192_vm15 = vmand %vm2829_vm12, %vm2811_vm11 }
 0x241   : > { %v2081_v14 = vadd.f32 %v2046_v35, %v7031_v27  ;;  %v5426_v4 = vpop.f32.mrb[169].mxu0  ;;  %vm2809_vm5 = vcmp.ne.s32.totalorder %v2619_v12, 0  ;;  %vm2827_vm6 = vcmp.lt.s32.totalorder %v2619_v12, 0  ;;  %v2672_v35 = vshrl.u32 %v7145_v41, 4 }
 0x242   : > { %v2049_v28 = vpop.f32.mrb[170].mxu0  ;;  %vm7170_vm9 = vmand %vm2827_vm6, %vm2809_vm5  ;;  %v2863_v52 = vadd.s32 24, %v2619_v12 }
 0x243   : > { %v2082_v29 = vadd.f32 %v2049_v28, %v7034_v38  ;;  %v7126_v19 = vadd.f32 %v6976_v18, %v2081_v14  ;;  %v5427_v34 = vpop.f32.mrb[171].mxu0  ;;  %v7140_v38 = vadd.s32 48, %v7085_v46  ;;  %v2864_v14 = vadd.s32 24, %v2630_v36 }
 0x244   : > { %v2673_v34 = vmul.u32 24, %v2672_v35  ;;  %v2881_v10 = vsel %vm7170_vm9, %v2863_v52, %v2619_v12  ;;  %vm3053_vm9 = vcmask 261124  }
 0x245   : > { %v7132_v27 = vadd.f32 %v6978_v60, %v2082_v29  ;;  %v7157_v22 = vmul.u32.u64.low 2863311531, %v7140_v38  ;;  %v7158_v30 = vmul.u32.u64.high 2863311531, %v7140_v38, %v7157_v22  ;;  %v7180_v29 = vadd.s32 64, %v7085_v46 }
 0x246   : > { %v2882_v55 = vsel %vm2846_vm10, %v2864_v14, %v2630_v36  ;;  %vm2899_vm2 = vcmp.ge.s32.totalorder %v2881_v10, 1  ;;  %vm2917_vm5 = vcmp.le.s32.totalorder %v2881_v10, 16  ;;  %v2674_v12 = vsub.s32 %v7129_v20, %v2673_v34 }
 0x247   : > { %v7199_v59 = vmul.u32.u64.low 2863311531, %v7180_v29  ;;  %v7200_v41 = vmul.u32.u64.high 2863311531, %v7180_v29, %v7199_v59  ;;  %vm2900_vm6 = vcmp.ge.s32.totalorder %v2882_v55, 1  ;;  %vm2918_vm7 = vcmp.le.s32.totalorder %v2882_v55, 16  ;;  %vm7224_vm11 = vmand %vm2899_vm2, %vm2917_vm5 }
 0x248   : > { %v2054_v18 = vpop.f32.mrb[172].mxu0  ;;  %vm2814_vm12 = vcmp.ne.s32.totalorder %v2674_v12, 0 }
 0x249   : > { %v2083_v60 = vadd.f32 %v2054_v18, %v7039_v37  ;;  %v5430_v11 = vpop.f32.mrb[173].mxu0  ;;  %v2651_v37 = vmul.u32 24, %v2650_v51  ;;  %v2663_v18 = vsub.s32 %v7122_v56, %v2662_v5  ;;  %v2705_v14 = vshrl.u32 %v7200_v41, 4 }
 0x24a   : > { %v2057_v62 = vpop.f32.mrb[174].mxu0  ;;  %v7205_v11 = vld [vmem:[%s7913_s2] ss:$0 sm:$0xff] }
 0x24b   : > { %v2084_v17 = vadd.f32 %v2057_v62, %v7042_v6  ;;  %v7154_v40 = vadd.f32 %v6988_v42, %v2083_v60  ;;  %v5431_v33 = vpop.f32.mrb[175].mxu0  ;;  %v7165_v3 = vmul.u32.u64.low 2863311531, %v7150_v2  ;;  %v7166_v6 = vmul.u32.u64.high 2863311531, %v7150_v2, %v7165_v3 }
 0x24c   : > { %v2652_v50 = vsub.s32 %v2596_v25, %v2651_v37  ;;  %v2883_v33 = vsel %vm7192_vm15, %v2865_v48, %v2641_v49  ;;  %vm2813_vm8 = vcmp.ne.s32.totalorder %v2663_v18, 0  ;;  %vm2831_vm10 = vcmp.lt.s32.totalorder %v2663_v18, 0 }
 0x24d   : > { %v7161_v45 = vadd.f32 %v6990_v15, %v2084_v17  ;;  %v7229_v49 = vadd.s32 80, %v7085_v46  ;;  %vm2901_vm15 = vcmp.ge.s32.totalorder %v2883_v33, 1  ;;  %vm7244_vm5 = vmand %vm2831_vm10, %vm2813_vm8  ;;  %v2867_v35 = vadd.s32 24, %v2663_v18 }
 0x24e   : > { %vm2812_vm13 = vcmp.ne.s32.totalorder %v2652_v50, 0  ;;  %vm2830_vm14 = vcmp.lt.s32.totalorder %v2652_v50, 0  ;;  %v2866_v63 = vadd.s32 24, %v2652_v50  ;;  %vm3055_vm10 = vcmask 261120  }
 0x24f   : > { %vm2848_vm1 = vmand %vm2830_vm14, %vm2812_vm13  ;;  %vm2832_vm13 = vcmp.lt.s32.totalorder %v2674_v12, 0 }
 0x250   : > { %v2062_v42 = vpop.f32.mrb[176].mxu0  ;;  %v7215_v22 = vsel %vm2848_vm1, %v2866_v63, %v2652_v50  ;;  %vm7237_vm14 = vmand %vm2900_vm6, %vm2918_vm7  ;;  %vm2919_vm1 = vcmp.le.s32.totalorder %v2883_v33, 16  ;;  %v7304_v33 = vadd.s32 104, %v7085_v46 }
 0x251   : > { %v2085_v8 = vadd.f32 %v2062_v42, %v7047_v1  ;;  %v5434_v57 = vpop.f32.mrb[177].mxu0  ;;  %v2683_v1 = vshrl.u32 %v7158_v30, 4  ;;  %vm2902_vm2 = vcmp.ge.s32.totalorder %v7215_v22, 1  ;;  %vm7251_vm6 = vmand %vm2832_vm13, %vm2814_vm12  ;;  %vm2920_vm8 = vcmp.le.s32.totalorder %v7215_v22, 16 }
 0x252   : > { %v2065_v4 = vpop.f32.mrb[178].mxu0 }
 0x253   : > { %v2086_v28 = vadd.f32 %v2065_v4, %v7050_v23  ;;  %v7176_v25 = vadd.f32 %v7000_v7, %v2085_v8  ;;  %v5435_v0 = vpop.f32.mrb[179].mxu0  ;;  %v7188_v23 = vadd.s32 72, %v7085_v46  ;;  %v2684_v51 = vmul.u32 24, %v2683_v1 }
 0x254   : > { %v2868_v8 = vadd.s32 24, %v2674_v12 }
 0x255   : > { %v7183_v44 = vadd.f32 %v7002_v16, %v2086_v28  ;;  %v2694_v16 = vshrl.u32 %v7166_v6, 4  ;;  %v7210_v36 = vmul.u32.u64.low 2863311531, %v7188_v23  ;;  %v7211_v39 = vmul.u32.u64.high 2863311531, %v7188_v23, %v7210_v36 }
 0x256   : > { %v7220_v26 = vsub.s32 %v7140_v38, %v2684_v51  ;;  %v7232_v6 = vadd.s32 88, %v7085_v46  ;;  %v7259_v5 = vmul.u32.u64.low 2863311531, %v7229_v49  ;;  %v7260_v28 = vmul.u32.u64.high 2863311531, %v7229_v49, %v7259_v5 }
 0x257   : > { %v2695_v30 = vmul.u32 24, %v2694_v16  ;;  %v2716_v7 = vshrl.u32 %v7211_v39, 4  ;;  %v2885_v16 = vsel %vm7244_vm5, %v2867_v35, %v2663_v18  ;;  %v2886_v51 = vsel %vm7251_vm6, %v2868_v8, %v2674_v12 }
 0x258   : > { %v2460_v60 = vpop.f32.mrb[180].mxu0  ;;  %vm2815_vm7 = vcmp.ne.s32.totalorder %v7220_v26, 0  ;;  %vm2833_vm4 = vcmp.lt.s32.totalorder %v7220_v26, 0  ;;  %v7289_v18 = vadd.s32 96, %v7085_v46  ;;  %vm2903_vm5 = vcmp.ge.s32.totalorder %v2885_v16, 1 }
 0x259   : > { %v2531_v56 = vadd.f32 %v2460_v60, %v7055_v53  ;;  %v5478_v62 = vpop.f32.mrb[181].mxu0  ;;  %v2696_v57 = vsub.s32 %v7150_v2, %v2695_v30  ;;  %v7263_v2 = vmul.u32.u64.low 2863311531, %v7232_v6  ;;  %v7264_v0 = vmul.u32.u64.high 2863311531, %v7232_v6, %v7263_v2 }
 0x25a   : > { %v2463_v17 = vpop.f32.mrb[182].mxu0  ;;  %vm2921_vm6 = vcmp.le.s32.totalorder %v2885_v16, 16  ;;  %v2727_v3 = vshrl.u32 %v7260_v28, 4 }
 0x25b   : > { %v2556_v37 = vadd.f32 %v7205_v11, %v2531_v56  ;;  %v2532_v20 = vadd.f32 %v2463_v17, %v7058_v31  ;;  %v5479_v53 = vpop.f32.mrb[183].mxu0  ;;  %v2706_v56 = vmul.u32 24, %v2705_v14  ;;  %vm2816_vm12 = vcmp.ne.s32.totalorder %v2696_v57, 0 }
 0x25c   : > { %vm2834_vm13 = vcmp.lt.s32.totalorder %v2696_v57, 0  ;;  %v2717_v17 = vmul.u32 24, %v2716_v7  ;;  %v2870_v30 = vadd.s32 24, %v2696_v57 }
 0x25d   : > { %v2574_v31 = vmax.f32 %v2556_v37, 0.0  ;;  %v2557_v42 = vadd.f32 %v7205_v11, %v2532_v20  ;;  %v2707_v53 = vsub.s32 %v7180_v29, %v2706_v56 }
 0x25f   : > { %v2575_v15 = vmax.f32 %v2557_v42, 0.0  ;;  %v2989_v1 = vsel %vm7224_vm11, %v2574_v31, 0.0  ;;  %vm7284_vm11 = vmand %vm2833_vm4, %vm2815_vm7  ;;  %vm2904_vm7 = vcmp.ge.s32.totalorder %v2886_v51, 1  ;;  %v2738_v31 = vshrl.u32 %v7264_v0, 4 }
 0x260   : > { %v2468_v4 = vpop.f32.mrb[184].mxu0  ;;  %vm2938_vm4 = vmand %vm2902_vm2, %vm2920_vm8  ;;  %v7317_v42 = vmul.u32.u64.low 2863311531, %v7289_v18  ;;  %v7318_v38 = vmul.u32.u64.high 2863311531, %v7289_v18, %v7317_v42  ;;  %vm2817_vm2 = vcmp.ne.s32.totalorder %v2707_v53, 0  ;;  %vm2835_vm8 = vcmp.lt.s32.totalorder %v2707_v53, 0 }
 0x261   : > { %v2990_v34 = vsel %vm7237_vm14, %v2575_v15, 0.0  ;;  %v2533_v10 = vadd.f32 %v2468_v4, %v7063_v32  ;;  %v5482_v55 = vpop.f32.mrb[185].mxu0  ;;  %v2869_v32 = vadd.s32 24, %v7220_v26  ;;  %vm7293_vm14 = vmand %vm2901_vm15, %vm2919_vm1  ;;  %vm2922_vm15 = vcmp.le.s32.totalorder %v2886_v51, 16 }
 0x262   : > { %v3007_v48 = vpack.c.bf16 %v2990_v34, %v2989_v1  ;;  %v2471_v63 = vpop.f32.mrb[186].mxu0  ;;  %vm2852_vm1 = vmand %vm2834_vm13, %vm2816_vm12  ;;  %v2718_v15 = vsub.s32 %v7188_v23, %v2717_v17  ;;  %v7325_v4 = vmul.u32.u64.low 2863311531, %v7304_v33  ;;  %v7326_v5 = vmul.u32.u64.high 2863311531, %v7304_v33, %v7325_v4 }
 0x263   : > { %v2558_v59 = vadd.f32 %v7205_v11, %v2533_v10  ;;  %v2534_v41 = vadd.f32 %v2471_v63, %v7066_v21  ;;  %v5483_v60 = vpop.f32.mrb[187].mxu0  ;;  %v7309_v20 = vsel %vm7284_vm11, %v2869_v32, %v7220_v26  ;;  %v2888_v14 = vsel %vm2852_vm1, %v2870_v30, %v2696_v57  ;;  %vm7335_vm11 = vmand %vm2903_vm5, %vm2921_vm6 }
 0x264   : > { %v3026_v62 = vrot.slane %v3007_v48, 4  ;;  %v2728_v34 = vmul.u32 24, %v2727_v3  ;;  %v7331_v10 = vadd.s32 112, %v7085_v46  ;;  %vm2818_vm12 = vcmp.ne.s32.totalorder %v2718_v15, 0  ;;  %vm7352_vm6 = vmand %vm2835_vm8, %vm2817_vm2 }
 0x265   : > { %v2576_v21 = vmax.f32 %v2558_v59, 0.0  ;;  %v2559_v39 = vadd.f32 %v7205_v11, %v2534_v41  ;;  %vm2836_vm13 = vcmp.lt.s32.totalorder %v2718_v15, 0  ;;  %vm2923_vm1 = vcmp.le.s32.totalorder %v7309_v20, 16 }
 0x266   : > { %3054 = vst.msk [vmem:[#allocation2] sm:$0xf0] %vm3053_vm9, %v3026_v62  ;;  %vm2906_vm5 = vcmp.ge.s32.totalorder %v2888_v14, 1  ;;  %v2871_v16 = vadd.s32 24, %v2707_v53  ;;  %v2872_v51 = vadd.s32 24, %v2718_v15  ;;  %v2729_v60 = vsub.s32 %v7229_v49, %v2728_v34 }
 0x267   : > { %v2577_v37 = vmax.f32 %v2559_v39, 0.0  ;;  %v2991_v50 = vsel %vm7293_vm14, %v2576_v21, 0.0  ;;  %vm7343_vm14 = vmand %vm2904_vm7, %vm2922_vm15  ;;  %v2749_v17 = vshrl.u32 %v7318_v38, 4  ;;  %vm2924_vm15 = vcmp.le.s32.totalorder %v2888_v14, 16 }
 0x268   : > { %v2476_v22 = vpop.f32.mrb[188].mxu0  ;;  %vm7357_vm7 = vmand %vm2836_vm13, %vm2818_vm12  ;;  %v2760_v49 = vshrl.u32 %v7326_v5, 4  ;;  %v2889_v42 = vsel %vm7352_vm6, %v2871_v16, %v2707_v53  ;;  %vm2819_vm2 = vcmp.ne.s32.totalorder %v2729_v60, 0  ;;  %vm2837_vm8 = vcmp.lt.s32.totalorder %v2729_v60, 0 }
 0x269   : > { %v2992_v35 = vsel %vm2938_vm4, %v2577_v37, 0.0  ;;  %v2535_v26 = vadd.f32 %v2476_v22, %v7071_v43  ;;  %v5486_v8 = vpop.f32.mrb[189].mxu0  ;;  %v2739_v43 = vmul.u32 24, %v2738_v31  ;;  %vm2905_vm4 = vcmp.ge.s32.totalorder %v7309_v20, 1 }
 0x26a   : > { %v3008_v52 = vpack.c.bf16 %v2992_v35, %v2991_v50  ;;  %v2479_v29 = vpop.f32.mrb[190].mxu0  ;;  %vm7387_vm12 = vmand %vm2905_vm4, %vm2923_vm1  ;;  %v2750_v53 = vmul.u32 24, %v2749_v17  ;;  %vm2907_vm4 = vcmp.ge.s32.totalorder %v2889_v42, 1  ;;  %vm2925_vm1 = vcmp.le.s32.totalorder %v2889_v42, 16 }
 0x26b   : > { %v2560_v28 = vadd.f32 %v7205_v11, %v2535_v26  ;;  %v2536_v2 = vadd.f32 %v2479_v29, %v7074_v47  ;;  %v5487_v0 = vpop.f32.mrb[191].mxu0  ;;  %v2740_v32 = vsub.s32 %v7232_v6, %v2739_v43  ;;  %v7375_v6 = vadd.s32 120, %v7085_v46 }
 0x26c   : > { %v3027_v1 = vrot.slane %v3008_v52, 4  ;;  %v7405_v4 = vadd.s32 128, %v7085_v46 }
 0x26d   : > { %v2578_v23 = vmax.f32 %v2560_v28, 0.0  ;;  %v2561_v55 = vadd.f32 %v7205_v11, %v2536_v2  ;;  %vm2838_vm13 = vcmp.lt.s32.totalorder %v2740_v32, 0  ;;  %v2873_v28 = vadd.s32 24, %v2729_v60 }
 0x26e   : > { %v3028_v47 = vsel %vm358_vm0, %v3026_v62, %v3027_v1  ;;  %v7364_v56 = vmul.u32.u64.low 2863311531, %v7331_v10  ;;  %v7365_v62 = vmul.u32.u64.high 2863311531, %v7331_v10, %v7364_v56  ;;  %v2874_v2 = vadd.s32 24, %v2740_v32 }
 0x26f   : > { %3056 = vst.msk [vmem:[#allocation2 + $0x8] sm:$0xff] %vm3055_vm10, %v3028_v47  ;;  %v2579_v48 = vmax.f32 %v2561_v55, 0.0  ;;  %v2993_v36 = vsel %vm7335_vm11, %v2578_v23, 0.0  ;;  %vm2820_vm11 = vcmp.ne.s32.totalorder %v2740_v32, 0  ;;  %v2751_v23 = vsub.s32 %v7289_v18, %v2750_v53 }
 0x270   : > { %v2484_v59 = vpop.f32.mrb[192].mxu0  ;;  %v7400_v52 = vmul.u32.u64.low 2863311531, %v7375_v6  ;;  %v7401_v20 = vmul.u32.u64.high 2863311531, %v7375_v6, %v7400_v52  ;;  %v2771_v7 = vshrl.u32 %v7365_v62, 4 }
 0x271   : > { %v2994_v21 = vsel %vm7343_vm14, %v2579_v48, 0.0  ;;  %v2537_v12 = vadd.f32 %v2484_v59, %v7079_v24  ;;  %v5490_v39 = vpop.f32.mrb[193].mxu0  ;;  %v2890_v24 = vsel %vm7357_vm7, %v2872_v51, %v2718_v15  ;;  %vm7395_vm14 = vmand %vm2906_vm5, %vm2924_vm15  ;;  %v2761_v15 = vmul.u32 24, %v2760_v49 }
 0x272   : > { %v3009_v30 = vpack.c.bf16 %v2994_v21, %v2993_v36  ;;  %v2487_v37 = vpop.f32.mrb[194].mxu0  ;;  %vm2908_vm6 = vcmp.ge.s32.totalorder %v2890_v24, 1  ;;  %vm2926_vm7 = vcmp.le.s32.totalorder %v2890_v24, 16  ;;  %vm7409_vm5 = vmand %vm2837_vm8, %vm2819_vm2  ;;  %v7424_v48 = vadd.s32 136, %v7085_v46 }
 0x273   : > { %v2562_v22 = vadd.f32 %v7205_v11, %v2537_v12  ;;  %v2538_v3 = vadd.f32 %v2487_v37, %v7082_v9  ;;  %v5491_v31 = vpop.f32.mrb[195].mxu0  ;;  %vm2856_vm15 = vmand %vm2838_vm13, %vm2820_vm11  ;;  %v2762_v47 = vsub.s32 %v7304_v33, %v2761_v15  ;;  %v2891_v18 = vsel %vm7409_vm5, %v2873_v28, %v2729_v60 }
 0x274   : > { %v3029_v38 = vrot.slane %v3009_v30, 4  ;;  %v7429_v51 = vmul.u32.u64.low 2863311531, %v7405_v4  ;;  %v7430_v59 = vmul.u32.u64.high 2863311531, %v7405_v4, %v7429_v51  ;;  %v2892_v56 = vsel %vm2856_vm15, %v2874_v2, %v2740_v32  ;;  %vm7436_vm2 = vmand %vm2907_vm4, %vm2925_vm1 }
 0x275   : > { %v2580_v50 = vmax.f32 %v2562_v22, 0.0  ;;  %v2563_v9 = vadd.f32 %v7205_v11, %v2538_v3  ;;  %vm2821_vm8 = vcmp.ne.s32.totalorder %v2751_v23, 0  ;;  %vm2839_vm11 = vcmp.lt.s32.totalorder %v2751_v23, 0 }
 0x276   : > { %v3030_v26 = vsel %vm358_vm0, %v3027_v1, %v3029_v38  ;;  %v2782_v36 = vshrl.u32 %v7401_v20, 4  ;;  %v7446_v60 = vmul.u32.u64.low 2863311531, %v7424_v48  ;;  %v7447_v32 = vmul.u32.u64.high 2863311531, %v7424_v48, %v7446_v60 }
 0x277   : > { %3057 = vst.msk [vmem:[#allocation2 + $0x10] sm:$0xff] %vm3055_vm10, %v3030_v26  ;;  %v2581_v29 = vmax.f32 %v2563_v9, 0.0  ;;  %v2995_v0 = vsel %vm7387_vm12, %v2580_v50, 0.0  ;;  %vm2944_vm12 = vmand %vm2908_vm6, %vm2926_vm7  ;;  %vm2822_vm13 = vcmp.ne.s32.totalorder %v2762_v47, 0  ;;  %v2772_v12 = vmul.u32 24, %v2771_v7 }
 0x278   : > { %v2492_v5 = vpop.f32.mrb[196].mxu0  ;;  %vm2909_vm4 = vcmp.ge.s32.totalorder %v2891_v18, 1  ;;  %vm2927_vm1 = vcmp.le.s32.totalorder %v2891_v18, 16  ;;  %v2875_v17 = vadd.s32 24, %v2751_v23  ;;  %vm7455_vm6 = vmand %vm2839_vm11, %vm2821_vm8  ;;  %v2876_v31 = vadd.s32 24, %v2762_v47 }
 0x279   : > { %v2996_v1 = vsel %vm7395_vm14, %v2581_v29, 0.0  ;;  %v2539_v34 = vadd.f32 %v2492_v5, %v7089_v58  ;;  %v5494_v43 = vpop.f32.mrb[197].mxu0  ;;  %vm2840_vm14 = vcmp.lt.s32.totalorder %v2762_v47, 0  ;;  %vm2910_vm7 = vcmp.ge.s32.totalorder %v2892_v56, 1 }
 0x27a   : > { %v3010_v57 = vpack.c.bf16 %v2996_v1, %v2995_v0  ;;  %v2495_v55 = vpop.f32.mrb[198].mxu0  ;;  %vm2928_vm5 = vcmp.le.s32.totalorder %v2892_v56, 16  ;;  %vm2858_vm15 = vmand %vm2840_vm14, %vm2822_vm13  ;;  %v2773_v9 = vsub.s32 %v7331_v10, %v2772_v12  ;;  %v2793_v53 = vshrl.u32 %v7430_v59, 4 }
 0x27b   : > { %v2564_v63 = vadd.f32 %v7205_v11, %v2539_v34  ;;  %v2540_v16 = vadd.f32 %v2495_v55, %v7092_v13  ;;  %v5495_v58 = vpop.f32.mrb[199].mxu0  ;;  %v2893_v20 = vsel %vm7455_vm6, %v2875_v17, %v2751_v23  ;;  %v2894_v29 = vsel %vm2858_vm15, %v2876_v31, %v2762_v47  ;;  %vm2946_vm8 = vmand %vm2910_vm7, %vm2928_vm5 }
 0x27c   : > { %v3031_v41 = vrot.slane %v3010_v57, 4  ;;  %v2804_v5 = vshrl.u32 %v7447_v32, 4  ;;  %vm2823_vm11 = vcmp.ne.s32.totalorder %v2773_v9, 0  ;;  %v2794_v28 = vmul.u32 24, %v2793_v53 }
 0x27d   : > { %v2582_v33 = vmax.f32 %v2564_v63, 0.0  ;;  %v2565_v62 = vadd.f32 %v7205_v11, %v2540_v16  ;;  %vm2911_vm13 = vcmp.ge.s32.totalorder %v2893_v20, 1  ;;  %vm2929_vm14 = vcmp.le.s32.totalorder %v2893_v20, 16 }
 0x27e   : > { %v3032_v13 = vsel %vm358_vm0, %v3029_v38, %v3031_v41  ;;  %v2783_v38 = vmul.u32 24, %v2782_v36  ;;  %v2805_v55 = vmul.u32 24, %v2804_v5  ;;  %vm2930_vm5 = vcmp.le.s32.totalorder %v2894_v29, 16  ;;  %vm7488_vm15 = vmand %vm2911_vm13, %vm2929_vm14 }
 0x27f   : > { %3058 = vst.msk [vmem:[#allocation2 + $0x18] sm:$0xff] %vm3055_vm10, %v3032_v13  ;;  %v2583_v21 = vmax.f32 %v2565_v62, 0.0  ;;  %v2997_v30 = vsel %vm7436_vm2, %v2582_v33, 0.0  ;;  %vm7467_vm2 = vmand %vm2909_vm4, %vm2927_vm1  ;;  %vm2912_vm4 = vcmp.ge.s32.totalorder %v2894_v29, 1  ;;  %v2795_v16 = vsub.s32 %v7405_v4, %v2794_v28 }
 0x280   : > { %v2500_v39 = vpop.f32.mrb[200].mxu0  ;;  %v2784_v10 = vsub.s32 %v7375_v6, %v2783_v38  ;;  %v2877_v6 = vadd.s32 24, %v2773_v9 }
 0x281   : > { %v2998_v37 = vsel %vm2944_vm12, %v2583_v21, 0.0  ;;  %v2541_v49 = vadd.f32 %v2500_v39, %v7106_v61  ;;  %v5498_v22 = vpop.f32.mrb[201].mxu0  ;;  %vm2841_vm12 = vcmp.lt.s32.totalorder %v2773_v9, 0  ;;  %v2879_v32 = vadd.s32 24, %v2795_v16 }
 0x282   : > { %v3011_v42 = vpack.c.bf16 %v2998_v37, %v2997_v30  ;;  %v2503_v24 = vpop.f32.mrb[202].mxu0  ;;  %vm2859_vm1 = vmand %vm2841_vm12, %vm2823_vm11  ;;  %vm2824_vm6 = vcmp.ne.s32.totalorder %v2784_v10, 0  ;;  %vm2842_vm7 = vcmp.lt.s32.totalorder %v2784_v10, 0  ;;  %v2878_v51 = vadd.s32 24, %v2784_v10 }
 0x283   : > { %v2566_v50 = vadd.f32 %v7205_v11, %v2541_v49  ;;  %v2542_v61 = vadd.f32 %v2503_v24, %v7110_v54  ;;  %v5499_v35 = vpop.f32.mrb[203].mxu0  ;;  %v2895_v18 = vsel %vm2859_vm1, %v2877_v6, %v2773_v9  ;;  %vm2825_vm11 = vcmp.ne.s32.totalorder %v2795_v16, 0 }
 0x284   : > { %v3033_v26 = vrot.slane %v3011_v42, 4  ;;  %vm2843_vm12 = vcmp.lt.s32.totalorder %v2795_v16, 0  ;;  %vm2913_vm13 = vcmp.ge.s32.totalorder %v2895_v18, 1  ;;  %vm2931_vm14 = vcmp.le.s32.totalorder %v2895_v18, 16 }
 0x285   : > { %v2584_v8 = vmax.f32 %v2566_v50, 0.0  ;;  %v2567_v52 = vadd.f32 %v7205_v11, %v2542_v61 }
 0x286   : > { %v3034_v54 = vsel %vm358_vm0, %v3031_v41, %v3033_v26 }
 0x287   : > { %3059 = vst.msk [vmem:[#allocation2 + $0x20] sm:$0xff] %vm3055_vm10, %v3034_v54  ;;  %v2585_v14 = vmax.f32 %v2567_v52, 0.0  ;;  %v2999_v0 = vsel %vm7467_vm2, %v2584_v8, 0.0  ;;  %vm2860_vm2 = vmand %vm2842_vm7, %vm2824_vm6 }
 0x288   : > { %v2508_v2 = vpop.f32.mrb[204].mxu0  ;;  %v2896_v46 = vsel %vm2860_vm2, %v2878_v51, %v2784_v10 }
 0x289   : > { %v3000_v1 = vsel %vm2946_vm8, %v2585_v14, 0.0  ;;  %v2543_v34 = vadd.f32 %v2508_v2, %v7126_v19  ;;  %v5502_v43 = vpop.f32.mrb[205].mxu0  ;;  %vm2948_vm8 = vmand %vm2912_vm4, %vm2930_vm5  ;;  %vm2914_vm7 = vcmp.ge.s32.totalorder %v2896_v46, 1  ;;  %vm2932_vm5 = vcmp.le.s32.totalorder %v2896_v46, 16 }
 0x28a   : > { %v3012_v23 = vpack.c.bf16 %v3000_v1, %v2999_v0  ;;  %v2511_v57 = vpop.f32.mrb[206].mxu0  ;;  %vm2861_vm4 = vmand %vm2843_vm12, %vm2825_vm11 }
 0x28b   : > { %v2568_v47 = vadd.f32 %v7205_v11, %v2543_v34  ;;  %v2544_v7 = vadd.f32 %v2511_v57, %v7132_v27  ;;  %v5503_v63 = vpop.f32.mrb[207].mxu0  ;;  %v2806_v27 = vsub.s32 %v7424_v48, %v2805_v55  ;;  %v2897_v22 = vsel %vm2861_vm4, %v2879_v32, %v2795_v16 }
 0x28c   : > { %v3035_v58 = vrot.slane %v3012_v23, 4  ;;  %vm2915_vm11 = vcmp.ge.s32.totalorder %v2897_v22, 1  ;;  %vm2933_vm12 = vcmp.le.s32.totalorder %v2897_v22, 16 }
 0x28d   : > { %v2586_v59 = vmax.f32 %v2568_v47, 0.0  ;;  %v2569_v41 = vadd.f32 %v7205_v11, %v2544_v7  ;;  %vm2826_vm1 = vcmp.ne.s32.totalorder %v2806_v27, 0  ;;  %vm2844_vm6 = vcmp.lt.s32.totalorder %v2806_v27, 0  ;;  %vm2951_vm4 = vmand %vm2915_vm11, %vm2933_vm12 }
 0x28e   : > { %v3036_v56 = vsel %vm358_vm0, %v3033_v26, %v3035_v58  ;;  %v2880_v37 = vadd.s32 24, %v2806_v27  ;;  %vm2862_vm2 = vmand %vm2844_vm6, %vm2826_vm1  ;;  %vm3064_vm6 = vcmask 257024  }
 0x28f   : > { %3060 = vst.msk [vmem:[#allocation2 + $0x28] sm:$0xff] %vm3055_vm10, %v3036_v56  ;;  %v2587_v4 = vmax.f32 %v2569_v41, 0.0  ;;  %v3001_v62 = vsel %vm7488_vm15, %v2586_v59, 0.0  ;;  %vm2949_vm15 = vmand %vm2913_vm13, %vm2931_vm14 }
 0x290   : > { %v2516_v33 = vpop.f32.mrb[208].mxu0  ;;  %v2898_v42 = vsel %vm2862_vm2, %v2880_v37, %v2806_v27 }
 0x291   : > { %v3002_v13 = vsel %vm2948_vm8, %v2587_v4, 0.0  ;;  %v2545_v36 = vadd.f32 %v2516_v33, %v7154_v40  ;;  %v5506_v60 = vpop.f32.mrb[209].mxu0  ;;  %vm2950_vm8 = vmand %vm2914_vm7, %vm2932_vm5  ;;  %vm2916_vm13 = vcmp.ge.s32.totalorder %v2898_v42, 1  ;;  %vm2934_vm14 = vcmp.le.s32.totalorder %v2898_v42, 16 }
 0x292   : > { %v3013_v21 = vpack.c.bf16 %v3002_v13, %v3001_v62  ;;  %v2519_v12 = vpop.f32.mrb[210].mxu0  ;;  %vm2952_vm1 = vmand %vm2916_vm13, %vm2934_vm14 }
 0x293   : > { %v2570_v48 = vadd.f32 %v7205_v11, %v2545_v36  ;;  %v2546_v39 = vadd.f32 %v2519_v12, %v7161_v45  ;;  %v5507_v17 = vpop.f32.mrb[211].mxu0 }
 0x294   : > { %v3037_v30 = vrot.slane %v3013_v21, 4 }
 0x295   : > { %v2588_v40 = vmax.f32 %v2570_v48, 0.0  ;;  %v2571_v49 = vadd.f32 %v7205_v11, %v2546_v39 }
 0x296   : > { %v3038_v3 = vsel %vm358_vm0, %v3035_v58, %v3037_v30 }
 0x297   : > { %3061 = vst.msk [vmem:[#allocation2 + $0x30] sm:$0xff] %vm3055_vm10, %v3038_v3  ;;  %v2589_v31 = vmax.f32 %v2571_v49, 0.0  ;;  %v3003_v24 = vsel %vm2949_vm15, %v2588_v40, 0.0 }
 0x298   : > { %v2524_v45 = vpop.f32.mrb[212].mxu0 }
 0x299   : > { %v3004_v38 = vsel %vm2950_vm8, %v2589_v31, 0.0  ;;  %v2547_v50 = vadd.f32 %v2524_v45, %v7176_v25  ;;  %v5510_v61 = vpop.f32.mrb[213].mxu0 }
 0x29a   : > { %v3014_v35 = vpack.c.bf16 %v3004_v38, %v3003_v24  ;;  %v2527_v9 = vpop.f32.mrb[214].mxu0 }
 0x29b   : > { %v2572_v53 = vadd.f32 %v7205_v11, %v2547_v50  ;;  %v2548_v26 = vadd.f32 %v2527_v9, %v7183_v44  ;;  %v5511_v8 = vpop.f32.mrb[215].mxu0 }
 0x29c   : > { %v3039_v15 = vrot.slane %v3014_v35, 4 }
 0x29d   : > { %v2590_v52 = vmax.f32 %v2572_v53, 0.0  ;;  %v2573_v20 = vadd.f32 %v7205_v11, %v2548_v26  ;;  %v5981_v11 = vmov (!%p4899_p8), 0  }
 0x29e   : > { %v3040_v29 = vsel %vm358_vm0, %v3037_v30, %v3039_v15  ;;  %3070 = vst.msk [vmem:[#allocation2] sm:$0xf0] (!%p4899_p8), %vm3053_vm9, %v5981_v11 }
 0x29f   : > { %3062 = vst.msk [vmem:[#allocation2 + $0x38] sm:$0xff] %vm3055_vm10, %v3040_v29  ;;  %v3005_v25 = vsel %vm2951_vm4, %v2590_v52, 0.0  ;;  %v2591_v54 = vmax.f32 %v2573_v20, 0.0  ;;  %3071 = vst.msk [vmem:[#allocation2 + $0x8] sm:$0xff] (!%p4899_p8), %vm3055_vm10, %v5981_v11 }
 0x2a1   : > { %v3006_v10 = vsel %vm2952_vm1, %v2591_v54, 0.0  ;;  %3069 = sbr.rel (%p4899_p8) target bundleno = 680 (0x2a8), region = 44 }
 0x2a2   : > { %v3015_v5 = vpack.c.bf16 %v3006_v10, %v3005_v25 }
 0x2a4   : > { %v3041_v44 = vrot.slane %v3015_v5, 4 }
 0x2a6   : > { %v3042_v14 = vsel %vm358_vm0, %v3039_v15, %v3041_v44  ;;  %3065 = vst.msk [vmem:[#allocation2 + $0x48] sm:$0xf] %vm3064_vm6, %v3041_v44 }
 0x2a7   : > { %3063 = vst.msk [vmem:[#allocation2 + $0x40] sm:$0xff] %vm3055_vm10, %v3042_v14 }
 0x2a8 PF: > { %p4900_p9 = scmp.ne.s32.totalorder %s5961_s18, 3 }
 0x2a9   : > { %v5982_v28 = vmov (!%p4900_p9), 0  }
 0x2aa   : > { %3075 = sbr.rel (%p4900_p9) target bundleno = 689 (0x2b1), region = 48  ;;  %3076 = vst.msk [vmem:[#allocation2 + $0x40] sm:$0xff] (!%p4900_p9), %vm3055_vm10, %v5982_v28 }
 0x2ab   : > { %3077 = vst.msk [vmem:[#allocation2 + $0x48] sm:$0xf] (!%p4900_p9), %vm3064_vm6, %v5982_v28 }
 0x2b1 PF: > { %v5921_v2 = vld [vmem:[%s7914_s3 + $0x10] sm:$0xff]   ;;  %v5922_v0 = vld [vmem:[%s7914_s3 + $0x18] sm:$0xff]   ;;  %v7527_v1 = vld [vmem:[#allocation2 + $0x8] sm:$0xff]  ;;  %vm7962_vm9 = vsmask.f32 7424 }
 0x2b2   : > { %5512 = vmatprep.subr.bf16.mxu1 %v5921_v2  ;;  %v7529_v34 = vld [vmem:[#allocation2] sm:$0xf0]  ;;  %v7531_v43 = vld [vmem:[#allocation2 + $0x10] sm:$0xff]  ;;  %v3103_v23 = vrot.slane %v7527_v1, 4  ;;  %v7540_v7 = vld [vmem:[#allocation2 + $0x18] sm:$0xff]  ;;  %v3235_v18 = vshrl.u32 %v7527_v1, 16 }
 0x2b3   : > { %5513 = vmatpush3.bf16.msra.mxu1 %v5921_v2  ;;  %v3102_v6 = vrot.slane %v7529_v34, 4  ;;  %v3105_v57 = vrot.slane %v7531_v43, 4  ;;  %v5923_v47 = vld [vmem:[%s7914_s3] sm:$0xff]   ;;  %v3107_v16 = vrot.slane %v7540_v7, 4  ;;  %v5924_v19 = vld [vmem:[%s7914_s3 + $0x8] sm:$0xff]   ;;  %v3238_v56 = vshll.u32 %v7527_v1, 16  ;;  %vm7963_vm7 = vmmov %vm7962_vm9 }
 0x2b4   : > { %5514 = vmatprep.subr.bf16.mxu1 %v5922_v0  ;;  %v7545_v58 = vld [vmem:[#allocation2 + $0x20] sm:$0xff]  ;;  %v7550_v51 = vld [vmem:[#allocation2 + $0x28] sm:$0xff]  ;;  %v3237_v36 = vrot.slane %v3235_v18, 3  ;;  %v7577_v21 = vld [vmem:[#allocation2 + $0x30] sm:$0xf]  ;;  %v7580_v39 = vshrl.u32 %v7531_v43, 16 }
 0x2b5   : > { %v3104_v55 = vsel %vm358_vm0, %v3102_v6, %v3103_v23  ;;  %v3106_v63 = vsel %vm358_vm0, %v3103_v23, %v3105_v57  ;;  %v3108_v59 = vsel %vm358_vm0, %v3105_v57, %v3107_v16  ;;  %v3078_v41 = vld [vmem:[#allocation2] sm:$0xf8]  ;;  %v7558_v27 = vrot.slane %v7545_v58, 4  ;;  %v7620_v29 = vld [vmem:[#allocation2 + $0x30] sm:$0xff]  ;;  %v7628_v11 = vld [vmem:[#allocation2 + $0x38] sm:$0xff] }
 0x2b6   : > { %5516 = vmatprep.mubr.msk.bf16.mxu1 %vm3055_vm10, %v3104_v55  ;;  %v7561_v4 = vrot.slane %v7550_v51, 4  ;;  %v3227_v33 = vshrl.u32 %v3078_v41, 16  ;;  %v3230_v46 = vshll.u32 %v3078_v41, 16  ;;  %v5925_v62 = vld [vmem:[%s7914_s3 + $0x20] sm:$0xff]   ;;  %v3240_v60 = vrot.slane %v3238_v56, 4  ;;  %vm7964_vm5 = vmmov %vm7963_vm7 }
 0x2b7   : > { %5515 = vmatpush3.bf16.msra.mxu1 %v5922_v0  ;;  %v3110_v13 = vsel %vm358_vm0, %v3107_v16, %v7558_v27  ;;  %v7583_v17 = vshll.u32 %v7531_v43, 16  ;;  %v3113_v30 = vrot.slane %v7577_v21, 4  ;;  %v7590_v49 = vshrl.u32 %v7540_v7, 16  ;;  %v5926_v0 = vld [vmem:[%s7914_s3 + $0x28] sm:$0xff]   ;;  %vm7965_vm8 = vmmov %vm7964_vm5 }
 0x2b8   : > { %5528 = vmatprep.subr.bf16.mxu1 %v5923_v47  ;;  %v7575_v32 = vsel %vm358_vm0, %v7558_v27, %v7561_v4  ;;  %v3229_v12 = vrot.slane %v3227_v33, 3  ;;  %v3232_v48 = vrot.slane %v3230_v46, 4  ;;  %v3241_v40 = vor.u32 %v3240_v60, %v3237_v36  ;;  %vm7966_vm11 = vmmov %vm7964_vm5 }
 0x2b9   : > { %v7593_v22 = vshll.u32 %v7540_v7, 16  ;;  %v3246_v3 = vrot.slane %v7580_v39, 3  ;;  %v3249_v31 = vrot.slane %v7583_v17, 4  ;;  %v3114_v45 = vsel %vm358_vm0, %v7561_v4, %v3113_v30  ;;  %vm7967_vm12 = vmmov %vm7964_vm5 }
 0x2ba   : > { %5517 = vmatmul.mubr.msk.bf16.vlgmr.msra.gmra.mrb[108].mxu1 %vm3055_vm10, %v3106_v63  ;;  %v3233_v37 = vor.u32 %v3232_v48, %v3229_v12  ;;  %v3255_v24 = vrot.slane %v7590_v49, 3  ;;  %v7603_v50 = vshrl.u32 %v7545_v58, 16  ;;  %v7607_v35 = vshll.u32 %v7545_v58, 16  ;;  %v5927_v12 = vld [vmem:[%s7914_s3 + $0x30] sm:$0xff]  }
 0x2bb   : > { %5529 = vmatpush3.bf16.msra.mxu1 %v5923_v47  ;;  %5520 = vmatprep.mubr.msk.bf16.mxu1 %vm3055_vm10, %v3108_v59  ;;  %v3258_v38 = vrot.slane %v7593_v22, 4  ;;  %v3250_v61 = vor.u32 %v3249_v31, %v3246_v3  ;;  %v7611_v9 = vshrl.u32 %v7550_v51, 16  ;;  %v7614_v53 = vshll.u32 %v7550_v51, 16 }
 0x2bc   : > { %5530 = vmatprep.subr.bf16.mxu1 %v5924_v19  ;;  %v3242_v42 = vsel %vm479_vm3, %v3233_v37, %v3241_v40  ;;  %v3407_v26 = vshrl.u32 %v7529_v34, 16  ;;  %v3264_v15 = vrot.slane %v7603_v50, 3  ;;  %v3893_v52 = vrot.slane %v7583_v17, 1 }
 0x2bd   : > { %v3259_v8 = vor.u32 %v3258_v38, %v3255_v24  ;;  %v3251_v20 = vsel %vm479_vm3, %v3241_v40, %v3250_v61  ;;  %v3898_v25 = vrot.slane %v7593_v22, 1  ;;  %v3906_v54 = vrot.slane %v7607_v35, 1 }
 0x2be   : > { %v3914_v10 = vrot.slane %v7614_v53, 1  ;;  %v3267_v5 = vrot.slane %v7607_v35, 4  ;;  %v3273_v44 = vrot.slane %v7611_v9, 3  ;;  %v3276_v14 = vrot.slane %v7614_v53, 4 }
 0x2bf   : > { %5531 = vmatpush3.bf16.msra.mxu1 %v5924_v19  ;;  %v3894_v28 = vor.u32 %v3893_v52, %v7580_v39  ;;  %v3260_v2 = vsel %vm479_vm3, %v3250_v61, %v3259_v8  ;;  %v3902_v6 = vor.u32 %v3898_v25, %v7590_v49  ;;  %v3910_v23 = vor.u32 %v3906_v54, %v7603_v50 }
 0x2c0   : > { %5544 = vmatprep.subr.bf16.mxu1 %v5925_v62  ;;  %v7638_v57 = vor.u32 %v3914_v10, %v7611_v9  ;;  %v3410_v55 = vshll.u32 %v7529_v34, 16  ;;  %v7642_v47 = vshrl.u32 %v7620_v29, 16  ;;  %v7645_v63 = vshll.u32 %v7620_v29, 16 }
 0x2c1   : > { %v7648_v16 = vsel %vm7962_vm9, %v3894_v28, %v3898_v25  ;;  %v7652_v19 = vshrl.u32 %v7628_v11, 16  ;;  %v7655_v59 = vshll.u32 %v7628_v11, 16  ;;  %v7658_v41 = vsel %vm7963_vm7, %v3902_v6, %v3906_v54  ;;  %v5928_v6 = vld [vmem:[%s7914_s3 + $0x38] sm:$0xff]  }
 0x2c2   : > { %5521 = vmatmul.mubr.msk.bf16.gmra.mrb[112].mxu1 %vm3055_vm10, %v3110_v13  ;;  %v7661_v34 = vsel %vm7964_vm5, %v3910_v23, %v3914_v10  ;;  %v7664_v33 = vor.u32 %v3267_v5, %v3264_v15  ;;  %v3280_v46 = vshrl.u32 %v7577_v21, 16  ;;  %v3283_v13 = vshll.u32 %v7577_v21, 16 }
 0x2c3   : > { %5524 = vmatprep.mubr.msk.bf16.mxu1 %vm3055_vm10, %v7575_v32  ;;  %v4104_v36 = vrot.slane %v7642_v47, 3  ;;  %v3277_v60 = vor.u32 %v3276_v14, %v3273_v44  ;;  %v4107_v48 = vrot.slane %v7645_v63, 4  ;;  %v4116_v30 = vrot.slane %v7655_v59, 4 }
 0x2c4   : > { %v3409_v37 = vrot.slane %v3407_v26, 4  ;;  %v3412_v40 = vrot.slane %v3410_v55, 5  ;;  %v3269_v21 = vsel %vm479_vm3, %v3259_v8, %v7664_v33  ;;  %v3414_v24 = vrot.slane %v3235_v18, 4 }
 0x2c5   : > { %v4108_v3 = vor.u32 %v4107_v48, %v4104_v36  ;;  %v7683_v38 = vsel %vm479_vm3, %v7664_v33, %v3277_v60  ;;  %v3415_v61 = vrot.slane %v3238_v56, 5  ;;  %vm3405_vm15 = vsmask.f32 3328 }
 0x2c6   : > { %v3413_v15 = vor.u32 %v3412_v40, %v3409_v37  ;;  %v3418_v1 = vrot.slane %v7580_v39, 4  ;;  %v3419_v56 = vrot.slane %v7583_v17, 5  ;;  %v3422_v54 = vrot.slane %v7590_v49, 4 }
 0x2c7   : > { %v7688_v26 = vsel %vm479_vm3, %v3277_v60, %v4108_v3  ;;  %v3416_v52 = vor.u32 %v3415_v61, %v3414_v24  ;;  %v3423_v10 = vrot.slane %v7593_v22, 5  ;;  %v3426_v28 = vrot.slane %v7603_v50, 4 }
 0x2c8   : > { %v3420_v5 = vor.u32 %v3419_v56, %v3418_v1  ;;  %v3430_v23 = vrot.slane %v7611_v9, 4  ;;  %v3431_v55 = vrot.slane %v7614_v53, 5  ;;  %vm3578_vm2 = vsmask.f32 256 }
 0x2c9   : > { %v3417_v25 = vsel %vm3405_vm15, %v3413_v15, %v3416_v52  ;;  %v3424_v44 = vor.u32 %v3423_v10, %v3422_v54  ;;  %v3594_v15 = vrot.slane %v7590_v49, 7  ;;  %v3602_v1 = vrot.slane %v7603_v50, 7 }
 0x2ca   : > { %5525 = vmatmul.mubr.msk.bf16.gmra.mrb[116].mxu1 %vm3055_vm10, %v3114_v45  ;;  %v3282_v45 = vrot.slane %v3280_v46, 3  ;;  %v3421_v14 = vsel %vm3405_vm15, %v3416_v52, %v3420_v5  ;;  %v3399_v46 = vld [vmem:[#allocation2 + $0x30] sm:$0x1f]  ;;  %v3432_v48 = vor.u32 %v3431_v55, %v3430_v23  ;;  %v4432_v56 = vrot.slane %v7645_v63, 5 }
 0x2cb   : > { %5532 = vmatprep.mubr.msk.bf16.mxu1 %vm3055_vm10, %v3242_v42  ;;  %v3285_v42 = vrot.slane %v3283_v13, 4  ;;  %v3435_v36 = vshrl.u32 %v3399_v46, 16  ;;  %v3605_v49 = vor.u32 %v3602_v1, %v7607_v35  ;;  %v3626_v23 = vrot.slane %v7652_v19, 7 }
 0x2cd   : > { %v3286_v18 = vor.u32 %v3285_v42, %v3282_v45  ;;  %v3437_v40 = vrot.slane %v3435_v36, 4  ;;  %v3586_v45 = vrot.slane %v7580_v39, 7  ;;  %v4431_v39 = vrot.slane %v7642_v47, 4  ;;  %v5932_v36 = vld [vmem:[%s7914_s3 + $0x58] sm:$0xff]  }
 0x2cf   : > { %v3589_v61 = vor.u32 %v3586_v45, %v7583_v17  ;;  %v4435_v17 = vrot.slane %v7652_v19, 4  ;;  %v4433_v54 = vor.u32 %v4432_v56, %v4431_v39  ;;  %v5937_v56 = vld [vmem:[%s7914_s3 + $0x80] sm:$0xff]  }
 0x2d1   : > { %v7747_v50 = vsel %vm3405_vm15, %v3432_v48, %v4433_v54 }
 0x2d2   : > { %5533 = vmatmul.mubr.msk.bf16.vlgmr.msra.gmra.mrb[108].mxu1 %vm3055_vm10, %v3251_v20  ;;  %v3287_v20 = vsel %vm479_vm3, %v3277_v60, %v3286_v18  ;;  %v3438_v60 = vshll.u32 %v3399_v46, 16 }
 0x2d3   : > { %5545 = vmatpush3.bf16.msra.mxu1 %v5925_v62  ;;  %5536 = vmatprep.mubr.msk.bf16.mxu1 %vm3055_vm10, %v3260_v2  ;;  %v4113_v62 = vrot.slane %v7652_v19, 3  ;;  %v3427_v2 = vrot.slane %v7607_v35, 5  ;;  %v5930_v35 = vld [vmem:[%s7914_s3 + $0x48] sm:$0xff]  }
 0x2d4   : > { %5546 = vmatprep.subr.bf16.mxu1 %v5926_v0 }
 0x2d5   : > { %v7675_v31 = vor.u32 %v4116_v30, %v4113_v62  ;;  %v7716_v13 = vor.u32 %v3427_v2, %v3426_v28  ;;  %v5929_v62 = vld [vmem:[%s7914_s3 + $0x40] sm:$0xff]   ;;  %v3566_v30 = vld [vmem:[#allocation2 + $0x8] sm:$0x80]  ;;  %v3618_v28 = vrot.slane %v7642_v47, 7 }
 0x2d7   : > { %5547 = vmatpush3.bf16.msra.mxu1 %v5926_v0  ;;  %v7692_v8 = vsel %vm479_vm3, %v4108_v3, %v7675_v31  ;;  %v3425_v0 = vsel %vm3405_vm15, %v3420_v5, %v3424_v44  ;;  %v3429_v37 = vsel %vm3405_vm15, %v3424_v44, %v7716_v13  ;;  %v3440_v3 = vrot.slane %v3438_v60, 5  ;;  %v5933_v60 = vld [vmem:[%s7914_s3 + $0x60] sm:$0xff]  }
 0x2d8   : > { %5560 = vmatprep.subr.bf16.mxu1 %v5927_v12  ;;  %v3610_v44 = vrot.slane %v7611_v9, 7  ;;  %v3621_v9 = vor.u32 %v7645_v63, %v3618_v28 }
 0x2d9   : > { %v3441_v42 = vor.u32 %v3440_v3, %v3437_v40 }
 0x2da   : > { %5537 = vmatmul.mubr.msk.bf16.gmra.mrb[112].mxu1 %vm3055_vm10, %v3269_v21  ;;  %v3580_v21 = vshrl.u32 %v3566_v30, 16  ;;  %v3613_v2 = vor.u32 %v3610_v44, %v7614_v53  ;;  %v3622_v55 = vsel %vm3578_vm2, %v3610_v44, %v3621_v9  ;;  %v3629_v53 = vor.u32 %v7655_v59, %v3626_v23 }
 0x2db   : > { %5540 = vmatprep.mubr.msk.bf16.mxu1 %vm3055_vm10, %v7683_v38  ;;  %v3442_v18 = vsel %vm3405_vm15, %v3432_v48, %v3441_v42  ;;  %v4068_v42 = vld [vmem:[#allocation2 + $0x40] sm:$0xff] }
 0x2dc   : > { %v3582_v24 = vrot.slane %v3580_v21, 7  ;;  %v3630_v46 = vsel %vm3578_vm2, %v3618_v28, %v3629_v53  ;;  %v4282_v28 = vrot.slane %v4068_v42, 4  ;;  %v4409_v53 = vld [vmem:[#allocation2 + $0x48] sm:$0x1f] }
 0x2de   : > { %v3590_v52 = vsel %vm3578_vm2, %v3582_v24, %v3589_v61  ;;  %v4120_v24 = vshrl.u32 %v4068_v42, 16  ;;  %v4123_v61 = vshll.u32 %v4068_v42, 16 }
 0x2e0   : > { %v4439_v23 = vrot.slane %v4120_v24, 4 }
 0x2e2   : > { %5541 = vmatmul.mubr.msk.bf16.gmra.mrb[116].mxu1 %vm3055_vm10, %v3287_v20  ;;  %v3597_v20 = vor.u32 %v3594_v15, %v7593_v22  ;;  %v3606_v22 = vsel %vm3578_vm2, %v3594_v15, %v3605_v49  ;;  %v4122_v15 = vrot.slane %v4120_v24, 3 }
 0x2e3   : > { %5548 = vmatprep.mubr.msk.bf16.mxu1 %vm3055_vm10, %v3417_v25  ;;  %v4436_v25 = vrot.slane %v7655_v59, 5 }
 0x2e4   : > { %v3598_v5 = vsel %vm3578_vm2, %v3586_v45, %v3597_v20 }
 0x2e5   : > { %v7744_v10 = vor.u32 %v4436_v25, %v4435_v17 }
 0x2ea   : > { %5549 = vmatmul.mubr.msk.bf16.vlgmr.msra.gmra.mrb[108].mxu1 %vm3055_vm10, %v3421_v14  ;;  %v7753_v14 = vsel %vm3405_vm15, %v4433_v54, %v7744_v10 }
 0x2eb   : > { %5561 = vmatpush3.bf16.msra.mxu1 %v5927_v12  ;;  %5552 = vmatprep.mubr.msk.bf16.mxu1 %vm3055_vm10, %v3425_v0  ;;  %v7725_v12 = vsel %vm3405_vm15, %v7716_v13, %v3432_v48  ;;  %v5931_v0 = vld [vmem:[%s7914_s3 + $0x50] sm:$0xff]   ;;  %v3930_v48 = vrot.slane %v7655_v59, 1 }
 0x2ec   : > { %5562 = vmatprep.subr.bf16.mxu1 %v5928_v6 }
 0x2ef   : > { %5563 = vmatpush3.bf16.msra.mxu1 %v5928_v6  ;;  %v3614_v6 = vsel %vm3578_vm2, %v3602_v1, %v3613_v2 }
 0x2f0   : > { %5576 = vmatprep.subr.bf16.mxu1 %v5929_v62 }
 0x2f2   : > { %5553 = vmatmul.mubr.msk.bf16.gmra.mrb[112].mxu1 %vm3055_vm10, %v3429_v37  ;;  %v5935_v37 = vld [vmem:[%s7914_s3 + $0x70] sm:$0xff]  }
 0x2f3   : > { %5556 = vmatprep.mubr.msk.bf16.mxu1 %vm3055_vm10, %v7725_v12 }
 0x2fa   : > { %5557 = vmatmul.mubr.msk.bf16.gmra.mrb[116].mxu1 %vm3055_vm10, %v3442_v18  ;;  %v5936_v18 = vld [vmem:[%s7914_s3 + $0x78] sm:$0xff]  }
 0x2fb   : > { %5564 = vmatprep.mubr.msk.bf16.mxu1 %vm3055_vm10, %v3590_v52  ;;  %v4069_v52 = vld [vmem:[#allocation2 + $0x48] sm:$0xf] }
 0x2fc   : > { %v4132_v1 = vshll.u32 %v4069_v52, 16 }
 0x2fe   : > { %v4134_v17 = vrot.slane %v4132_v1, 4 }
 0x302   : > { %5565 = vmatmul.mubr.msk.bf16.vlgmr.msra.gmra.mrb[108].mxu1 %vm3055_vm10, %v3598_v5 }
 0x303   : > { %5577 = vmatpush3.bf16.msra.mxu1 %v5929_v62  ;;  %5568 = vmatprep.mubr.msk.bf16.mxu1 %vm3055_vm10, %v3606_v22 }
 0x304   : > { %5578 = vmatprep.subr.bf16.mxu1 %v5930_v35 }
 0x307   : > { %5579 = vmatpush3.bf16.msra.mxu1 %v5930_v35 }
 0x308   : > { %5592 = vmatprep.subr.bf16.mxu1 %v5931_v0 }
 0x30a   : > { %5569 = vmatmul.mubr.msk.bf16.gmra.mrb[112].mxu1 %vm3055_vm10, %v3614_v6 }
 0x30b   : > { %5572 = vmatprep.mubr.msk.bf16.mxu1 %vm3055_vm10, %v3622_v55  ;;  %v4440_v55 = vrot.slane %v4123_v61, 5 }
 0x312   : > { %5573 = vmatmul.mubr.msk.bf16.gmra.mrb[116].mxu1 %vm3055_vm10, %v3630_v46  ;;  %v4444_v46 = vshrl.u32 %v4409_v53, 16 }
 0x313   : > { %5580 = vmatprep.mubr.msk.bf16.mxu1 %vm3055_vm10, %v7531_v43  ;;  %v5934_v43 = vld [vmem:[%s7914_s3 + $0x68] sm:$0xff]  }
 0x31a   : > { %5581 = vmatmul.mubr.msk.bf16.vlgmr.msra.gmra.mrb[108].mxu1 %vm3055_vm10, %v7540_v7  ;;  %v4063_v7 = vld [vmem:[#allocation2 + $0x18] sm:$0xf8] }
 0x31b   : > { %5593 = vmatpush3.bf16.msra.mxu1 %v5931_v0  ;;  %5584 = vmatprep.mubr.msk.bf16.mxu1 %vm3055_vm10, %v7545_v58  ;;  %v3922_v58 = vrot.slane %v7645_v63, 1  ;;  %v4076_v62 = vshrl.u32 %v4063_v7, 16  ;;  %v4079_v30 = vshll.u32 %v4063_v7, 16 }
 0x31c   : > { %5594 = vmatprep.subr.bf16.mxu1 %v5932_v36 }
 0x31d   : > { %v4081_v3 = vrot.slane %v4079_v30, 4 }
 0x31f   : > { %5595 = vmatpush3.bf16.msra.mxu1 %v5932_v36  ;;  %v4447_v36 = vshll.u32 %v4409_v53, 16 }
 0x320   : > { %5608 = vmatprep.subr.bf16.mxu1 %v5933_v60 }
 0x321   : > { %v4449_v7 = vrot.slane %v4447_v36, 5 }
 0x322   : > { %5585 = vmatmul.mubr.msk.bf16.gmra.mrb[112].mxu1 %vm3055_vm10, %v7550_v51  ;;  %v3926_v51 = vor.u32 %v3922_v58, %v7642_v47  ;;  %v3934_v47 = vor.u32 %v3930_v48, %v7652_v19  ;;  %v4125_v19 = vrot.slane %v4123_v61, 4 }
 0x323   : > { %5588 = vmatprep.mubr.msk.bf16.mxu1 %vm3055_vm10, %v7620_v29 }
 0x324   : > { %v3931_v40 = vsel %vm7966_vm11, %v3926_v51, %v3930_v48  ;;  %v4126_v39 = vor.u32 %v4125_v19, %v4122_v15 }
 0x326   : > { %v4127_v25 = vsel %vm479_vm3, %v7675_v31, %v4126_v39  ;;  %v4278_v31 = vrot.slane %v7620_v29, 4 }
 0x328   : > { %v4279_v44 = vsel %vm358_vm0, %v7561_v4, %v4278_v31 }
 0x32a   : > { %5589 = vmatmul.mubr.msk.bf16.gmra.mrb[116].mxu1 %vm3055_vm10, %v7628_v11 }
 0x32b   : > { %5596 = vmatprep.mubr.msk.bf16.mxu1 %vm3055_vm10, %v7648_v16  ;;  %v3882_v16 = vld [vmem:[#allocation2 + $0x40] sm:$0x1] }
 0x32c   : > { %v3936_v63 = vshll.u32 %v3882_v16, 16 }
 0x32e   : > { %v3938_v59 = vrot.slane %v3936_v63, 1 }
 0x330   : > { %v3939_v45 = vsel %vm7967_vm12, %v3934_v47, %v3938_v59 }
 0x332   : > { %5597 = vmatmul.mubr.msk.bf16.vlgmr.msra.gmra.mrb[108].mxu1 %vm3055_vm10, %v7658_v41  ;;  %v3923_v41 = vsel %vm7965_vm8, %v7638_v57, %v3922_v58 }
 0x333   : > { %5609 = vmatpush3.bf16.msra.mxu1 %v5933_v60  ;;  %5600 = vmatprep.mubr.msk.bf16.mxu1 %vm3055_vm10, %v7661_v34  ;;  %v4078_v34 = vrot.slane %v4076_v62, 3  ;;  %v4441_v60 = vor.u32 %v4440_v55, %v4439_v23 }
 0x334   : > { %5610 = vmatprep.subr.bf16.mxu1 %v5934_v43 }
 0x335   : > { %v4082_v21 = vor.u32 %v4081_v3, %v4078_v34 }
 0x337   : > { %5611 = vmatpush3.bf16.msra.mxu1 %v5934_v43  ;;  %v4091_v57 = vsel %vm479_vm3, %v4082_v21, %v7664_v33  ;;  %v4129_v33 = vshrl.u32 %v4069_v52, 16  ;;  %v4446_v43 = vrot.slane %v4444_v46, 4 }
 0x338   : > { %5624 = vmatprep.subr.bf16.mxu1 %v5935_v37 }
 0x339   : > { %v4131_v20 = vrot.slane %v4129_v33, 3  ;;  %v4450_v58 = vor.u32 %v4449_v7, %v4446_v43 }
 0x33a   : > { %5601 = vmatmul.mubr.msk.bf16.gmra.mrb[112].mxu1 %vm3055_vm10, %v3923_v41 }
 0x33b   : > { %5604 = vmatprep.mubr.msk.bf16.mxu1 %vm3055_vm10, %v3931_v40 }
 0x342   : > { %5605 = vmatmul.mubr.msk.bf16.gmra.mrb[116].mxu1 %vm3055_vm10, %v3939_v45 }
 0x343   : > { %5612 = vmatprep.mubr.msk.bf16.mxu1 %vm3055_vm10, %v4091_v57 }
 0x34a   : > { %5613 = vmatmul.mubr.msk.bf16.vlgmr.msra.gmra.mrb[108].mxu1 %vm3055_vm10, %v7683_v38  ;;  %v4260_v38 = vld [vmem:[#allocation2 + $0x18] sm:$0xf0] }
 0x34b   : > { %5625 = vmatpush3.bf16.msra.mxu1 %v5935_v37  ;;  %5616 = vmatprep.mubr.msk.bf16.mxu1 %vm3055_vm10, %v7688_v26  ;;  %v4135_v26 = vor.u32 %v4134_v17, %v4131_v20  ;;  %v4273_v49 = vrot.slane %v4260_v38, 4  ;;  %v4416_v22 = vshrl.u32 %v4260_v38, 16  ;;  %v4419_v35 = vshll.u32 %v4260_v38, 16 }
 0x34c   : > { %5626 = vmatprep.subr.bf16.mxu1 %v5936_v18 }
 0x34d   : > { %v4136_v54 = vsel %vm479_vm3, %v4126_v39, %v4135_v26  ;;  %v4275_v5 = vsel %vm358_vm0, %v4273_v49, %v7558_v27  ;;  %v4280_v27 = vrot.slane %v7628_v11, 4  ;;  %v4418_v2 = vrot.slane %v4416_v22, 4 }
 0x34e   : > { %v4421_v9 = vrot.slane %v4419_v35, 5  ;;  %vm4606_vm3 = vcmask 261121  }
 0x34f   : > { %5627 = vmatpush3.bf16.msra.mxu1 %v5936_v18  ;;  %v4281_v29 = vsel %vm358_vm0, %v4278_v31, %v4280_v27  ;;  %v4283_v4 = vsel %vm358_vm0, %v4280_v27, %v4282_v28 }
 0x350   : > { %5640 = vmatprep.subr.bf16.mxu1 %v5937_v56  ;;  %v4422_v0 = vor.u32 %v4421_v9, %v4418_v2 }
 0x352   : > { %5617 = vmatmul.mubr.msk.bf16.gmra.mrb[112].mxu1 %vm3055_vm10, %v7692_v8  ;;  %v5938_v8 = vld [vmem:[%s7914_s3 + $0x88] sm:$0xff]   ;;  %v4426_v11 = vsel %vm3405_vm15, %v4422_v0, %v7716_v13  ;;  %v4442_v13 = vsel %vm3405_vm15, %v7744_v10, %v4441_v60 }
 0x353   : > { %5620 = vmatprep.mubr.msk.bf16.mxu1 %vm3055_vm10, %v4127_v25 }
 0x35a   : > { %5621 = vmatmul.mubr.msk.bf16.gmra.mrb[116].mxu1 %vm3055_vm10, %v4136_v54 }
 0x35b   : > { %5628 = vmatprep.mubr.msk.bf16.mxu1 %vm3055_vm10, %v4275_v5 }
 0x362   : > { %5629 = vmatmul.mubr.msk.bf16.vlgmr.msra.gmra.mrb[108].mxu1 %vm3055_vm10, %v7575_v32  ;;  %v4284_v32 = vrot.slane %v4069_v52, 4 }
 0x363   : > { %5641 = vmatpush3.bf16.msra.mxu1 %v5937_v56  ;;  %5632 = vmatprep.mubr.msk.bf16.mxu1 %vm3055_vm10, %v4279_v44 }
 0x364   : > { %5642 = vmatprep.subr.bf16.mxu1 %v5938_v8  ;;  %v4285_v6 = vsel %vm358_vm0, %v4282_v28, %v4284_v32  ;;  %vm4609_vm0 = vcmask 253952  }
 0x367   : > { %5643 = vmatpush3.bf16.msra.mxu1 %v5938_v8 }
 0x36a   : > { %5633 = vmatmul.mubr.msk.bf16.gmra.mrb[112].mxu1 %vm3055_vm10, %v4281_v29 }
 0x36b   : > { %5636 = vmatprep.mubr.msk.bf16.mxu1 %vm3055_vm10, %v4283_v4 }
 0x372   : > { %5637 = vmatmul.mubr.msk.bf16.gmra.mrb[116].mxu1 %vm3055_vm10, %v4285_v6 }
 0x373   : > { %5644 = vmatprep.mubr.msk.bf16.mxu1 %vm3055_vm10, %v4426_v11 }
 0x37a   : > { %5645 = vmatmul.mubr.msk.bf16.vlgmr.msra.gmra.mrb[108].mxu1 %vm3055_vm10, %v7725_v12  ;;  %v4451_v12 = vsel %vm3405_vm15, %v4441_v60, %v4450_v58 }
 0x37b   : > { %5648 = vmatprep.mubr.msk.bf16.mxu1 %vm3055_vm10, %v7747_v50  ;;  %v5005_v50 = vld [vmem:[%s7915_s4] ss:$0 sm:$0xff] }
 0x382   : > { %5649 = vmatmul.mubr.msk.bf16.gmra.mrb[112].mxu1 %vm3055_vm10, %v7753_v14 }
 0x383   : > { %5652 = vmatprep.mubr.msk.bf16.mxu1 %vm3055_vm10, %v4442_v13 }
 0x38a   : > { %5653 = vmatmul.mubr.msk.bf16.gmra.mrb[116].mxu1 %vm3055_vm10, %v4451_v12 }
 0x44d   : > { %v5646_v51 = vpop.f32.mrb[108].mxu1 }
 0x44e   : > { %v4584_v48 = vadd.f32 %v5646_v51, %v5005_v50  ;;  %v4516_v10 = vpop.f32.mrb[109].mxu1 }
 0x44f   : > { %v4582_v14 = vadd.f32 %v5005_v50, %v4516_v10  ;;  %v5647_v16 = vpop.f32.mrb[110].mxu1 }
 0x450   : > { %v4596_v62 = vmax.f32 %v4584_v48, 0.0  ;;  %v4585_v30 = vadd.f32 %v5647_v16, %v5005_v50  ;;  %v4519_v37 = vpop.f32.mrb[111].mxu1 }
 0x451   : > { %v4594_v41 = vmax.f32 %v4582_v14, 0.0  ;;  %v4583_v63 = vadd.f32 %v5005_v50, %v4519_v37 }
 0x452   : > { %4610 = vst.msk [vmem:[%s6070_s19 + $0xf] sm:$0x1] %vm4609_vm0, %v4596_v62  ;;  %v4597_v40 = vmax.f32 %v4585_v30, 0.0 }
 0x453   : > { %4607 = vst.msk [vmem:[%s6070_s19 - $0x1] sm:$0xfe] %vm4606_vm3, %v4594_v41  ;;  %v4595_v34 = vmax.f32 %v4583_v63, 0.0 }
 0x454   : > { %4611 = vst.msk [vmem:[%s6070_s19 + $0xf] sm:$0xfe] %vm4606_vm3, %v4597_v40 }
 0x455   : > { %4608 = vst.msk [vmem:[%s6070_s19 + $0x7] sm:$0xff] %vm3055_vm10, %v4595_v34  ;;  %v5650_v3 = vpop.f32.mrb[112].mxu1 }
 0x456   : > { %v4588_v47 = vadd.f32 %v5650_v3, %v5005_v50  ;;  %v4532_v59 = vpop.f32.mrb[113].mxu1 }
 0x457   : > { %v4586_v21 = vadd.f32 %v5005_v50, %v4532_v59  ;;  %v5651_v45 = vpop.f32.mrb[114].mxu1 }
 0x458   : > { %v4600_v57 = vmax.f32 %v4588_v47, 0.0  ;;  %v4589_v42 = vadd.f32 %v5651_v45, %v5005_v50  ;;  %v4535_v24 = vpop.f32.mrb[115].mxu1 }
 0x459   : > { %v4598_v61 = vmax.f32 %v4586_v21, 0.0  ;;  %v4587_v18 = vadd.f32 %v5005_v50, %v4535_v24 }
 0x45a   : > { %4614 = vst.msk [vmem:[%s6070_s19 + $0x1f] sm:$0xfe] %vm4606_vm3, %v4600_v57  ;;  %v4601_v15 = vmax.f32 %v4589_v42, 0.0 }
 0x45b   : > { %4612 = vst.msk [vmem:[%s6070_s19 + $0x17] sm:$0xff] %vm3055_vm10, %v4598_v61  ;;  %v4599_v19 = vmax.f32 %v4587_v18, 0.0 }
 0x45c   : > { %4615 = vst.msk [vmem:[%s6070_s19 + $0x27] sm:$0xff] %vm3055_vm10, %v4601_v15 }
 0x45d   : > { %4613 = vst.msk [vmem:[%s6070_s19 + $0x1f] sm:$0x1] %vm4609_vm0, %v4599_v19  ;;  %v5654_v52 = vpop.f32.mrb[116].mxu1 }
 0x45e   : > { %v4592_v33 = vadd.f32 %v5654_v52, %v5005_v50  ;;  %v4548_v1 = vpop.f32.mrb[117].mxu1 }
 0x45f   : > { %v4590_v39 = vadd.f32 %v5005_v50, %v4548_v1  ;;  %v5655_v56 = vpop.f32.mrb[118].mxu1 }
 0x460   : > { %v4604_v20 = vmax.f32 %v4592_v33, 0.0  ;;  %v4593_v17 = vadd.f32 %v5655_v56, %v5005_v50  ;;  %v4551_v25 = vpop.f32.mrb[119].mxu1 }
 0x461   : > { %v4602_v38 = vmax.f32 %v4590_v39, 0.0  ;;  %v4591_v26 = vadd.f32 %v5005_v50, %v4551_v25 }
 0x462   : > { %4618 = vst.msk [vmem:[%s6070_s19 + $0x37] sm:$0xff] %vm3055_vm10, %v4604_v20  ;;  %v4605_v49 = vmax.f32 %v4593_v17, 0.0 }
 0x463   : > { %4616 = vst.msk [vmem:[%s6070_s19 + $0x2f] sm:$0x1] %vm4609_vm0, %v4602_v38  ;;  %v4603_v54 = vmax.f32 %v4591_v26, 0.0 }
 0x464   : > { %4619 = vst.msk [vmem:[%s6070_s19 + $0x3f] sm:$0x1] %vm4609_vm0, %v4605_v49 }
 0x465   : > { %4617 = vst.msk [vmem:[%s6070_s19 + $0x2f] sm:$0xfe] %vm4606_vm3, %v4603_v54 }
 0x466 PF: > { %s15_s22 = sadd.s32 1, %s5977_s22   ;;  %s7968_s18 = smov %s5969_s20 }
 0x467   : > { %p12_p10 = scmp.ge.s32.totalorder %s15_s22, 10   ;;  %s7969_s19 = smov %s5973_s21 }
 0x468   : > { %s7970_s20 = smov %s7973_s23  ;;  %s7971_s21 = smov %s7977_s24 }
 0x469   :  { %14 = sbr.rel (!%p12_p10) target bundleno = 3 (0x3), region = 94 }

</bundles_post_ra>
